<compile_context>
chip_gen: v7x
topology: tpu7x:2x2x1
jax: 0.10.0
libtpu: 0.0.40
codegen_flags: <defaults>
</compile_context>

<pallas_src>
import functools
import math

import jax
import jax.numpy as jnp
from jax.experimental import pallas as pl
from jax.experimental.pallas import tpu as pltpu

_NEG = -1e30  # finite "minus infinity"; every masked row keeps its diagonal unmasked.


# ----------------------------------------------------------------------------- fused kernel

def _forward_kernel(dims, entries, x_ref, slab_ref, out_ref, dec_cls_ref, tok_scr):
    (E, H, Dh, dm, dH, dDh, Q, n_enc, n_dec) = dims

    it = iter(entries)          # static (offset, rows, cols) descriptors into the slab

    def rd():
        off, r, c = next(it)
        return slab_ref[off:off + r, 0:c]

    def ln(x, g, b):            # nn.LayerNorm, eps = 1e-5
        mu = jnp.mean(x, axis=-1, keepdims=True)
        var = jnp.mean(jnp.square(x - mu), axis=-1, keepdims=True)
        return (x - mu) * jax.lax.rsqrt(var + 1e-5) * g + b

    def dense(x, w, b=None):
        y = jnp.dot(x, w, preferred_element_type=jnp.float32)
        return y if b is None else y + b

    def gelu(x):                # exact erf GELU (torch default / F.gelu)
        return 0.5 * x * (1.0 + jax.lax.erf(x * (1.0 / math.sqrt(2.0))))

    def split_heads(mat, nh, dh, col0):
        # (T, *) -> (nh, T, dh): heads move from lane blocks to a leading (outer) axis.
        return jnp.stack(
            [mat[:, col0 + j * dh: col0 + (j + 1) * dh] for j in range(nh)], axis=0)

    def attend(q3, k3, v3, scale, bias=None):
        # ONE batched score dot, ONE softmax over the whole (nh,Tq,Tk) tensor, ONE PV dot.
        s = jnp.einsum('hqd,hkd->hqk', q3, k3,
                       preferred_element_type=jnp.float32) * scale
        if bias is not None:
            s = s + bias
        m = jnp.max(s, axis=-1, keepdims=True)
        e = jnp.exp(s - m)
        p = e / jnp.sum(e, axis=-1, keepdims=True)   # exact division (correctness review)
        return jnp.einsum('hqk,hkd->hqd', p, v3, preferred_element_type=jnp.float32)

    def merge_heads(o3, wo, nh, dh):
        # head-concat folded into the output projection: sum_j o_j @ Wo[j*dh:(j+1)*dh]
        acc = None
        for j in range(nh):
            c = jnp.dot(o3[j], wo[j * dh:(j + 1) * dh, :],
                        preferred_element_type=jnp.float32)
            acc = c if acc is None else acc + c
        return acc

    # ---- token assembly: linear_encoding + cat(cls) + learned positional encoding ------
    w_le, b_le, cls_tok, pos_emb = rd(), rd(), rd(), rd()
    xin = x_ref[0]                                    # (P, F) — this batch element
    emb = dense(xin, w_le, b_le)                      # (P, E)
    P = emb.shape[0]
    tok_scr[0:P, :] = emb                             # append cls token via VMEM scratch
    tok_scr[P:P + 1, :] = cls_tok
    x = tok_scr[...] + pos_emb                        # (N, E); pe_dropout = identity

    # ---- transformer encoder (pre-norm residual blocks) --------------------------------
    enc_scale = Dh ** -0.5
    for _ in range(n_enc):
        ln1_g, ln1_b = rd(), rd()
        wqkv = rd()                                   # (E, 3E), qkv_bias = False
        wo, bo = rd(), rd()
        ln2_g, ln2_b = rd(), rd()
        w1, b1, w2, b2 = rd(), rd(), rd(), rd()

        h = ln(x, ln1_g, ln1_b)
        qkv = dense(h, wqkv)                          # fused QKV: one matmul
        q3 = split_heads(qkv, H, Dh, 0)
        k3 = split_heads(qkv, H, Dh, E)
        v3 = split_heads(qkv, H, Dh, 2 * E)
        o3 = attend(q3, k3, v3, enc_scale)
        x = x + merge_heads(o3, wo, H, Dh) + bo       # residual (attn dropout = identity)

        h = ln(x, ln2_g, ln2_b)
        x = x + dense(gelu(dense(h, w1, b1)), w2, b2)

    pre_g, pre_b = rd(), rd()
    x = ln(x, pre_g, pre_b)                           # pre_head_ln; decoder cross memory

    # ---- Informer-style decoder ----------------------------------------------------------
    dec = rd()                                        # decoder_cls_token (Q, dm)
    dec_scale = dDh ** -0.5
    # Causal mask generated on the VPU (no HBM constant). Every row keeps its diagonal,
    # so no attention row is ever fully masked (invariant required by the -1e30 trick).
    rr = jax.lax.broadcasted_iota(jnp.int32, (Q, Q), 0)
    cc = jax.lax.broadcasted_iota(jnp.int32, (Q, Q), 1)
    causal = jnp.where(cc <= rr, 0.0, _NEG).astype(jnp.float32)

    for _ in range(n_dec):
        wqkv_d, bqkv_d, wo_s, bo_s = rd(), rd(), rd(), rd()
        n1_g, n1_b = rd(), rd()
        wq_c, bq_c, wkv_c, bkv_c, wo_c, bo_c = rd(), rd(), rd(), rd(), rd(), rd()
        n2_g, n2_b = rd(), rd()
        c1_w, c1_b, c2_w, c2_b = rd(), rd(), rd(), rd()
        n3_g, n3_b = rd(), rd()

        # masked (causal) self-attention
        qkv = dense(dec, wqkv_d, bqkv_d)              # fused QKV: one matmul
        q3 = split_heads(qkv, dH, dDh, 0)
        k3 = split_heads(qkv, dH, dDh, dm)
        v3 = split_heads(qkv, dH, dDh, 2 * dm)
        o3 = attend(q3, k3, v3, dec_scale, causal)
        dec = ln(dec + merge_heads(o3, wo_s, dH, dDh) + bo_s, n1_g, n1_b)

        # cross-attention over the encoder output
        qc = dense(dec, wq_c, bq_c)
        kv = dense(x, wkv_c, bkv_c)                   # fused K/V: one matmul
        q3 = split_heads(qc, dH, dDh, 0)
        k3 = split_heads(kv, dH, dDh, 0)
        v3 = split_heads(kv, dH, dDh, dm)
        o3 = attend(q3, k3, v3, dec_scale)
        dec = ln(dec + merge_heads(o3, wo_c, dH, dDh) + bo_c, n2_g, n2_b)

        # 1x1 Conv1d pair == pointwise MLP
        y = dense(gelu(dense(dec, c1_w, c1_b)), c2_w, c2_b)
        dec = ln(dec + y, n3_g, n3_b)

    dn_g, dn_b = rd(), rd()
    dec = ln(dec, dn_g, dn_b)                         # Decoder norm_layer; after_dropout = id

    cls_w, cls_b = rd(), rd()
    dec_cls_out = dense(dec, cls_w, cls_b)            # classifier -> (Q, num_class)

    dec_mean = jnp.mean(dec, axis=0, keepdims=True)   # dec.mean(dim=1)     -> (1, dm)
    cls_feat = x[x.shape[0] - 1:x.shape[0], :]        # x[:, -1] (cls token) -> (1, E)
    mlp_w1, mlp_w2, mlp_b = rd(), rd(), rd()
    out = dense(cls_feat, mlp_w1) + dense(dec_mean, mlp_w2) + mlp_b   # concat folded in

    out_ref[0] = out.astype(out_ref.dtype)            # (1, num_class)
    dec_cls_ref[0] = dec_cls_out.astype(dec_cls_ref.dtype)


# ----------------------------------------------------------------------------- slab packing

def _flatten_model(p):
    """Canonical read order — MUST match the rd() sequence in _forward_kernel."""
    flat = [p["lin_enc_w"], p["lin_enc_b"], p["cls_token"], p["pos_emb"]]
    for lp in p["enc_layers"]:
        flat += [lp["ln1_g"], lp["ln1_b"], lp["qkv_w"], lp["proj_w"], lp["proj_b"],
                 lp["ln2_g"], lp["ln2_b"], lp["ff1_w"], lp["ff1_b"], lp["ff2_w"], lp["ff2_b"]]
    flat += [p["pre_ln_g"], p["pre_ln_b"], p["decoder_cls_token"]]
    for lp in p["dec_layers"]:
        sa, ca = lp["self_attn"], lp["cross_attn"]
        flat += [sa["wqkv"], sa["bqkv"], sa["wo"], sa["bo"]]
        flat += [lp["n1_g"], lp["n1_b"]]
        flat += [ca["wq"], ca["bq"], ca["wkv"], ca["bkv"], ca["wo"], ca["bo"]]
        flat += [lp["n2_g"], lp["n2_b"],
                 lp["c1_w"], lp["c1_b"], lp["c2_w"], lp["c2_b"],
                 lp["n3_g"], lp["n3_b"]]
    flat += [p["dec_norm_g"], p["dec_norm_b"], p["cls_w"], p["cls_b"],
             p["mlp_w1"], p["mlp_w2"], p["mlp_b"]]
    return flat


def _pack_model(params):
    """Pack every 2-D parameter block into ONE lane-dense (rows, 128) f32 slab."""
    mats = _flatten_model(params)
    maxc = max(int(m.shape[1]) for m in mats)
    lane = max(128, ((maxc + 127) // 128) * 128)
    entries, padded, off = [], [], 0
    for m in mats:
        m = jnp.asarray(m, jnp.float32)
        r, c = int(m.shape[0]), int(m.shape[1])
        rp = ((r + 7) // 8) * 8                       # sublane-tile aligned row offsets
        entries.append((off, r, c))
        padded.append(jnp.pad(m, ((0, rp - r), (0, lane - c))))
        off += rp
    return jnp.concatenate(padded, axis=0), tuple(entries)


# ----------------------------------------------------------------------------- wrapper

def make_forward(cfg, batch):
    B = batch
    N = cfg["seq_length"]
    P = N - 1
    F = cfg["flatten_dim"]
    E = cfg["embedding_dim"]
    H = cfg["num_heads"]
    Dh = E // H
    Q = cfg["query_num"]
    dm = cfg["d_model"]
    dH = cfg["dec_heads"]
    dDh = dm // dH
    nc = cfg["num_class"]
    dims = (E, H, Dh, dm, dH, dDh, Q, cfg["num_layers"], cfg["dec_layers"])

    def forward(params, x):
        slab, entries = _pack_model(params)
        R, L = int(slab.shape[0]), int(slab.shape[1])
        kernel = functools.partial(_forward_kernel, dims, entries)
        out, dec_cls = pl.pallas_call(
            kernel,
            grid=(B,),
            in_specs=[
                pl.BlockSpec((1, P, F), lambda b: (b, 0, 0)),     # per-batch input block
                pl.BlockSpec((R, L), lambda b: (0, 0)),           # weight slab, resident
            ],
            out_specs=(
                pl.BlockSpec((1, 1, nc), lambda b: (b, 0, 0)),
                pl.BlockSpec((1, Q, nc), lambda b: (b, 0, 0)),
            ),
            out_shape=(
                jax.ShapeDtypeStruct((B, 1, nc), jnp.float32),
                jax.ShapeDtypeStruct((B, Q, nc), jnp.float32),
            ),
            scratch_shapes=[pltpu.VMEM((N, E), jnp.float32)],     # cls-token append buffer
            compiler_params=pltpu.CompilerParams(
                dimension_semantics=("parallel",)),               # megacore on v7x
        )(x, slab)
        return out.reshape(B, nc), dec_cls

    return forward


# ----------------------------------------------------------------------------- parameter init

def init_params(key, cfg):
    E, F, Hd = cfg["embedding_dim"], cfg["flatten_dim"], cfg["hidden_dim"]
    dm, dff = cfg["d_model"], cfg["d_ff"]
    nc, N, Q = cfg["num_class"], cfg["seq_length"], cfg["query_num"]
    state = {"k": key}

    def nk():
        state["k"], sub = jax.random.split(state["k"])
        return sub

    def randn(*shape):
        return jax.random.normal(nk(), shape, jnp.float32) * 0.02

    def ones(*shape):
        return jnp.ones(shape, jnp.float32)

    def zeros(*shape):
        return jnp.zeros(shape, jnp.float32)

    # Linear weights are stored as (in, out) == torch_W.T; attention projections are
    # stored fused ([q|k|v] column blocks, head-major inside each block).
    def enc_layer():
        return {
            "ln1_g": ones(1, E), "ln1_b": zeros(1, E),
            "qkv_w": randn(E, 3 * E),                 # qkv_bias = False
            "proj_w": randn(E, E), "proj_b": randn(1, E),
            "ln2_g": ones(1, E), "ln2_b": zeros(1, E),
            "ff1_w": randn(E, Hd), "ff1_b": randn(1, Hd),
            "ff2_w": randn(Hd, E), "ff2_b": randn(1, E),
        }

    def dec_layer():
        return {
            "self_attn": {"wqkv": randn(dm, 3 * dm), "bqkv": randn(1, 3 * dm),
                          "wo": randn(dm, dm), "bo": randn(1, dm)},
            "cross_attn": {"wq": randn(dm, dm), "bq": randn(1, dm),
                           "wkv": randn(dm, 2 * dm), "bkv": randn(1, 2 * dm),
                           "wo": randn(dm, dm), "bo": randn(1, dm)},
            "n1_g": ones(1, dm), "n1_b": zeros(1, dm),
            "n2_g": ones(1, dm), "n2_b": zeros(1, dm),
            "n3_g": ones(1, dm), "n3_b": zeros(1, dm),
            "c1_w": randn(dm, dff), "c1_b": randn(1, dff),
            "c2_w": randn(dff, dm), "c2_b": randn(1, dm),
        }

    params = {
        "lin_enc_w": randn(F, E), "lin_enc_b": randn(1, E),
        "cls_token": zeros(1, E),                     # nn.Parameter(zeros)
        "pos_emb": randn(N, E),                       # learned positional table
        "enc_layers": [enc_layer() for _ in range(cfg["num_layers"])],
        "pre_ln_g": ones(1, E), "pre_ln_b": zeros(1, E),
        "decoder_cls_token": zeros(Q, dm),            # nn.Parameter(zeros)
        "dec_layers": [dec_layer() for _ in range(cfg["dec_layers"])],
        "dec_norm_g": ones(1, dm), "dec_norm_b": zeros(1, dm),
        "cls_w": randn(dm, nc), "cls_b": randn(1, nc),
        "mlp_w1": randn(E, nc), "mlp_w2": randn(dm, nc), "mlp_b": randn(1, nc),
    }
    # TODO(synk): sup_con_head / conv_x / decoder_position_encoding exist in __init__ but
    # are unused by forward(); they are intentionally not materialized.
    return params


# ----------------------------------------------------------------------------- main

if __name__ == "__main__":
    args = dict(
        enc_layers=8, num_class=5, dim_feature=16, embedding_dim=32, num_heads=4,
        patch_dim=1, dropout_rate=0.0, attn_dropout_rate=0.0, num_layers=2, hidden_dim=64,
        decoder_embedding_dim=32, decoder_num_heads=4, decoder_layers=1,
        decoder_embedding_dim_out=64, query_num=4, decoder_attn_dropout_rate=0.0,
    )
    num_patches = args["enc_layers"] // args["patch_dim"]
    cfg = dict(
        embedding_dim=args["embedding_dim"],
        num_heads=args["num_heads"],
        num_layers=args["num_layers"],
        hidden_dim=args["hidden_dim"],
        flatten_dim=args["patch_dim"] * args["patch_dim"] * args["dim_feature"],
        seq_length=num_patches + 1,
        num_class=args["num_class"],
        d_model=args["decoder_embedding_dim"],
        d_ff=args["decoder_embedding_dim_out"],
        dec_heads=args["decoder_num_heads"],
        dec_layers=args["decoder_layers"],
        query_num=args["query_num"],
    )

    root = jax.random.PRNGKey(0)
    k_params, k_input = jax.random.split(root)
    params = init_params(k_params, cfg)

    B = 2
    x_in = jax.random.normal(k_input, (B, num_patches, cfg["flatten_dim"]), jnp.float32)

    fwd = jax.jit(make_forward(cfg, B))
    out, dec_cls_out = fwd(params, x_in)
    jax.block_until_ready((out, dec_cls_out))

    assert out.shape == (B, cfg["num_class"])
    assert dec_cls_out.shape == (B, cfg["query_num"], cfg["num_class"])
    assert bool(jnp.all(jnp.isfinite(out))) and bool(jnp.all(jnp.isfinite(dec_cls_out)))
    print("KERNEL_OK")
</pallas_src>

<mosaic_0001>
module attributes {stable_mosaic.version = 11 : i64} {
  func.func @_forward_kernel(%arg0: i32, %arg1: memref<1x8x16xf32, #tpu.memory_space<vmem>>, %arg2: memref<992x128xf32, #tpu.memory_space<vmem>>, %arg3: memref<1x1x5xf32, #tpu.memory_space<vmem>>, %arg4: memref<1x4x5xf32, #tpu.memory_space<vmem>>, %arg5: memref<9x32xf32, #tpu.memory_space<vmem>>) attributes {dimension_semantics = [#tpu.dimension_semantics<parallel>], iteration_bounds = array<i64: 2>, scalar_prefetch = 0 : i64, scratch_operands = 1 : i64, tpu.core_type = #tpu.core_type<tc>, window_params = [{transform_indices = @transform_0, window_bounds = array<i64: 1, 8, 16>}, {pipeline_mode = #tpu.pipeline_mode<synchronous>, transform_indices = @transform_1, window_bounds = array<i64: 992, 128>}, {transform_indices = @transform_2, window_bounds = array<i64: 1, 1, 5>}, {transform_indices = @transform_3, window_bounds = array<i64: 1, 4, 5>}]} {
    %c0 = arith.constant 0 : index
    %c0_0 = arith.constant 0 : index
    %0 = vector.load %arg2[%c0, %c0_0] : memref<992x128xf32, #tpu.memory_space<vmem>>, vector<16x32xf32>
    %c16 = arith.constant 16 : index
    %c0_1 = arith.constant 0 : index
    %1 = vector.load %arg2[%c16, %c0_1] : memref<992x128xf32, #tpu.memory_space<vmem>>, vector<1x32xf32>
    %c24 = arith.constant 24 : index
    %c0_2 = arith.constant 0 : index
    %2 = vector.load %arg2[%c24, %c0_2] : memref<992x128xf32, #tpu.memory_space<vmem>>, vector<1x32xf32>
    %c32 = arith.constant 32 : index
    %c0_3 = arith.constant 0 : index
    %3 = vector.load %arg2[%c32, %c0_3] : memref<992x128xf32, #tpu.memory_space<vmem>>, vector<9x32xf32>
    %c0_4 = arith.constant 0 : index
    %c0_5 = arith.constant 0 : index
    %c0_6 = arith.constant 0 : index
    %4 = vector.load %arg1[%c0_4, %c0_5, %c0_6] : memref<1x8x16xf32, #tpu.memory_space<vmem>>, vector<1x8x16xf32>
    %5 = vector.shape_cast %4 : vector<1x8x16xf32> to vector<8x16xf32>
    %cst = arith.constant dense<0.000000e+00> : vector<8x32xf32>
    %6 = tpu.matmul %5, %0, %cst {dimension_numbers = #tpu.dot_dimension_numbers<[1], [0], [0], [1], [0, 0, 1, 1], [], []>} : vector<8x16xf32>, vector<16x32xf32>, vector<8x32xf32> -> vector<8x32xf32>
    %7 = vector.broadcast %1 : vector<1x32xf32> to vector<8x32xf32>
    %8 = arith.addf %6, %7 : vector<8x32xf32>
    %c0_7 = arith.constant 0 : index
    %c0_8 = arith.constant 0 : index
    %9 = vector.load %arg5[%c0_7, %c0_8] : memref<9x32xf32, #tpu.memory_space<vmem>>, vector<8x32xf32>
    tpu.vector_store %arg5[%c0_7, %c0_8], %8 {strides = array<i32>} : memref<9x32xf32, #tpu.memory_space<vmem>>, vector<8x32xf32>,
    %c8 = arith.constant 8 : index
    %c0_9 = arith.constant 0 : index
    %10 = vector.load %arg5[%c8, %c0_9] : memref<9x32xf32, #tpu.memory_space<vmem>>, vector<1x32xf32>
    tpu.vector_store %arg5[%c8, %c0_9], %2 {strides = array<i32>} : memref<9x32xf32, #tpu.memory_space<vmem>>, vector<1x32xf32>,
    %c0_10 = arith.constant 0 : index
    %c0_11 = arith.constant 0 : index
    %11 = vector.load %arg5[%c0_10, %c0_11] : memref<9x32xf32, #tpu.memory_space<vmem>>, vector<9x32xf32>
    %12 = arith.addf %11, %3 : vector<9x32xf32>
    %c48 = arith.constant 48 : index
    %c0_12 = arith.constant 0 : index
    %13 = vector.load %arg2[%c48, %c0_12] : memref<992x128xf32, #tpu.memory_space<vmem>>, vector<1x32xf32>
    %c56 = arith.constant 56 : index
    %c0_13 = arith.constant 0 : index
    %14 = vector.load %arg2[%c56, %c0_13] : memref<992x128xf32, #tpu.memory_space<vmem>>, vector<1x32xf32>
    %c64 = arith.constant 64 : index
    %c0_14 = arith.constant 0 : index
    %15 = vector.load %arg2[%c64, %c0_14] : memref<992x128xf32, #tpu.memory_space<vmem>>, vector<32x96xf32>
    %c96 = arith.constant 96 : index
    %c0_15 = arith.constant 0 : index
    %16 = vector.load %arg2[%c96, %c0_15] : memref<992x128xf32, #tpu.memory_space<vmem>>, vector<32x32xf32>
    %c128 = arith.constant 128 : index
    %c0_16 = arith.constant 0 : index
    %17 = vector.load %arg2[%c128, %c0_16] : memref<992x128xf32, #tpu.memory_space<vmem>>, vector<1x32xf32>
    %c136 = arith.constant 136 : index
    %c0_17 = arith.constant 0 : index
    %18 = vector.load %arg2[%c136, %c0_17] : memref<992x128xf32, #tpu.memory_space<vmem>>, vector<1x32xf32>
    %c144 = arith.constant 144 : index
    %c0_18 = arith.constant 0 : index
    %19 = vector.load %arg2[%c144, %c0_18] : memref<992x128xf32, #tpu.memory_space<vmem>>, vector<1x32xf32>
    %c152 = arith.constant 152 : index
    %c0_19 = arith.constant 0 : index
    %20 = vector.load %arg2[%c152, %c0_19] : memref<992x128xf32, #tpu.memory_space<vmem>>, vector<32x64xf32>
    %c184 = arith.constant 184 : index
    %c0_20 = arith.constant 0 : index
    %21 = vector.load %arg2[%c184, %c0_20] : memref<992x128xf32, #tpu.memory_space<vmem>>, vector<1x64xf32>
    %c192 = arith.constant 192 : index
    %c0_21 = arith.constant 0 : index
    %22 = vector.load %arg2[%c192, %c0_21] : memref<992x128xf32, #tpu.memory_space<vmem>>, vector<64x32xf32>
    %c256 = arith.constant 256 : index
    %c0_22 = arith.constant 0 : index
    %23 = vector.load %arg2[%c256, %c0_22] : memref<992x128xf32, #tpu.memory_space<vmem>>, vector<1x32xf32>
    %cst_23 = arith.constant dense<0.000000e+00> : vector<9xf32>
    %24 = vector.multi_reduction <add>, %12, %cst_23 [1] : vector<9x32xf32> to vector<9xf32>
    %25 = vector.shape_cast %24 : vector<9xf32> to vector<9x1xf32>
    %cst_24 = arith.constant 3.200000e+01 : f32
    %26 = vector.broadcast %cst_24 : f32 to vector<9x1xf32>
    %27 = arith.divf %25, %26 : vector<9x1xf32>
    %28 = vector.broadcast %27 : vector<9x1xf32> to vector<9x32xf32>
    %29 = arith.subf %12, %28 : vector<9x32xf32>
    %30 = arith.mulf %29, %29 : vector<9x32xf32>
    %cst_25 = arith.constant dense<0.000000e+00> : vector<9xf32>
    %31 = vector.multi_reduction <add>, %30, %cst_25 [1] : vector<9x32xf32> to vector<9xf32>
    %32 = vector.shape_cast %31 : vector<9xf32> to vector<9x1xf32>
    %cst_26 = arith.constant 3.200000e+01 : f32
    %33 = vector.broadcast %cst_26 : f32 to vector<9x1xf32>
    %34 = arith.divf %32, %33 : vector<9x1xf32>
    %35 = vector.broadcast %27 : vector<9x1xf32> to vector<9x32xf32>
    %36 = arith.subf %12, %35 : vector<9x32xf32>
    %cst_27 = arith.constant 9.99999974E-6 : f32
    %37 = vector.broadcast %cst_27 : f32 to vector<9x1xf32>
    %38 = arith.addf %34, %37 : vector<9x1xf32>
    %39 = math.rsqrt %38 : vector<9x1xf32>
    %40 = vector.broadcast %39 : vector<9x1xf32> to vector<9x32xf32>
    %41 = arith.mulf %36, %40 : vector<9x32xf32>
    %42 = vector.broadcast %13 : vector<1x32xf32> to vector<9x32xf32>
    %43 = arith.mulf %41, %42 : vector<9x32xf32>
    %44 = vector.broadcast %14 : vector<1x32xf32> to vector<9x32xf32>
    %45 = arith.addf %43, %44 : vector<9x32xf32>
    %cst_28 = arith.constant dense<0.000000e+00> : vector<9x96xf32>
    %46 = tpu.matmul %45, %15, %cst_28 {dimension_numbers = #tpu.dot_dimension_numbers<[1], [0], [0], [1], [0, 0, 1, 1], [], []>} : vector<9x32xf32>, vector<32x96xf32>, vector<9x96xf32> -> vector<9x96xf32>
    %47 = vector.extract_strided_slice %46 {offsets = [0, 0], sizes = [9, 8], strides = [1, 1]} : vector<9x96xf32> to vector<9x8xf32>
    %48 = vector.extract_strided_slice %46 {offsets = [0, 8], sizes = [9, 8], strides = [1, 1]} : vector<9x96xf32> to vector<9x8xf32>
    %49 = vector.extract_strided_slice %46 {offsets = [0, 16], sizes = [9, 8], strides = [1, 1]} : vector<9x96xf32> to vector<9x8xf32>
    %50 = vector.extract_strided_slice %46 {offsets = [0, 24], sizes = [9, 8], strides = [1, 1]} : vector<9x96xf32> to vector<9x8xf32>
    %51 = vector.shape_cast %47 : vector<9x8xf32> to vector<1x9x8xf32>
    %52 = vector.shape_cast %48 : vector<9x8xf32> to vector<1x9x8xf32>
    %53 = vector.shape_cast %49 : vector<9x8xf32> to vector<1x9x8xf32>
    %54 = vector.shape_cast %50 : vector<9x8xf32> to vector<1x9x8xf32>
    %55 = tpu.concatenate %51, %52, %53, %54 in 0 : vector<1x9x8xf32>, vector<1x9x8xf32>, vector<1x9x8xf32>, vector<1x9x8xf32> -> vector<4x9x8xf32>
    %56 = vector.extract_strided_slice %46 {offsets = [0, 32], sizes = [9, 8], strides = [1, 1]} : vector<9x96xf32> to vector<9x8xf32>
    %57 = vector.extract_strided_slice %46 {offsets = [0, 40], sizes = [9, 8], strides = [1, 1]} : vector<9x96xf32> to vector<9x8xf32>
    %58 = vector.extract_strided_slice %46 {offsets = [0, 48], sizes = [9, 8], strides = [1, 1]} : vector<9x96xf32> to vector<9x8xf32>
    %59 = vector.extract_strided_slice %46 {offsets = [0, 56], sizes = [9, 8], strides = [1, 1]} : vector<9x96xf32> to vector<9x8xf32>
    %60 = vector.shape_cast %56 : vector<9x8xf32> to vector<1x9x8xf32>
    %61 = vector.shape_cast %57 : vector<9x8xf32> to vector<1x9x8xf32>
    %62 = vector.shape_cast %58 : vector<9x8xf32> to vector<1x9x8xf32>
    %63 = vector.shape_cast %59 : vector<9x8xf32> to vector<1x9x8xf32>
    %64 = tpu.concatenate %60, %61, %62, %63 in 0 : vector<1x9x8xf32>, vector<1x9x8xf32>, vector<1x9x8xf32>, vector<1x9x8xf32> -> vector<4x9x8xf32>
    %65 = vector.extract_strided_slice %46 {offsets = [0, 64], sizes = [9, 8], strides = [1, 1]} : vector<9x96xf32> to vector<9x8xf32>
    %66 = vector.extract_strided_slice %46 {offsets = [0, 72], sizes = [9, 8], strides = [1, 1]} : vector<9x96xf32> to vector<9x8xf32>
    %67 = vector.extract_strided_slice %46 {offsets = [0, 80], sizes = [9, 8], strides = [1, 1]} : vector<9x96xf32> to vector<9x8xf32>
    %68 = vector.extract_strided_slice %46 {offsets = [0, 88], sizes = [9, 8], strides = [1, 1]} : vector<9x96xf32> to vector<9x8xf32>
    %69 = vector.shape_cast %65 : vector<9x8xf32> to vector<1x9x8xf32>
    %70 = vector.shape_cast %66 : vector<9x8xf32> to vector<1x9x8xf32>
    %71 = vector.shape_cast %67 : vector<9x8xf32> to vector<1x9x8xf32>
    %72 = vector.shape_cast %68 : vector<9x8xf32> to vector<1x9x8xf32>
    %73 = tpu.concatenate %69, %70, %71, %72 in 0 : vector<1x9x8xf32>, vector<1x9x8xf32>, vector<1x9x8xf32>, vector<1x9x8xf32> -> vector<4x9x8xf32>
    "tpu.trace_start"() <{level = 10 : i32, message = "hqd,hkd->hqk"}> : () -> ()
    %cst_29 = arith.constant dense<0.000000e+00> : vector<4x9x9xf32>
    %74 = tpu.matmul %55, %64, %cst_29 {dimension_numbers = #tpu.dot_dimension_numbers<[2], [2], [1], [1], [0, 0, 0, 1, 1, 1], [0], [0]>} : vector<4x9x8xf32>, vector<4x9x8xf32>, vector<4x9x9xf32> -> vector<4x9x9xf32>
    "tpu.trace_stop"() : () -> ()
    %cst_30 = arith.constant 0.353553385 : f32
    %75 = vector.broadcast %cst_30 : f32 to vector<4x9x9xf32>
    %76 = arith.mulf %74, %75 : vector<4x9x9xf32>
    %cst_31 = arith.constant dense<0xFF800000> : vector<4x9xf32>
    %77 = vector.multi_reduction <maximumf>, %76, %cst_31 [2] : vector<4x9x9xf32> to vector<4x9xf32>
    %78 = vector.shape_cast %77 : vector<4x9xf32> to vector<4x9x1xf32>
    %79 = vector.broadcast %78 : vector<4x9x1xf32> to vector<4x9x9xf32>
    %80 = arith.subf %76, %79 : vector<4x9x9xf32>
    %81 = math.exp %80 : vector<4x9x9xf32>
    %cst_32 = arith.constant dense<0.000000e+00> : vector<4x9xf32>
    %82 = vector.multi_reduction <add>, %81, %cst_32 [2] : vector<4x9x9xf32> to vector<4x9xf32>
    %83 = vector.shape_cast %82 : vector<4x9xf32> to vector<4x9x1xf32>
    %84 = vector.broadcast %83 : vector<4x9x1xf32> to vector<4x9x9xf32>
    %85 = arith.divf %81, %84 : vector<4x9x9xf32>
    "tpu.trace_start"() <{level = 10 : i32, message = "hqk,hkd->hqd"}> : () -> ()
    %cst_33 = arith.constant dense<0.000000e+00> : vector<4x9x8xf32>
    %86 = tpu.matmul %85, %73, %cst_33 {dimension_numbers = #tpu.dot_dimension_numbers<[2], [1], [1], [2], [0, 0, 0, 1, 1, 2], [0], [0]>} : vector<4x9x9xf32>, vector<4x9x8xf32>, vector<4x9x8xf32> -> vector<4x9x8xf32>
    "tpu.trace_stop"() : () -> ()
    %87 = vector.extract_strided_slice %86 {offsets = [0, 0, 0], sizes = [1, 9, 8], strides = [1, 1, 1]} : vector<4x9x8xf32> to vector<1x9x8xf32>
    %88 = vector.shape_cast %87 : vector<1x9x8xf32> to vector<9x8xf32>
    %89 = vector.extract_strided_slice %16 {offsets = [0, 0], sizes = [8, 32], strides = [1, 1]} : vector<32x32xf32> to vector<8x32xf32>
    %cst_34 = arith.constant dense<0.000000e+00> : vector<9x32xf32>
    %90 = tpu.matmul %88, %89, %cst_34 {dimension_numbers = #tpu.dot_dimension_numbers<[1], [0], [0], [1], [0, 0, 1, 1], [], []>} : vector<9x8xf32>, vector<8x32xf32>, vector<9x32xf32> -> vector<9x32xf32>
    %91 = vector.extract_strided_slice %86 {offsets = [1, 0, 0], sizes = [1, 9, 8], strides = [1, 1, 1]} : vector<4x9x8xf32> to vector<1x9x8xf32>
    %92 = vector.shape_cast %91 : vector<1x9x8xf32> to vector<9x8xf32>
    %93 = vector.extract_strided_slice %16 {offsets = [8, 0], sizes = [8, 32], strides = [1, 1]} : vector<32x32xf32> to vector<8x32xf32>
    %cst_35 = arith.constant dense<0.000000e+00> : vector<9x32xf32>
    %94 = tpu.matmul %92, %93, %cst_35 {dimension_numbers = #tpu.dot_dimension_numbers<[1], [0], [0], [1], [0, 0, 1, 1], [], []>} : vector<9x8xf32>, vector<8x32xf32>, vector<9x32xf32> -> vector<9x32xf32>
    %95 = arith.addf %90, %94 : vector<9x32xf32>
    %96 = vector.extract_strided_slice %86 {offsets = [2, 0, 0], sizes = [1, 9, 8], strides = [1, 1, 1]} : vector<4x9x8xf32> to vector<1x9x8xf32>
    %97 = vector.shape_cast %96 : vector<1x9x8xf32> to vector<9x8xf32>
    %98 = vector.extract_strided_slice %16 {offsets = [16, 0], sizes = [8, 32], strides = [1, 1]} : vector<32x32xf32> to vector<8x32xf32>
    %cst_36 = arith.constant dense<0.000000e+00> : vector<9x32xf32>
    %99 = tpu.matmul %97, %98, %cst_36 {dimension_numbers = #tpu.dot_dimension_numbers<[1], [0], [0], [1], [0, 0, 1, 1], [], []>} : vector<9x8xf32>, vector<8x32xf32>, vector<9x32xf32> -> vector<9x32xf32>
    %100 = arith.addf %95, %99 : vector<9x32xf32>
    %101 = vector.extract_strided_slice %86 {offsets = [3, 0, 0], sizes = [1, 9, 8], strides = [1, 1, 1]} : vector<4x9x8xf32> to vector<1x9x8xf32>
    %102 = vector.shape_cast %101 : vector<1x9x8xf32> to vector<9x8xf32>
    %103 = vector.extract_strided_slice %16 {offsets = [24, 0], sizes = [8, 32], strides = [1, 1]} : vector<32x32xf32> to vector<8x32xf32>
    %cst_37 = arith.constant dense<0.000000e+00> : vector<9x32xf32>
    %104 = tpu.matmul %102, %103, %cst_37 {dimension_numbers = #tpu.dot_dimension_numbers<[1], [0], [0], [1], [0, 0, 1, 1], [], []>} : vector<9x8xf32>, vector<8x32xf32>, vector<9x32xf32> -> vector<9x32xf32>
    %105 = arith.addf %100, %104 : vector<9x32xf32>
    %106 = arith.addf %12, %105 : vector<9x32xf32>
    %107 = vector.broadcast %17 : vector<1x32xf32> to vector<9x32xf32>
    %108 = arith.addf %106, %107 : vector<9x32xf32>
    %cst_38 = arith.constant dense<0.000000e+00> : vector<9xf32>
    %109 = vector.multi_reduction <add>, %108, %cst_38 [1] : vector<9x32xf32> to vector<9xf32>
    %110 = vector.shape_cast %109 : vector<9xf32> to vector<9x1xf32>
    %cst_39 = arith.constant 3.200000e+01 : f32
    %111 = vector.broadcast %cst_39 : f32 to vector<9x1xf32>
    %112 = arith.divf %110, %111 : vector<9x1xf32>
    %113 = vector.broadcast %112 : vector<9x1xf32> to vector<9x32xf32>
    %114 = arith.subf %108, %113 : vector<9x32xf32>
    %115 = arith.mulf %114, %114 : vector<9x32xf32>
    %cst_40 = arith.constant dense<0.000000e+00> : vector<9xf32>
    %116 = vector.multi_reduction <add>, %115, %cst_40 [1] : vector<9x32xf32> to vector<9xf32>
    %117 = vector.shape_cast %116 : vector<9xf32> to vector<9x1xf32>
    %cst_41 = arith.constant 3.200000e+01 : f32
    %118 = vector.broadcast %cst_41 : f32 to vector<9x1xf32>
    %119 = arith.divf %117, %118 : vector<9x1xf32>
    %120 = vector.broadcast %112 : vector<9x1xf32> to vector<9x32xf32>
    %121 = arith.subf %108, %120 : vector<9x32xf32>
    %cst_42 = arith.constant 9.99999974E-6 : f32
    %122 = vector.broadcast %cst_42 : f32 to vector<9x1xf32>
    %123 = arith.addf %119, %122 : vector<9x1xf32>
    %124 = math.rsqrt %123 : vector<9x1xf32>
    %125 = vector.broadcast %124 : vector<9x1xf32> to vector<9x32xf32>
    %126 = arith.mulf %121, %125 : vector<9x32xf32>
    %127 = vector.broadcast %18 : vector<1x32xf32> to vector<9x32xf32>
    %128 = arith.mulf %126, %127 : vector<9x32xf32>
    %129 = vector.broadcast %19 : vector<1x32xf32> to vector<9x32xf32>
    %130 = arith.addf %128, %129 : vector<9x32xf32>
    %cst_43 = arith.constant dense<0.000000e+00> : vector<9x64xf32>
    %131 = tpu.matmul %130, %20, %cst_43 {dimension_numbers = #tpu.dot_dimension_numbers<[1], [0], [0], [1], [0, 0, 1, 1], [], []>} : vector<9x32xf32>, vector<32x64xf32>, vector<9x64xf32> -> vector<9x64xf32>
    %132 = vector.broadcast %21 : vector<1x64xf32> to vector<9x64xf32>
    %133 = arith.addf %131, %132 : vector<9x64xf32>
    %cst_44 = arith.constant 5.000000e-01 : f32
    %134 = vector.broadcast %cst_44 : f32 to vector<9x64xf32>
    %135 = arith.mulf %134, %133 : vector<9x64xf32>
    %cst_45 = arith.constant 0.707106769 : f32
    %136 = vector.broadcast %cst_45 : f32 to vector<9x64xf32>
    %137 = arith.mulf %133, %136 : vector<9x64xf32>
    %138 = math.erf %137 : vector<9x64xf32>
    %cst_46 = arith.constant 1.000000e+00 : f32
    %139 = vector.broadcast %cst_46 : f32 to vector<9x64xf32>
    %140 = arith.addf %139, %138 : vector<9x64xf32>
    %141 = arith.mulf %135, %140 : vector<9x64xf32>
    %cst_47 = arith.constant dense<0.000000e+00> : vector<9x32xf32>
    %142 = tpu.matmul %141, %22, %cst_47 {dimension_numbers = #tpu.dot_dimension_numbers<[1], [0], [0], [1], [0, 0, 1, 1], [], []>} : vector<9x64xf32>, vector<64x32xf32>, vector<9x32xf32> -> vector<9x32xf32>
    %143 = vector.broadcast %23 : vector<1x32xf32> to vector<9x32xf32>
    %144 = arith.addf %142, %143 : vector<9x32xf32>
    %145 = arith.addf %108, %144 : vector<9x32xf32>
    %c264 = arith.constant 264 : index
    %c0_48 = arith.constant 0 : index
    %146 = vector.load %arg2[%c264, %c0_48] : memref<992x128xf32, #tpu.memory_space<vmem>>, vector<1x32xf32>
    %c272 = arith.constant 272 : index
    %c0_49 = arith.constant 0 : index
    %147 = vector.load %arg2[%c272, %c0_49] : memref<992x128xf32, #tpu.memory_space<vmem>>, vector<1x32xf32>
    %c280 = arith.constant 280 : index
    %c0_50 = arith.constant 0 : index
    %148 = vector.load %arg2[%c280, %c0_50] : memref<992x128xf32, #tpu.memory_space<vmem>>, vector<32x96xf32>
    %c312 = arith.constant 312 : index
    %c0_51 = arith.constant 0 : index
    %149 = vector.load %arg2[%c312, %c0_51] : memref<992x128xf32, #tpu.memory_space<vmem>>, vector<32x32xf32>
    %c344 = arith.constant 344 : index
    %c0_52 = arith.constant 0 : index
    %150 = vector.load %arg2[%c344, %c0_52] : memref<992x128xf32, #tpu.memory_space<vmem>>, vector<1x32xf32>
    %c352 = arith.constant 352 : index
    %c0_53 = arith.constant 0 : index
    %151 = vector.load %arg2[%c352, %c0_53] : memref<992x128xf32, #tpu.memory_space<vmem>>, vector<1x32xf32>
    %c360 = arith.constant 360 : index
    %c0_54 = arith.constant 0 : index
    %152 = vector.load %arg2[%c360, %c0_54] : memref<992x128xf32, #tpu.memory_space<vmem>>, vector<1x32xf32>
    %c368 = arith.constant 368 : index
    %c0_55 = arith.constant 0 : index
    %153 = vector.load %arg2[%c368, %c0_55] : memref<992x128xf32, #tpu.memory_space<vmem>>, vector<32x64xf32>
    %c400 = arith.constant 400 : index
    %c0_56 = arith.constant 0 : index
    %154 = vector.load %arg2[%c400, %c0_56] : memref<992x128xf32, #tpu.memory_space<vmem>>, vector<1x64xf32>
    %c408 = arith.constant 408 : index
    %c0_57 = arith.constant 0 : index
    %155 = vector.load %arg2[%c408, %c0_57] : memref<992x128xf32, #tpu.memory_space<vmem>>, vector<64x32xf32>
    %c472 = arith.constant 472 : index
    %c0_58 = arith.constant 0 : index
    %156 = vector.load %arg2[%c472, %c0_58] : memref<992x128xf32, #tpu.memory_space<vmem>>, vector<1x32xf32>
    %cst_59 = arith.constant dense<0.000000e+00> : vector<9xf32>
    %157 = vector.multi_reduction <add>, %145, %cst_59 [1] : vector<9x32xf32> to vector<9xf32>
    %158 = vector.shape_cast %157 : vector<9xf32> to vector<9x1xf32>
    %cst_60 = arith.constant 3.200000e+01 : f32
    %159 = vector.broadcast %cst_60 : f32 to vector<9x1xf32>
    %160 = arith.divf %158, %159 : vector<9x1xf32>
    %161 = vector.broadcast %160 : vector<9x1xf32> to vector<9x32xf32>
    %162 = arith.subf %145, %161 : vector<9x32xf32>
    %163 = arith.mulf %162, %162 : vector<9x32xf32>
    %cst_61 = arith.constant dense<0.000000e+00> : vector<9xf32>
    %164 = vector.multi_reduction <add>, %163, %cst_61 [1] : vector<9x32xf32> to vector<9xf32>
    %165 = vector.shape_cast %164 : vector<9xf32> to vector<9x1xf32>
    %cst_62 = arith.constant 3.200000e+01 : f32
    %166 = vector.broadcast %cst_62 : f32 to vector<9x1xf32>
    %167 = arith.divf %165, %166 : vector<9x1xf32>
    %168 = vector.broadcast %160 : vector<9x1xf32> to vector<9x32xf32>
    %169 = arith.subf %145, %168 : vector<9x32xf32>
    %cst_63 = arith.constant 9.99999974E-6 : f32
    %170 = vector.broadcast %cst_63 : f32 to vector<9x1xf32>
    %171 = arith.addf %167, %170 : vector<9x1xf32>
    %172 = math.rsqrt %171 : vector<9x1xf32>
    %173 = vector.broadcast %172 : vector<9x1xf32> to vector<9x32xf32>
    %174 = arith.mulf %169, %173 : vector<9x32xf32>
    %175 = vector.broadcast %146 : vector<1x32xf32> to vector<9x32xf32>
    %176 = arith.mulf %174, %175 : vector<9x32xf32>
    %177 = vector.broadcast %147 : vector<1x32xf32> to vector<9x32xf32>
    %178 = arith.addf %176, %177 : vector<9x32xf32>
    %cst_64 = arith.constant dense<0.000000e+00> : vector<9x96xf32>
    %179 = tpu.matmul %178, %148, %cst_64 {dimension_numbers = #tpu.dot_dimension_numbers<[1], [0], [0], [1], [0, 0, 1, 1], [], []>} : vector<9x32xf32>, vector<32x96xf32>, vector<9x96xf32> -> vector<9x96xf32>
    %180 = vector.extract_strided_slice %179 {offsets = [0, 0], sizes = [9, 8], strides = [1, 1]} : vector<9x96xf32> to vector<9x8xf32>
    %181 = vector.extract_strided_slice %179 {offsets = [0, 8], sizes = [9, 8], strides = [1, 1]} : vector<9x96xf32> to vector<9x8xf32>
    %182 = vector.extract_strided_slice %179 {offsets = [0, 16], sizes = [9, 8], strides = [1, 1]} : vector<9x96xf32> to vector<9x8xf32>
    %183 = vector.extract_strided_slice %179 {offsets = [0, 24], sizes = [9, 8], strides = [1, 1]} : vector<9x96xf32> to vector<9x8xf32>
    %184 = vector.shape_cast %180 : vector<9x8xf32> to vector<1x9x8xf32>
    %185 = vector.shape_cast %181 : vector<9x8xf32> to vector<1x9x8xf32>
    %186 = vector.shape_cast %182 : vector<9x8xf32> to vector<1x9x8xf32>
    %187 = vector.shape_cast %183 : vector<9x8xf32> to vector<1x9x8xf32>
    %188 = tpu.concatenate %184, %185, %186, %187 in 0 : vector<1x9x8xf32>, vector<1x9x8xf32>, vector<1x9x8xf32>, vector<1x9x8xf32> -> vector<4x9x8xf32>
    %189 = vector.extract_strided_slice %179 {offsets = [0, 32], sizes = [9, 8], strides = [1, 1]} : vector<9x96xf32> to vector<9x8xf32>
    %190 = vector.extract_strided_slice %179 {offsets = [0, 40], sizes = [9, 8], strides = [1, 1]} : vector<9x96xf32> to vector<9x8xf32>
    %191 = vector.extract_strided_slice %179 {offsets = [0, 48], sizes = [9, 8], strides = [1, 1]} : vector<9x96xf32> to vector<9x8xf32>
    %192 = vector.extract_strided_slice %179 {offsets = [0, 56], sizes = [9, 8], strides = [1, 1]} : vector<9x96xf32> to vector<9x8xf32>
    %193 = vector.shape_cast %189 : vector<9x8xf32> to vector<1x9x8xf32>
    %194 = vector.shape_cast %190 : vector<9x8xf32> to vector<1x9x8xf32>
    %195 = vector.shape_cast %191 : vector<9x8xf32> to vector<1x9x8xf32>
    %196 = vector.shape_cast %192 : vector<9x8xf32> to vector<1x9x8xf32>
    %197 = tpu.concatenate %193, %194, %195, %196 in 0 : vector<1x9x8xf32>, vector<1x9x8xf32>, vector<1x9x8xf32>, vector<1x9x8xf32> -> vector<4x9x8xf32>
    %198 = vector.extract_strided_slice %179 {offsets = [0, 64], sizes = [9, 8], strides = [1, 1]} : vector<9x96xf32> to vector<9x8xf32>
    %199 = vector.extract_strided_slice %179 {offsets = [0, 72], sizes = [9, 8], strides = [1, 1]} : vector<9x96xf32> to vector<9x8xf32>
    %200 = vector.extract_strided_slice %179 {offsets = [0, 80], sizes = [9, 8], strides = [1, 1]} : vector<9x96xf32> to vector<9x8xf32>
    %201 = vector.extract_strided_slice %179 {offsets = [0, 88], sizes = [9, 8], strides = [1, 1]} : vector<9x96xf32> to vector<9x8xf32>
    %202 = vector.shape_cast %198 : vector<9x8xf32> to vector<1x9x8xf32>
    %203 = vector.shape_cast %199 : vector<9x8xf32> to vector<1x9x8xf32>
    %204 = vector.shape_cast %200 : vector<9x8xf32> to vector<1x9x8xf32>
    %205 = vector.shape_cast %201 : vector<9x8xf32> to vector<1x9x8xf32>
    %206 = tpu.concatenate %202, %203, %204, %205 in 0 : vector<1x9x8xf32>, vector<1x9x8xf32>, vector<1x9x8xf32>, vector<1x9x8xf32> -> vector<4x9x8xf32>
    "tpu.trace_start"() <{level = 10 : i32, message = "hqd,hkd->hqk"}> : () -> ()
    %cst_65 = arith.constant dense<0.000000e+00> : vector<4x9x9xf32>
    %207 = tpu.matmul %188, %197, %cst_65 {dimension_numbers = #tpu.dot_dimension_numbers<[2], [2], [1], [1], [0, 0, 0, 1, 1, 1], [0], [0]>} : vector<4x9x8xf32>, vector<4x9x8xf32>, vector<4x9x9xf32> -> vector<4x9x9xf32>
    "tpu.trace_stop"() : () -> ()
    %cst_66 = arith.constant 0.353553385 : f32
    %208 = vector.broadcast %cst_66 : f32 to vector<4x9x9xf32>
    %209 = arith.mulf %207, %208 : vector<4x9x9xf32>
    %cst_67 = arith.constant dense<0xFF800000> : vector<4x9xf32>
    %210 = vector.multi_reduction <maximumf>, %209, %cst_67 [2] : vector<4x9x9xf32> to vector<4x9xf32>
    %211 = vector.shape_cast %210 : vector<4x9xf32> to vector<4x9x1xf32>
    %212 = vector.broadcast %211 : vector<4x9x1xf32> to vector<4x9x9xf32>
    %213 = arith.subf %209, %212 : vector<4x9x9xf32>
    %214 = math.exp %213 : vector<4x9x9xf32>
    %cst_68 = arith.constant dense<0.000000e+00> : vector<4x9xf32>
    %215 = vector.multi_reduction <add>, %214, %cst_68 [2] : vector<4x9x9xf32> to vector<4x9xf32>
    %216 = vector.shape_cast %215 : vector<4x9xf32> to vector<4x9x1xf32>
    %217 = vector.broadcast %216 : vector<4x9x1xf32> to vector<4x9x9xf32>
    %218 = arith.divf %214, %217 : vector<4x9x9xf32>
    "tpu.trace_start"() <{level = 10 : i32, message = "hqk,hkd->hqd"}> : () -> ()
    %cst_69 = arith.constant dense<0.000000e+00> : vector<4x9x8xf32>
    %219 = tpu.matmul %218, %206, %cst_69 {dimension_numbers = #tpu.dot_dimension_numbers<[2], [1], [1], [2], [0, 0, 0, 1, 1, 2], [0], [0]>} : vector<4x9x9xf32>, vector<4x9x8xf32>, vector<4x9x8xf32> -> vector<4x9x8xf32>
    "tpu.trace_stop"() : () -> ()
    %220 = vector.extract_strided_slice %219 {offsets = [0, 0, 0], sizes = [1, 9, 8], strides = [1, 1, 1]} : vector<4x9x8xf32> to vector<1x9x8xf32>
    %221 = vector.shape_cast %220 : vector<1x9x8xf32> to vector<9x8xf32>
    %222 = vector.extract_strided_slice %149 {offsets = [0, 0], sizes = [8, 32], strides = [1, 1]} : vector<32x32xf32> to vector<8x32xf32>
    %cst_70 = arith.constant dense<0.000000e+00> : vector<9x32xf32>
    %223 = tpu.matmul %221, %222, %cst_70 {dimension_numbers = #tpu.dot_dimension_numbers<[1], [0], [0], [1], [0, 0, 1, 1], [], []>} : vector<9x8xf32>, vector<8x32xf32>, vector<9x32xf32> -> vector<9x32xf32>
    %224 = vector.extract_strided_slice %219 {offsets = [1, 0, 0], sizes = [1, 9, 8], strides = [1, 1, 1]} : vector<4x9x8xf32> to vector<1x9x8xf32>
    %225 = vector.shape_cast %224 : vector<1x9x8xf32> to vector<9x8xf32>
    %226 = vector.extract_strided_slice %149 {offsets = [8, 0], sizes = [8, 32], strides = [1, 1]} : vector<32x32xf32> to vector<8x32xf32>
    %cst_71 = arith.constant dense<0.000000e+00> : vector<9x32xf32>
    %227 = tpu.matmul %225, %226, %cst_71 {dimension_numbers = #tpu.dot_dimension_numbers<[1], [0], [0], [1], [0, 0, 1, 1], [], []>} : vector<9x8xf32>, vector<8x32xf32>, vector<9x32xf32> -> vector<9x32xf32>
    %228 = arith.addf %223, %227 : vector<9x32xf32>
    %229 = vector.extract_strided_slice %219 {offsets = [2, 0, 0], sizes = [1, 9, 8], strides = [1, 1, 1]} : vector<4x9x8xf32> to vector<1x9x8xf32>
    %230 = vector.shape_cast %229 : vector<1x9x8xf32> to vector<9x8xf32>
    %231 = vector.extract_strided_slice %149 {offsets = [16, 0], sizes = [8, 32], strides = [1, 1]} : vector<32x32xf32> to vector<8x32xf32>
    %cst_72 = arith.constant dense<0.000000e+00> : vector<9x32xf32>
    %232 = tpu.matmul %230, %231, %cst_72 {dimension_numbers = #tpu.dot_dimension_numbers<[1], [0], [0], [1], [0, 0, 1, 1], [], []>} : vector<9x8xf32>, vector<8x32xf32>, vector<9x32xf32> -> vector<9x32xf32>
    %233 = arith.addf %228, %232 : vector<9x32xf32>
    %234 = vector.extract_strided_slice %219 {offsets = [3, 0, 0], sizes = [1, 9, 8], strides = [1, 1, 1]} : vector<4x9x8xf32> to vector<1x9x8xf32>
    %235 = vector.shape_cast %234 : vector<1x9x8xf32> to vector<9x8xf32>
    %236 = vector.extract_strided_slice %149 {offsets = [24, 0], sizes = [8, 32], strides = [1, 1]} : vector<32x32xf32> to vector<8x32xf32>
    %cst_73 = arith.constant dense<0.000000e+00> : vector<9x32xf32>
    %237 = tpu.matmul %235, %236, %cst_73 {dimension_numbers = #tpu.dot_dimension_numbers<[1], [0], [0], [1], [0, 0, 1, 1], [], []>} : vector<9x8xf32>, vector<8x32xf32>, vector<9x32xf32> -> vector<9x32xf32>
    %238 = arith.addf %233, %237 : vector<9x32xf32>
    %239 = arith.addf %145, %238 : vector<9x32xf32>
    %240 = vector.broadcast %150 : vector<1x32xf32> to vector<9x32xf32>
    %241 = arith.addf %239, %240 : vector<9x32xf32>
    %cst_74 = arith.constant dense<0.000000e+00> : vector<9xf32>
    %242 = vector.multi_reduction <add>, %241, %cst_74 [1] : vector<9x32xf32> to vector<9xf32>
    %243 = vector.shape_cast %242 : vector<9xf32> to vector<9x1xf32>
    %cst_75 = arith.constant 3.200000e+01 : f32
    %244 = vector.broadcast %cst_75 : f32 to vector<9x1xf32>
    %245 = arith.divf %243, %244 : vector<9x1xf32>
    %246 = vector.broadcast %245 : vector<9x1xf32> to vector<9x32xf32>
    %247 = arith.subf %241, %246 : vector<9x32xf32>
    %248 = arith.mulf %247, %247 : vector<9x32xf32>
    %cst_76 = arith.constant dense<0.000000e+00> : vector<9xf32>
    %249 = vector.multi_reduction <add>, %248, %cst_76 [1] : vector<9x32xf32> to vector<9xf32>
    %250 = vector.shape_cast %249 : vector<9xf32> to vector<9x1xf32>
    %cst_77 = arith.constant 3.200000e+01 : f32
    %251 = vector.broadcast %cst_77 : f32 to vector<9x1xf32>
    %252 = arith.divf %250, %251 : vector<9x1xf32>
    %253 = vector.broadcast %245 : vector<9x1xf32> to vector<9x32xf32>
    %254 = arith.subf %241, %253 : vector<9x32xf32>
    %cst_78 = arith.constant 9.99999974E-6 : f32
    %255 = vector.broadcast %cst_78 : f32 to vector<9x1xf32>
    %256 = arith.addf %252, %255 : vector<9x1xf32>
    %257 = math.rsqrt %256 : vector<9x1xf32>
    %258 = vector.broadcast %257 : vector<9x1xf32> to vector<9x32xf32>
    %259 = arith.mulf %254, %258 : vector<9x32xf32>
    %260 = vector.broadcast %151 : vector<1x32xf32> to vector<9x32xf32>
    %261 = arith.mulf %259, %260 : vector<9x32xf32>
    %262 = vector.broadcast %152 : vector<1x32xf32> to vector<9x32xf32>
    %263 = arith.addf %261, %262 : vector<9x32xf32>
    %cst_79 = arith.constant dense<0.000000e+00> : vector<9x64xf32>
    %264 = tpu.matmul %263, %153, %cst_79 {dimension_numbers = #tpu.dot_dimension_numbers<[1], [0], [0], [1], [0, 0, 1, 1], [], []>} : vector<9x32xf32>, vector<32x64xf32>, vector<9x64xf32> -> vector<9x64xf32>
    %265 = vector.broadcast %154 : vector<1x64xf32> to vector<9x64xf32>
    %266 = arith.addf %264, %265 : vector<9x64xf32>
    %cst_80 = arith.constant 5.000000e-01 : f32
    %267 = vector.broadcast %cst_80 : f32 to vector<9x64xf32>
    %268 = arith.mulf %267, %266 : vector<9x64xf32>
    %cst_81 = arith.constant 0.707106769 : f32
    %269 = vector.broadcast %cst_81 : f32 to vector<9x64xf32>
    %270 = arith.mulf %266, %269 : vector<9x64xf32>
    %271 = math.erf %270 : vector<9x64xf32>
    %cst_82 = arith.constant 1.000000e+00 : f32
    %272 = vector.broadcast %cst_82 : f32 to vector<9x64xf32>
    %273 = arith.addf %272, %271 : vector<9x64xf32>
    %274 = arith.mulf %268, %273 : vector<9x64xf32>
    %cst_83 = arith.constant dense<0.000000e+00> : vector<9x32xf32>
    %275 = tpu.matmul %274, %155, %cst_83 {dimension_numbers = #tpu.dot_dimension_numbers<[1], [0], [0], [1], [0, 0, 1, 1], [], []>} : vector<9x64xf32>, vector<64x32xf32>, vector<9x32xf32> -> vector<9x32xf32>
    %276 = vector.broadcast %156 : vector<1x32xf32> to vector<9x32xf32>
    %277 = arith.addf %275, %276 : vector<9x32xf32>
    %278 = arith.addf %241, %277 : vector<9x32xf32>
    %c480 = arith.constant 480 : index
    %c0_84 = arith.constant 0 : index
    %279 = vector.load %arg2[%c480, %c0_84] : memref<992x128xf32, #tpu.memory_space<vmem>>, vector<1x32xf32>
    %c488 = arith.constant 488 : index
    %c0_85 = arith.constant 0 : index
    %280 = vector.load %arg2[%c488, %c0_85] : memref<992x128xf32, #tpu.memory_space<vmem>>, vector<1x32xf32>
    %cst_86 = arith.constant dense<0.000000e+00> : vector<9xf32>
    %281 = vector.multi_reduction <add>, %278, %cst_86 [1] : vector<9x32xf32> to vector<9xf32>
    %282 = vector.shape_cast %281 : vector<9xf32> to vector<9x1xf32>
    %cst_87 = arith.constant 3.200000e+01 : f32
    %283 = vector.broadcast %cst_87 : f32 to vector<9x1xf32>
    %284 = arith.divf %282, %283 : vector<9x1xf32>
    %285 = vector.broadcast %284 : vector<9x1xf32> to vector<9x32xf32>
    %286 = arith.subf %278, %285 : vector<9x32xf32>
    %287 = arith.mulf %286, %286 : vector<9x32xf32>
    %cst_88 = arith.constant dense<0.000000e+00> : vector<9xf32>
    %288 = vector.multi_reduction <add>, %287, %cst_88 [1] : vector<9x32xf32> to vector<9xf32>
    %289 = vector.shape_cast %288 : vector<9xf32> to vector<9x1xf32>
    %cst_89 = arith.constant 3.200000e+01 : f32
    %290 = vector.broadcast %cst_89 : f32 to vector<9x1xf32>
    %291 = arith.divf %289, %290 : vector<9x1xf32>
    %292 = vector.broadcast %284 : vector<9x1xf32> to vector<9x32xf32>
    %293 = arith.subf %278, %292 : vector<9x32xf32>
    %cst_90 = arith.constant 9.99999974E-6 : f32
    %294 = vector.broadcast %cst_90 : f32 to vector<9x1xf32>
    %295 = arith.addf %291, %294 : vector<9x1xf32>
    %296 = math.rsqrt %295 : vector<9x1xf32>
    %297 = vector.broadcast %296 : vector<9x1xf32> to vector<9x32xf32>
    %298 = arith.mulf %293, %297 : vector<9x32xf32>
    %299 = vector.broadcast %279 : vector<1x32xf32> to vector<9x32xf32>
    %300 = arith.mulf %298, %299 : vector<9x32xf32>
    %301 = vector.broadcast %280 : vector<1x32xf32> to vector<9x32xf32>
    %302 = arith.addf %300, %301 : vector<9x32xf32>
    %c496 = arith.constant 496 : index
    %c0_91 = arith.constant 0 : index
    %303 = vector.load %arg2[%c496, %c0_91] : memref<992x128xf32, #tpu.memory_space<vmem>>, vector<4x32xf32>
    %304 = tpu.iota {dimensions = array<i32: 0>} : vector<4x4xi32>
    %305 = tpu.iota {dimensions = array<i32: 1>} : vector<4x4xi32>
    %306 = arith.cmpi sle, %305, %304 : vector<4x4xi32>
    %cst_92 = arith.constant 0.000000e+00 : f32
    %cst_93 = arith.constant -1.000000e+30 : f32
    %307 = vector.broadcast %cst_92 : f32 to vector<4x4xf32>
    %308 = vector.broadcast %cst_93 : f32 to vector<4x4xf32>
    %309 = arith.select %306, %307, %308 : vector<4x4xi1>, vector<4x4xf32>
    %c504 = arith.constant 504 : index
    %c0_94 = arith.constant 0 : index
    %310 = vector.load %arg2[%c504, %c0_94] : memref<992x128xf32, #tpu.memory_space<vmem>>, vector<32x96xf32>
    %c536 = arith.constant 536 : index
    %c0_95 = arith.constant 0 : index
    %311 = vector.load %arg2[%c536, %c0_95] : memref<992x128xf32, #tpu.memory_space<vmem>>, vector<1x96xf32>
    %c544 = arith.constant 544 : index
    %c0_96 = arith.constant 0 : index
    %312 = vector.load %arg2[%c544, %c0_96] : memref<992x128xf32, #tpu.memory_space<vmem>>, vector<32x32xf32>
    %c576 = arith.constant 576 : index
    %c0_97 = arith.constant 0 : index
    %313 = vector.load %arg2[%c576, %c0_97] : memref<992x128xf32, #tpu.memory_space<vmem>>, vector<1x32xf32>
    %c584 = arith.constant 584 : index
    %c0_98 = arith.constant 0 : index
    %314 = vector.load %arg2[%c584, %c0_98] : memref<992x128xf32, #tpu.memory_space<vmem>>, vector<1x32xf32>
    %c592 = arith.constant 592 : index
    %c0_99 = arith.constant 0 : index
    %315 = vector.load %arg2[%c592, %c0_99] : memref<992x128xf32, #tpu.memory_space<vmem>>, vector<1x32xf32>
    %c600 = arith.constant 600 : index
    %c0_100 = arith.constant 0 : index
    %316 = vector.load %arg2[%c600, %c0_100] : memref<992x128xf32, #tpu.memory_space<vmem>>, vector<32x32xf32>
    %c632 = arith.constant 632 : index
    %c0_101 = arith.constant 0 : index
    %317 = vector.load %arg2[%c632, %c0_101] : memref<992x128xf32, #tpu.memory_space<vmem>>, vector<1x32xf32>
    %c640 = arith.constant 640 : index
    %c0_102 = arith.constant 0 : index
    %318 = vector.load %arg2[%c640, %c0_102] : memref<992x128xf32, #tpu.memory_space<vmem>>, vector<32x64xf32>
    %c672 = arith.constant 672 : index
    %c0_103 = arith.constant 0 : index
    %319 = vector.load %arg2[%c672, %c0_103] : memref<992x128xf32, #tpu.memory_space<vmem>>, vector<1x64xf32>
    %c680 = arith.constant 680 : index
    %c0_104 = arith.constant 0 : index
    %320 = vector.load %arg2[%c680, %c0_104] : memref<992x128xf32, #tpu.memory_space<vmem>>, vector<32x32xf32>
    %c712 = arith.constant 712 : index
    %c0_105 = arith.constant 0 : index
    %321 = vector.load %arg2[%c712, %c0_105] : memref<992x128xf32, #tpu.memory_space<vmem>>, vector<1x32xf32>
    %c720 = arith.constant 720 : index
    %c0_106 = arith.constant 0 : index
    %322 = vector.load %arg2[%c720, %c0_106] : memref<992x128xf32, #tpu.memory_space<vmem>>, vector<1x32xf32>
    %c728 = arith.constant 728 : index
    %c0_107 = arith.constant 0 : index
    %323 = vector.load %arg2[%c728, %c0_107] : memref<992x128xf32, #tpu.memory_space<vmem>>, vector<1x32xf32>
    %c736 = arith.constant 736 : index
    %c0_108 = arith.constant 0 : index
    %324 = vector.load %arg2[%c736, %c0_108] : memref<992x128xf32, #tpu.memory_space<vmem>>, vector<32x64xf32>
    %c768 = arith.constant 768 : index
    %c0_109 = arith.constant 0 : index
    %325 = vector.load %arg2[%c768, %c0_109] : memref<992x128xf32, #tpu.memory_space<vmem>>, vector<1x64xf32>
    %c776 = arith.constant 776 : index
    %c0_110 = arith.constant 0 : index
    %326 = vector.load %arg2[%c776, %c0_110] : memref<992x128xf32, #tpu.memory_space<vmem>>, vector<64x32xf32>
    %c840 = arith.constant 840 : index
    %c0_111 = arith.constant 0 : index
    %327 = vector.load %arg2[%c840, %c0_111] : memref<992x128xf32, #tpu.memory_space<vmem>>, vector<1x32xf32>
    %c848 = arith.constant 848 : index
    %c0_112 = arith.constant 0 : index
    %328 = vector.load %arg2[%c848, %c0_112] : memref<992x128xf32, #tpu.memory_space<vmem>>, vector<1x32xf32>
    %c856 = arith.constant 856 : index
    %c0_113 = arith.constant 0 : index
    %329 = vector.load %arg2[%c856, %c0_113] : memref<992x128xf32, #tpu.memory_space<vmem>>, vector<1x32xf32>
    %cst_114 = arith.constant dense<0.000000e+00> : vector<4x96xf32>
    %330 = tpu.matmul %303, %310, %cst_114 {dimension_numbers = #tpu.dot_dimension_numbers<[1], [0], [0], [1], [0, 0, 1, 1], [], []>} : vector<4x32xf32>, vector<32x96xf32>, vector<4x96xf32> -> vector<4x96xf32>
    %331 = vector.broadcast %311 : vector<1x96xf32> to vector<4x96xf32>
    %332 = arith.addf %330, %331 : vector<4x96xf32>
    %333 = vector.extract_strided_slice %332 {offsets = [0, 0], sizes = [4, 8], strides = [1, 1]} : vector<4x96xf32> to vector<4x8xf32>
    %334 = vector.extract_strided_slice %332 {offsets = [0, 8], sizes = [4, 8], strides = [1, 1]} : vector<4x96xf32> to vector<4x8xf32>
    %335 = vector.extract_strided_slice %332 {offsets = [0, 16], sizes = [4, 8], strides = [1, 1]} : vector<4x96xf32> to vector<4x8xf32>
    %336 = vector.extract_strided_slice %332 {offsets = [0, 24], sizes = [4, 8], strides = [1, 1]} : vector<4x96xf32> to vector<4x8xf32>
    %337 = vector.shape_cast %333 : vector<4x8xf32> to vector<1x4x8xf32>
    %338 = vector.shape_cast %334 : vector<4x8xf32> to vector<1x4x8xf32>
    %339 = vector.shape_cast %335 : vector<4x8xf32> to vector<1x4x8xf32>
    %340 = vector.shape_cast %336 : vector<4x8xf32> to vector<1x4x8xf32>
    %341 = tpu.concatenate %337, %338, %339, %340 in 0 : vector<1x4x8xf32>, vector<1x4x8xf32>, vector<1x4x8xf32>, vector<1x4x8xf32> -> vector<4x4x8xf32>
    %342 = vector.extract_strided_slice %332 {offsets = [0, 32], sizes = [4, 8], strides = [1, 1]} : vector<4x96xf32> to vector<4x8xf32>
    %343 = vector.extract_strided_slice %332 {offsets = [0, 40], sizes = [4, 8], strides = [1, 1]} : vector<4x96xf32> to vector<4x8xf32>
    %344 = vector.extract_strided_slice %332 {offsets = [0, 48], sizes = [4, 8], strides = [1, 1]} : vector<4x96xf32> to vector<4x8xf32>
    %345 = vector.extract_strided_slice %332 {offsets = [0, 56], sizes = [4, 8], strides = [1, 1]} : vector<4x96xf32> to vector<4x8xf32>
    %346 = vector.shape_cast %342 : vector<4x8xf32> to vector<1x4x8xf32>
    %347 = vector.shape_cast %343 : vector<4x8xf32> to vector<1x4x8xf32>
    %348 = vector.shape_cast %344 : vector<4x8xf32> to vector<1x4x8xf32>
    %349 = vector.shape_cast %345 : vector<4x8xf32> to vector<1x4x8xf32>
    %350 = tpu.concatenate %346, %347, %348, %349 in 0 : vector<1x4x8xf32>, vector<1x4x8xf32>, vector<1x4x8xf32>, vector<1x4x8xf32> -> vector<4x4x8xf32>
    %351 = vector.extract_strided_slice %332 {offsets = [0, 64], sizes = [4, 8], strides = [1, 1]} : vector<4x96xf32> to vector<4x8xf32>
    %352 = vector.extract_strided_slice %332 {offsets = [0, 72], sizes = [4, 8], strides = [1, 1]} : vector<4x96xf32> to vector<4x8xf32>
    %353 = vector.extract_strided_slice %332 {offsets = [0, 80], sizes = [4, 8], strides = [1, 1]} : vector<4x96xf32> to vector<4x8xf32>
    %354 = vector.extract_strided_slice %332 {offsets = [0, 88], sizes = [4, 8], strides = [1, 1]} : vector<4x96xf32> to vector<4x8xf32>
    %355 = vector.shape_cast %351 : vector<4x8xf32> to vector<1x4x8xf32>
    %356 = vector.shape_cast %352 : vector<4x8xf32> to vector<1x4x8xf32>
    %357 = vector.shape_cast %353 : vector<4x8xf32> to vector<1x4x8xf32>
    %358 = vector.shape_cast %354 : vector<4x8xf32> to vector<1x4x8xf32>
    %359 = tpu.concatenate %355, %356, %357, %358 in 0 : vector<1x4x8xf32>, vector<1x4x8xf32>, vector<1x4x8xf32>, vector<1x4x8xf32> -> vector<4x4x8xf32>
    "tpu.trace_start"() <{level = 10 : i32, message = "hqd,hkd->hqk"}> : () -> ()
    %cst_115 = arith.constant dense<0.000000e+00> : vector<4x4x4xf32>
    %360 = tpu.matmul %341, %350, %cst_115 {dimension_numbers = #tpu.dot_dimension_numbers<[2], [2], [1], [1], [0, 0, 0, 1, 1, 1], [0], [0]>} : vector<4x4x8xf32>, vector<4x4x8xf32>, vector<4x4x4xf32> -> vector<4x4x4xf32>
    "tpu.trace_stop"() : () -> ()
    %cst_116 = arith.constant 0.353553385 : f32
    %361 = vector.broadcast %cst_116 : f32 to vector<4x4x4xf32>
    %362 = arith.mulf %360, %361 : vector<4x4x4xf32>
    %363 = vector.shape_cast %309 : vector<4x4xf32> to vector<1x4x4xf32>
    %364 = vector.broadcast %363 : vector<1x4x4xf32> to vector<4x4x4xf32>
    %365 = arith.addf %362, %364 : vector<4x4x4xf32>
    %cst_117 = arith.constant dense<0xFF800000> : vector<4x4xf32>
    %366 = vector.multi_reduction <maximumf>, %365, %cst_117 [2] : vector<4x4x4xf32> to vector<4x4xf32>
    %367 = vector.shape_cast %366 : vector<4x4xf32> to vector<4x4x1xf32>
    %368 = vector.broadcast %367 : vector<4x4x1xf32> to vector<4x4x4xf32>
    %369 = arith.subf %365, %368 : vector<4x4x4xf32>
    %370 = math.exp %369 : vector<4x4x4xf32>
    %cst_118 = arith.constant dense<0.000000e+00> : vector<4x4xf32>
    %371 = vector.multi_reduction <add>, %370, %cst_118 [2] : vector<4x4x4xf32> to vector<4x4xf32>
    %372 = vector.shape_cast %371 : vector<4x4xf32> to vector<4x4x1xf32>
    %373 = vector.broadcast %372 : vector<4x4x1xf32> to vector<4x4x4xf32>
    %374 = arith.divf %370, %373 : vector<4x4x4xf32>
    "tpu.trace_start"() <{level = 10 : i32, message = "hqk,hkd->hqd"}> : () -> ()
    %cst_119 = arith.constant dense<0.000000e+00> : vector<4x4x8xf32>
    %375 = tpu.matmul %374, %359, %cst_119 {dimension_numbers = #tpu.dot_dimension_numbers<[2], [1], [1], [2], [0, 0, 0, 1, 1, 2], [0], [0]>} : vector<4x4x4xf32>, vector<4x4x8xf32>, vector<4x4x8xf32> -> vector<4x4x8xf32>
    "tpu.trace_stop"() : () -> ()
    %376 = vector.extract_strided_slice %375 {offsets = [0, 0, 0], sizes = [1, 4, 8], strides = [1, 1, 1]} : vector<4x4x8xf32> to vector<1x4x8xf32>
    %377 = vector.shape_cast %376 : vector<1x4x8xf32> to vector<4x8xf32>
    %378 = vector.extract_strided_slice %312 {offsets = [0, 0], sizes = [8, 32], strides = [1, 1]} : vector<32x32xf32> to vector<8x32xf32>
    %cst_120 = arith.constant dense<0.000000e+00> : vector<4x32xf32>
    %379 = tpu.matmul %377, %378, %cst_120 {dimension_numbers = #tpu.dot_dimension_numbers<[1], [0], [0], [1], [0, 0, 1, 1], [], []>} : vector<4x8xf32>, vector<8x32xf32>, vector<4x32xf32> -> vector<4x32xf32>
    %380 = vector.extract_strided_slice %375 {offsets = [1, 0, 0], sizes = [1, 4, 8], strides = [1, 1, 1]} : vector<4x4x8xf32> to vector<1x4x8xf32>
    %381 = vector.shape_cast %380 : vector<1x4x8xf32> to vector<4x8xf32>
    %382 = vector.extract_strided_slice %312 {offsets = [8, 0], sizes = [8, 32], strides = [1, 1]} : vector<32x32xf32> to vector<8x32xf32>
    %cst_121 = arith.constant dense<0.000000e+00> : vector<4x32xf32>
    %383 = tpu.matmul %381, %382, %cst_121 {dimension_numbers = #tpu.dot_dimension_numbers<[1], [0], [0], [1], [0, 0, 1, 1], [], []>} : vector<4x8xf32>, vector<8x32xf32>, vector<4x32xf32> -> vector<4x32xf32>
    %384 = arith.addf %379, %383 : vector<4x32xf32>
    %385 = vector.extract_strided_slice %375 {offsets = [2, 0, 0], sizes = [1, 4, 8], strides = [1, 1, 1]} : vector<4x4x8xf32> to vector<1x4x8xf32>
    %386 = vector.shape_cast %385 : vector<1x4x8xf32> to vector<4x8xf32>
    %387 = vector.extract_strided_slice %312 {offsets = [16, 0], sizes = [8, 32], strides = [1, 1]} : vector<32x32xf32> to vector<8x32xf32>
    %cst_122 = arith.constant dense<0.000000e+00> : vector<4x32xf32>
    %388 = tpu.matmul %386, %387, %cst_122 {dimension_numbers = #tpu.dot_dimension_numbers<[1], [0], [0], [1], [0, 0, 1, 1], [], []>} : vector<4x8xf32>, vector<8x32xf32>, vector<4x32xf32> -> vector<4x32xf32>
    %389 = arith.addf %384, %388 : vector<4x32xf32>
    %390 = vector.extract_strided_slice %375 {offsets = [3, 0, 0], sizes = [1, 4, 8], strides = [1, 1, 1]} : vector<4x4x8xf32> to vector<1x4x8xf32>
    %391 = vector.shape_cast %390 : vector<1x4x8xf32> to vector<4x8xf32>
    %392 = vector.extract_strided_slice %312 {offsets = [24, 0], sizes = [8, 32], strides = [1, 1]} : vector<32x32xf32> to vector<8x32xf32>
    %cst_123 = arith.constant dense<0.000000e+00> : vector<4x32xf32>
    %393 = tpu.matmul %391, %392, %cst_123 {dimension_numbers = #tpu.dot_dimension_numbers<[1], [0], [0], [1], [0, 0, 1, 1], [], []>} : vector<4x8xf32>, vector<8x32xf32>, vector<4x32xf32> -> vector<4x32xf32>
    %394 = arith.addf %389, %393 : vector<4x32xf32>
    %395 = arith.addf %303, %394 : vector<4x32xf32>
    %396 = vector.broadcast %313 : vector<1x32xf32> to vector<4x32xf32>
    %397 = arith.addf %395, %396 : vector<4x32xf32>
    %cst_124 = arith.constant dense<0.000000e+00> : vector<4xf32>
    %398 = vector.multi_reduction <add>, %397, %cst_124 [1] : vector<4x32xf32> to vector<4xf32>
    %399 = vector.shape_cast %398 : vector<4xf32> to vector<4x1xf32>
    %cst_125 = arith.constant 3.200000e+01 : f32
    %400 = vector.broadcast %cst_125 : f32 to vector<4x1xf32>
    %401 = arith.divf %399, %400 : vector<4x1xf32>
    %402 = vector.broadcast %401 : vector<4x1xf32> to vector<4x32xf32>
    %403 = arith.subf %397, %402 : vector<4x32xf32>
    %404 = arith.mulf %403, %403 : vector<4x32xf32>
    %cst_126 = arith.constant dense<0.000000e+00> : vector<4xf32>
    %405 = vector.multi_reduction <add>, %404, %cst_126 [1] : vector<4x32xf32> to vector<4xf32>
    %406 = vector.shape_cast %405 : vector<4xf32> to vector<4x1xf32>
    %cst_127 = arith.constant 3.200000e+01 : f32
    %407 = vector.broadcast %cst_127 : f32 to vector<4x1xf32>
    %408 = arith.divf %406, %407 : vector<4x1xf32>
    %409 = vector.broadcast %401 : vector<4x1xf32> to vector<4x32xf32>
    %410 = arith.subf %397, %409 : vector<4x32xf32>
    %cst_128 = arith.constant 9.99999974E-6 : f32
    %411 = vector.broadcast %cst_128 : f32 to vector<4x1xf32>
    %412 = arith.addf %408, %411 : vector<4x1xf32>
    %413 = math.rsqrt %412 : vector<4x1xf32>
    %414 = vector.broadcast %413 : vector<4x1xf32> to vector<4x32xf32>
    %415 = arith.mulf %410, %414 : vector<4x32xf32>
    %416 = vector.broadcast %314 : vector<1x32xf32> to vector<4x32xf32>
    %417 = arith.mulf %415, %416 : vector<4x32xf32>
    %418 = vector.broadcast %315 : vector<1x32xf32> to vector<4x32xf32>
    %419 = arith.addf %417, %418 : vector<4x32xf32>
    %cst_129 = arith.constant dense<0.000000e+00> : vector<4x32xf32>
    %420 = tpu.matmul %419, %316, %cst_129 {dimension_numbers = #tpu.dot_dimension_numbers<[1], [0], [0], [1], [0, 0, 1, 1], [], []>} : vector<4x32xf32>, vector<32x32xf32>, vector<4x32xf32> -> vector<4x32xf32>
    %421 = vector.broadcast %317 : vector<1x32xf32> to vector<4x32xf32>
    %422 = arith.addf %420, %421 : vector<4x32xf32>
    %cst_130 = arith.constant dense<0.000000e+00> : vector<9x64xf32>
    %423 = tpu.matmul %302, %318, %cst_130 {dimension_numbers = #tpu.dot_dimension_numbers<[1], [0], [0], [1], [0, 0, 1, 1], [], []>} : vector<9x32xf32>, vector<32x64xf32>, vector<9x64xf32> -> vector<9x64xf32>
    %424 = vector.broadcast %319 : vector<1x64xf32> to vector<9x64xf32>
    %425 = arith.addf %423, %424 : vector<9x64xf32>
    %426 = vector.extract_strided_slice %422 {offsets = [0, 0], sizes = [4, 8], strides = [1, 1]} : vector<4x32xf32> to vector<4x8xf32>
    %427 = vector.extract_strided_slice %422 {offsets = [0, 8], sizes = [4, 8], strides = [1, 1]} : vector<4x32xf32> to vector<4x8xf32>
    %428 = vector.extract_strided_slice %422 {offsets = [0, 16], sizes = [4, 8], strides = [1, 1]} : vector<4x32xf32> to vector<4x8xf32>
    %429 = vector.extract_strided_slice %422 {offsets = [0, 24], sizes = [4, 8], strides = [1, 1]} : vector<4x32xf32> to vector<4x8xf32>
    %430 = vector.shape_cast %426 : vector<4x8xf32> to vector<1x4x8xf32>
    %431 = vector.shape_cast %427 : vector<4x8xf32> to vector<1x4x8xf32>
    %432 = vector.shape_cast %428 : vector<4x8xf32> to vector<1x4x8xf32>
    %433 = vector.shape_cast %429 : vector<4x8xf32> to vector<1x4x8xf32>
    %434 = tpu.concatenate %430, %431, %432, %433 in 0 : vector<1x4x8xf32>, vector<1x4x8xf32>, vector<1x4x8xf32>, vector<1x4x8xf32> -> vector<4x4x8xf32>
    %435 = vector.extract_strided_slice %425 {offsets = [0, 0], sizes = [9, 8], strides = [1, 1]} : vector<9x64xf32> to vector<9x8xf32>
    %436 = vector.extract_strided_slice %425 {offsets = [0, 8], sizes = [9, 8], strides = [1, 1]} : vector<9x64xf32> to vector<9x8xf32>
    %437 = vector.extract_strided_slice %425 {offsets = [0, 16], sizes = [9, 8], strides = [1, 1]} : vector<9x64xf32> to vector<9x8xf32>
    %438 = vector.extract_strided_slice %425 {offsets = [0, 24], sizes = [9, 8], strides = [1, 1]} : vector<9x64xf32> to vector<9x8xf32>
    %439 = vector.shape_cast %435 : vector<9x8xf32> to vector<1x9x8xf32>
    %440 = vector.shape_cast %436 : vector<9x8xf32> to vector<1x9x8xf32>
    %441 = vector.shape_cast %437 : vector<9x8xf32> to vector<1x9x8xf32>
    %442 = vector.shape_cast %438 : vector<9x8xf32> to vector<1x9x8xf32>
    %443 = tpu.concatenate %439, %440, %441, %442 in 0 : vector<1x9x8xf32>, vector<1x9x8xf32>, vector<1x9x8xf32>, vector<1x9x8xf32> -> vector<4x9x8xf32>
    %444 = vector.extract_strided_slice %425 {offsets = [0, 32], sizes = [9, 8], strides = [1, 1]} : vector<9x64xf32> to vector<9x8xf32>
    %445 = vector.extract_strided_slice %425 {offsets = [0, 40], sizes = [9, 8], strides = [1, 1]} : vector<9x64xf32> to vector<9x8xf32>
    %446 = vector.extract_strided_slice %425 {offsets = [0, 48], sizes = [9, 8], strides = [1, 1]} : vector<9x64xf32> to vector<9x8xf32>
    %447 = vector.extract_strided_slice %425 {offsets = [0, 56], sizes = [9, 8], strides = [1, 1]} : vector<9x64xf32> to vector<9x8xf32>
    %448 = vector.shape_cast %444 : vector<9x8xf32> to vector<1x9x8xf32>
    %449 = vector.shape_cast %445 : vector<9x8xf32> to vector<1x9x8xf32>
    %450 = vector.shape_cast %446 : vector<9x8xf32> to vector<1x9x8xf32>
    %451 = vector.shape_cast %447 : vector<9x8xf32> to vector<1x9x8xf32>
    %452 = tpu.concatenate %448, %449, %450, %451 in 0 : vector<1x9x8xf32>, vector<1x9x8xf32>, vector<1x9x8xf32>, vector<1x9x8xf32> -> vector<4x9x8xf32>
    "tpu.trace_start"() <{level = 10 : i32, message = "hqd,hkd->hqk"}> : () -> ()
    %cst_131 = arith.constant dense<0.000000e+00> : vector<4x4x9xf32>
    %453 = tpu.matmul %434, %443, %cst_131 {dimension_numbers = #tpu.dot_dimension_numbers<[2], [2], [1], [1], [0, 0, 0, 1, 1, 1], [0], [0]>} : vector<4x4x8xf32>, vector<4x9x8xf32>, vector<4x4x9xf32> -> vector<4x4x9xf32>
    "tpu.trace_stop"() : () -> ()
    %cst_132 = arith.constant 0.353553385 : f32
    %454 = vector.broadcast %cst_132 : f32 to vector<4x4x9xf32>
    %455 = arith.mulf %453, %454 : vector<4x4x9xf32>
    %cst_133 = arith.constant dense<0xFF800000> : vector<4x4xf32>
    %456 = vector.multi_reduction <maximumf>, %455, %cst_133 [2] : vector<4x4x9xf32> to vector<4x4xf32>
    %457 = vector.shape_cast %456 : vector<4x4xf32> to vector<4x4x1xf32>
    %458 = vector.broadcast %457 : vector<4x4x1xf32> to vector<4x4x9xf32>
    %459 = arith.subf %455, %458 : vector<4x4x9xf32>
    %460 = math.exp %459 : vector<4x4x9xf32>
    %cst_134 = arith.constant dense<0.000000e+00> : vector<4x4xf32>
    %461 = vector.multi_reduction <add>, %460, %cst_134 [2] : vector<4x4x9xf32> to vector<4x4xf32>
    %462 = vector.shape_cast %461 : vector<4x4xf32> to vector<4x4x1xf32>
    %463 = vector.broadcast %462 : vector<4x4x1xf32> to vector<4x4x9xf32>
    %464 = arith.divf %460, %463 : vector<4x4x9xf32>
    "tpu.trace_start"() <{level = 10 : i32, message = "hqk,hkd->hqd"}> : () -> ()
    %cst_135 = arith.constant dense<0.000000e+00> : vector<4x4x8xf32>
    %465 = tpu.matmul %464, %452, %cst_135 {dimension_numbers = #tpu.dot_dimension_numbers<[2], [1], [1], [2], [0, 0, 0, 1, 1, 2], [0], [0]>} : vector<4x4x9xf32>, vector<4x9x8xf32>, vector<4x4x8xf32> -> vector<4x4x8xf32>
    "tpu.trace_stop"() : () -> ()
    %466 = vector.extract_strided_slice %465 {offsets = [0, 0, 0], sizes = [1, 4, 8], strides = [1, 1, 1]} : vector<4x4x8xf32> to vector<1x4x8xf32>
    %467 = vector.shape_cast %466 : vector<1x4x8xf32> to vector<4x8xf32>
    %468 = vector.extract_strided_slice %320 {offsets = [0, 0], sizes = [8, 32], strides = [1, 1]} : vector<32x32xf32> to vector<8x32xf32>
    %cst_136 = arith.constant dense<0.000000e+00> : vector<4x32xf32>
    %469 = tpu.matmul %467, %468, %cst_136 {dimension_numbers = #tpu.dot_dimension_numbers<[1], [0], [0], [1], [0, 0, 1, 1], [], []>} : vector<4x8xf32>, vector<8x32xf32>, vector<4x32xf32> -> vector<4x32xf32>
    %470 = vector.extract_strided_slice %465 {offsets = [1, 0, 0], sizes = [1, 4, 8], strides = [1, 1, 1]} : vector<4x4x8xf32> to vector<1x4x8xf32>
    %471 = vector.shape_cast %470 : vector<1x4x8xf32> to vector<4x8xf32>
    %472 = vector.extract_strided_slice %320 {offsets = [8, 0], sizes = [8, 32], strides = [1, 1]} : vector<32x32xf32> to vector<8x32xf32>
    %cst_137 = arith.constant dense<0.000000e+00> : vector<4x32xf32>
    %473 = tpu.matmul %471, %472, %cst_137 {dimension_numbers = #tpu.dot_dimension_numbers<[1], [0], [0], [1], [0, 0, 1, 1], [], []>} : vector<4x8xf32>, vector<8x32xf32>, vector<4x32xf32> -> vector<4x32xf32>
    %474 = arith.addf %469, %473 : vector<4x32xf32>
    %475 = vector.extract_strided_slice %465 {offsets = [2, 0, 0], sizes = [1, 4, 8], strides = [1, 1, 1]} : vector<4x4x8xf32> to vector<1x4x8xf32>
    %476 = vector.shape_cast %475 : vector<1x4x8xf32> to vector<4x8xf32>
    %477 = vector.extract_strided_slice %320 {offsets = [16, 0], sizes = [8, 32], strides = [1, 1]} : vector<32x32xf32> to vector<8x32xf32>
    %cst_138 = arith.constant dense<0.000000e+00> : vector<4x32xf32>
    %478 = tpu.matmul %476, %477, %cst_138 {dimension_numbers = #tpu.dot_dimension_numbers<[1], [0], [0], [1], [0, 0, 1, 1], [], []>} : vector<4x8xf32>, vector<8x32xf32>, vector<4x32xf32> -> vector<4x32xf32>
    %479 = arith.addf %474, %478 : vector<4x32xf32>
    %480 = vector.extract_strided_slice %465 {offsets = [3, 0, 0], sizes = [1, 4, 8], strides = [1, 1, 1]} : vector<4x4x8xf32> to vector<1x4x8xf32>
    %481 = vector.shape_cast %480 : vector<1x4x8xf32> to vector<4x8xf32>
    %482 = vector.extract_strided_slice %320 {offsets = [24, 0], sizes = [8, 32], strides = [1, 1]} : vector<32x32xf32> to vector<8x32xf32>
    %cst_139 = arith.constant dense<0.000000e+00> : vector<4x32xf32>
    %483 = tpu.matmul %481, %482, %cst_139 {dimension_numbers = #tpu.dot_dimension_numbers<[1], [0], [0], [1], [0, 0, 1, 1], [], []>} : vector<4x8xf32>, vector<8x32xf32>, vector<4x32xf32> -> vector<4x32xf32>
    %484 = arith.addf %479, %483 : vector<4x32xf32>
    %485 = arith.addf %419, %484 : vector<4x32xf32>
    %486 = vector.broadcast %321 : vector<1x32xf32> to vector<4x32xf32>
    %487 = arith.addf %485, %486 : vector<4x32xf32>
    %cst_140 = arith.constant dense<0.000000e+00> : vector<4xf32>
    %488 = vector.multi_reduction <add>, %487, %cst_140 [1] : vector<4x32xf32> to vector<4xf32>
    %489 = vector.shape_cast %488 : vector<4xf32> to vector<4x1xf32>
    %cst_141 = arith.constant 3.200000e+01 : f32
    %490 = vector.broadcast %cst_141 : f32 to vector<4x1xf32>
    %491 = arith.divf %489, %490 : vector<4x1xf32>
    %492 = vector.broadcast %491 : vector<4x1xf32> to vector<4x32xf32>
    %493 = arith.subf %487, %492 : vector<4x32xf32>
    %494 = arith.mulf %493, %493 : vector<4x32xf32>
    %cst_142 = arith.constant dense<0.000000e+00> : vector<4xf32>
    %495 = vector.multi_reduction <add>, %494, %cst_142 [1] : vector<4x32xf32> to vector<4xf32>
    %496 = vector.shape_cast %495 : vector<4xf32> to vector<4x1xf32>
    %cst_143 = arith.constant 3.200000e+01 : f32
    %497 = vector.broadcast %cst_143 : f32 to vector<4x1xf32>
    %498 = arith.divf %496, %497 : vector<4x1xf32>
    %499 = vector.broadcast %491 : vector<4x1xf32> to vector<4x32xf32>
    %500 = arith.subf %487, %499 : vector<4x32xf32>
    %cst_144 = arith.constant 9.99999974E-6 : f32
    %501 = vector.broadcast %cst_144 : f32 to vector<4x1xf32>
    %502 = arith.addf %498, %501 : vector<4x1xf32>
    %503 = math.rsqrt %502 : vector<4x1xf32>
    %504 = vector.broadcast %503 : vector<4x1xf32> to vector<4x32xf32>
    %505 = arith.mulf %500, %504 : vector<4x32xf32>
    %506 = vector.broadcast %322 : vector<1x32xf32> to vector<4x32xf32>
    %507 = arith.mulf %505, %506 : vector<4x32xf32>
    %508 = vector.broadcast %323 : vector<1x32xf32> to vector<4x32xf32>
    %509 = arith.addf %507, %508 : vector<4x32xf32>
    %cst_145 = arith.constant dense<0.000000e+00> : vector<4x64xf32>
    %510 = tpu.matmul %509, %324, %cst_145 {dimension_numbers = #tpu.dot_dimension_numbers<[1], [0], [0], [1], [0, 0, 1, 1], [], []>} : vector<4x32xf32>, vector<32x64xf32>, vector<4x64xf32> -> vector<4x64xf32>
    %511 = vector.broadcast %325 : vector<1x64xf32> to vector<4x64xf32>
    %512 = arith.addf %510, %511 : vector<4x64xf32>
    %cst_146 = arith.constant 5.000000e-01 : f32
    %513 = vector.broadcast %cst_146 : f32 to vector<4x64xf32>
    %514 = arith.mulf %513, %512 : vector<4x64xf32>
    %cst_147 = arith.constant 0.707106769 : f32
    %515 = vector.broadcast %cst_147 : f32 to vector<4x64xf32>
    %516 = arith.mulf %512, %515 : vector<4x64xf32>
    %517 = math.erf %516 : vector<4x64xf32>
    %cst_148 = arith.constant 1.000000e+00 : f32
    %518 = vector.broadcast %cst_148 : f32 to vector<4x64xf32>
    %519 = arith.addf %518, %517 : vector<4x64xf32>
    %520 = arith.mulf %514, %519 : vector<4x64xf32>
    %cst_149 = arith.constant dense<0.000000e+00> : vector<4x32xf32>
    %521 = tpu.matmul %520, %326, %cst_149 {dimension_numbers = #tpu.dot_dimension_numbers<[1], [0], [0], [1], [0, 0, 1, 1], [], []>} : vector<4x64xf32>, vector<64x32xf32>, vector<4x32xf32> -> vector<4x32xf32>
    %522 = vector.broadcast %327 : vector<1x32xf32> to vector<4x32xf32>
    %523 = arith.addf %521, %522 : vector<4x32xf32>
    %524 = arith.addf %509, %523 : vector<4x32xf32>
    %cst_150 = arith.constant dense<0.000000e+00> : vector<4xf32>
    %525 = vector.multi_reduction <add>, %524, %cst_150 [1] : vector<4x32xf32> to vector<4xf32>
    %526 = vector.shape_cast %525 : vector<4xf32> to vector<4x1xf32>
    %cst_151 = arith.constant 3.200000e+01 : f32
    %527 = vector.broadcast %cst_151 : f32 to vector<4x1xf32>
    %528 = arith.divf %526, %527 : vector<4x1xf32>
    %529 = vector.broadcast %528 : vector<4x1xf32> to vector<4x32xf32>
    %530 = arith.subf %524, %529 : vector<4x32xf32>
    %531 = arith.mulf %530, %530 : vector<4x32xf32>
    %cst_152 = arith.constant dense<0.000000e+00> : vector<4xf32>
    %532 = vector.multi_reduction <add>, %531, %cst_152 [1] : vector<4x32xf32> to vector<4xf32>
    %533 = vector.shape_cast %532 : vector<4xf32> to vector<4x1xf32>
    %cst_153 = arith.constant 3.200000e+01 : f32
    %534 = vector.broadcast %cst_153 : f32 to vector<4x1xf32>
    %535 = arith.divf %533, %534 : vector<4x1xf32>
    %536 = vector.broadcast %528 : vector<4x1xf32> to vector<4x32xf32>
    %537 = arith.subf %524, %536 : vector<4x32xf32>
    %cst_154 = arith.constant 9.99999974E-6 : f32
    %538 = vector.broadcast %cst_154 : f32 to vector<4x1xf32>
    %539 = arith.addf %535, %538 : vector<4x1xf32>
    %540 = math.rsqrt %539 : vector<4x1xf32>
    %541 = vector.broadcast %540 : vector<4x1xf32> to vector<4x32xf32>
    %542 = arith.mulf %537, %541 : vector<4x32xf32>
    %543 = vector.broadcast %328 : vector<1x32xf32> to vector<4x32xf32>
    %544 = arith.mulf %542, %543 : vector<4x32xf32>
    %545 = vector.broadcast %329 : vector<1x32xf32> to vector<4x32xf32>
    %546 = arith.addf %544, %545 : vector<4x32xf32>
    %c864 = arith.constant 864 : index
    %c0_155 = arith.constant 0 : index
    %547 = vector.load %arg2[%c864, %c0_155] : memref<992x128xf32, #tpu.memory_space<vmem>>, vector<1x32xf32>
    %c872 = arith.constant 872 : index
    %c0_156 = arith.constant 0 : index
    %548 = vector.load %arg2[%c872, %c0_156] : memref<992x128xf32, #tpu.memory_space<vmem>>, vector<1x32xf32>
    %cst_157 = arith.constant dense<0.000000e+00> : vector<4xf32>
    %549 = vector.multi_reduction <add>, %546, %cst_157 [1] : vector<4x32xf32> to vector<4xf32>
    %550 = vector.shape_cast %549 : vector<4xf32> to vector<4x1xf32>
    %cst_158 = arith.constant 3.200000e+01 : f32
    %551 = vector.broadcast %cst_158 : f32 to vector<4x1xf32>
    %552 = arith.divf %550, %551 : vector<4x1xf32>
    %553 = vector.broadcast %552 : vector<4x1xf32> to vector<4x32xf32>
    %554 = arith.subf %546, %553 : vector<4x32xf32>
    %555 = arith.mulf %554, %554 : vector<4x32xf32>
    %cst_159 = arith.constant dense<0.000000e+00> : vector<4xf32>
    %556 = vector.multi_reduction <add>, %555, %cst_159 [1] : vector<4x32xf32> to vector<4xf32>
    %557 = vector.shape_cast %556 : vector<4xf32> to vector<4x1xf32>
    %cst_160 = arith.constant 3.200000e+01 : f32
    %558 = vector.broadcast %cst_160 : f32 to vector<4x1xf32>
    %559 = arith.divf %557, %558 : vector<4x1xf32>
    %560 = vector.broadcast %552 : vector<4x1xf32> to vector<4x32xf32>
    %561 = arith.subf %546, %560 : vector<4x32xf32>
    %cst_161 = arith.constant 9.99999974E-6 : f32
    %562 = vector.broadcast %cst_161 : f32 to vector<4x1xf32>
    %563 = arith.addf %559, %562 : vector<4x1xf32>
    %564 = math.rsqrt %563 : vector<4x1xf32>
    %565 = vector.broadcast %564 : vector<4x1xf32> to vector<4x32xf32>
    %566 = arith.mulf %561, %565 : vector<4x32xf32>
    %567 = vector.broadcast %547 : vector<1x32xf32> to vector<4x32xf32>
    %568 = arith.mulf %566, %567 : vector<4x32xf32>
    %569 = vector.broadcast %548 : vector<1x32xf32> to vector<4x32xf32>
    %570 = arith.addf %568, %569 : vector<4x32xf32>
    %c880 = arith.constant 880 : index
    %c0_162 = arith.constant 0 : index
    %571 = vector.load %arg2[%c880, %c0_162] : memref<992x128xf32, #tpu.memory_space<vmem>>, vector<32x5xf32>
    %c912 = arith.constant 912 : index
    %c0_163 = arith.constant 0 : index
    %572 = vector.load %arg2[%c912, %c0_163] : memref<992x128xf32, #tpu.memory_space<vmem>>, vector<1x5xf32>
    %cst_164 = arith.constant dense<0.000000e+00> : vector<4x5xf32>
    %573 = tpu.matmul %570, %571, %cst_164 {dimension_numbers = #tpu.dot_dimension_numbers<[1], [0], [0], [1], [0, 0, 1, 1], [], []>} : vector<4x32xf32>, vector<32x5xf32>, vector<4x5xf32> -> vector<4x5xf32>
    %574 = vector.broadcast %572 : vector<1x5xf32> to vector<4x5xf32>
    %575 = arith.addf %573, %574 : vector<4x5xf32>
    %cst_165 = arith.constant dense<0.000000e+00> : vector<32xf32>
    %576 = vector.multi_reduction <add>, %570, %cst_165 [0] : vector<4x32xf32> to vector<32xf32>
    %577 = vector.shape_cast %576 : vector<32xf32> to vector<1x32xf32>
    %cst_166 = arith.constant 4.000000e+00 : f32
    %578 = vector.broadcast %cst_166 : f32 to vector<1x32xf32>
    %579 = arith.divf %577, %578 : vector<1x32xf32>
    %580 = vector.extract_strided_slice %302 {offsets = [8, 0], sizes = [1, 32], strides = [1, 1]} : vector<9x32xf32> to vector<1x32xf32>
    %c920 = arith.constant 920 : index
    %c0_167 = arith.constant 0 : index
    %581 = vector.load %arg2[%c920, %c0_167] : memref<992x128xf32, #tpu.memory_space<vmem>>, vector<32x5xf32>
    %c952 = arith.constant 952 : index
    %c0_168 = arith.constant 0 : index
    %582 = vector.load %arg2[%c952, %c0_168] : memref<992x128xf32, #tpu.memory_space<vmem>>, vector<32x5xf32>
    %c984 = arith.constant 984 : index
    %c0_169 = arith.constant 0 : index
    %583 = vector.load %arg2[%c984, %c0_169] : memref<992x128xf32, #tpu.memory_space<vmem>>, vector<1x5xf32>
    %cst_170 = arith.constant dense<0.000000e+00> : vector<1x5xf32>
    %584 = tpu.matmul %580, %581, %cst_170 {dimension_numbers = #tpu.dot_dimension_numbers<[1], [0], [0], [1], [0, 0, 1, 1], [], []>} : vector<1x32xf32>, vector<32x5xf32>, vector<1x5xf32> -> vector<1x5xf32>
    %cst_171 = arith.constant dense<0.000000e+00> : vector<1x5xf32>
    %585 = tpu.matmul %579, %582, %cst_171 {dimension_numbers = #tpu.dot_dimension_numbers<[1], [0], [0], [1], [0, 0, 1, 1], [], []>} : vector<1x32xf32>, vector<32x5xf32>, vector<1x5xf32> -> vector<1x5xf32>
    %586 = arith.addf %584, %585 : vector<1x5xf32>
    %587 = arith.addf %586, %583 : vector<1x5xf32>
    %c0_172 = arith.constant 0 : index
    %c0_173 = arith.constant 0 : index
    %c0_174 = arith.constant 0 : index
    %588 = vector.load %arg3[%c0_172, %c0_173, %c0_174] : memref<1x1x5xf32, #tpu.memory_space<vmem>>, vector<1x1x5xf32>
    %589 = vector.shape_cast %588 : vector<1x1x5xf32> to vector<1x5xf32>
    %590 = vector.shape_cast %587 : vector<1x5xf32> to vector<1x1x5xf32>
    tpu.vector_store %arg3[%c0_172, %c0_173, %c0_174], %590 {strides = array<i32>} : memref<1x1x5xf32, #tpu.memory_space<vmem>>, vector<1x1x5xf32>,
    %c0_175 = arith.constant 0 : index
    %c0_176 = arith.constant 0 : index
    %c0_177 = arith.constant 0 : index
    %591 = vector.load %arg4[%c0_175, %c0_176, %c0_177] : memref<1x4x5xf32, #tpu.memory_space<vmem>>, vector<1x4x5xf32>
    %592 = vector.shape_cast %591 : vector<1x4x5xf32> to vector<4x5xf32>
    %593 = vector.shape_cast %575 : vector<4x5xf32> to vector<1x4x5xf32>
    tpu.vector_store %arg4[%c0_175, %c0_176, %c0_177], %593 {strides = array<i32>} : memref<1x4x5xf32, #tpu.memory_space<vmem>>, vector<1x4x5xf32>,
    return
  }
  func.func @transform_0(%arg0: i32) -> (i32, i32, i32) {
    %c0_i32 = arith.constant 0 : i32
    %c0_i32_0 = arith.constant 0 : i32
    %c0_i32_1 = arith.constant 0 : i32
    return %arg0, %c0_i32, %c0_i32_0 : i32, i32, i32
  }
  func.func @transform_1(%arg0: i32) -> (i32, i32) {
    %c0_i32 = arith.constant 0 : i32
    %c0_i32_0 = arith.constant 0 : i32
    %c0_i32_1 = arith.constant 0 : i32
    return %c0_i32, %c0_i32_0 : i32, i32
  }
  func.func @transform_2(%arg0: i32) -> (i32, i32, i32) {
    %c0_i32 = arith.constant 0 : i32
    %c0_i32_0 = arith.constant 0 : i32
    %c0_i32_1 = arith.constant 0 : i32
    return %arg0, %c0_i32, %c0_i32_0 : i32, i32, i32
  }
  func.func @transform_3(%arg0: i32) -> (i32, i32, i32) {
    %c0_i32 = arith.constant 0 : i32
    %c0_i32_0 = arith.constant 0 : i32
    %c0_i32_1 = arith.constant 0 : i32
    return %arg0, %c0_i32, %c0_i32_0 : i32, i32, i32
  }
}

</mosaic_0001>

<bundles_post_ra>
// kernel: forward.1
= control target key start
LH: loop header
LB: loop body
LE: loop exit
PB: predicated region body
PF: predicated region fallthrough
CT: control target
= control target key end

     0   :  { %9 = vsyncpa [#allocation4], 0  ;;  %s8911_s0 = inlined_call_operand.vmem [shape: f32[2,8,16], index: 0, kind: input, shape index: {}]   ;;  %s8912_s1 = inlined_call_operand.vmem [shape: f32[992,128], index: 1, kind: input, shape index: {}]   ;;  %s8913_s2 = inlined_call_operand.hbm [shape: f32[2,1,5], index: 2, kind: output, shape index: {0}]   ;;  %s8914_s3 = inlined_call_operand.hbm [shape: f32[2,4,5], index: 3, kind: output, shape index: {1}]  }
   0x1   :  { %11 = vsyncpa [#allocation4 + $0x1], 0 }
   0x2   :  { %12 = vsyncpa [#allocation6], 0 }
   0x3   :  { %14 = vsyncpa [#allocation6 + $0x1], 0  ;;  %s7804_s12 = smov 0   ;;  %s7806_s13 = smov 0  }
   0x4   :  { %s7808_s14 = smov 0   ;;  %s7810_s15 = smov 0  }
   0x5 LB: > { %s7825_s16 = sadd.s32 4294967295, %s7770_s15   ;;  %s6219_s17 = sadd.s32 4294967294, %s7770_s15   ;;  %s7770_s15 = sphi %s7810_s15, %s8924_s15   ;;  %s7766_s14 = sphi %s7808_s14, %s8923_s14   ;;  %s7762_s13 = sphi %s7806_s13, %s8922_s13   ;;  %s7758_s12 = sphi %s7804_s12, %s8921_s12  }
   0x6   : > { %s7829_s18 = sadd.s32 1, %s7770_s15   ;;  %s74_s19 = sadd.s32 1, %s7766_s14 }
   0x7   : > { %s71_s20 = ssub.s32 %s7770_s15, %s7829_s18  ;;  %p84_p0 = scmp.ne.s32.totalorder %s7766_s14, %s7762_s13 }
   0x8   : > { %p72_p1 = scmp.eq.s32.totalorder %s71_s20, 0  ;;  %p85_p2 = scmp.eq.s32.totalorder %s7825_s16, 1 }
   0x9   : > { %p90_p3 = scmp.ne.s32.totalorder %s7762_s13, %s7758_s12  ;;  %p91_p4 = scmp.eq.s32.totalorder %s6219_s17, 1 }
   0xa   : > { %s7840_s21 = scalar_select %p72_p1, %s7766_s14, %s74_s19  }
   0xb   : > { %p7842_p5 = por %p85_p2, %p84_p0  ;;  %p7846_p6 = por %p91_p4, %p90_p3 }
   0xc   : > { %p6222_p7 = scmp.ge.s32.totalorder %s7770_s15, 1  ;;  %p145_p8 = scmp.lt.s32.totalorder %s7770_s15, 3 }
   0xe   : > { %p146_p9 = pnand %p6222_p7, %p145_p8 }
   0xf   : > { %v176_v0 = vld [vmem:[%s8912_s1] sm:$0xff] (!%p146_p9)  ;;  %v177_v1 = vld [vmem:[%s8912_s1 + $0x8] sm:$0xff] (!%p146_p9)  ;;  %p172_p10 = scmp.lt.s32.totalorder (!%p146_p9), %s7825_s16, 1  ;;  %v7772_v2 = vmov (!%p146_p9), 0.0|0.0   ;;  %vm7773_vm0 = vmmov (!%p146_p9), 0   ;;  %v7774_v4 = vmov (!%p146_p9), 0.0  }
  0x10   : > { %149 = sbr.rel (%p146_p9) target bundleno = 9393 (0x24b1), region = 28  ;;  %7110 = vmatprep.subr.bf16.mxu0 (!%p146_p9), %v7772_v2  ;;  %v7111_v3 = vpack.c.bf16 (!%p146_p9), %v177_v1, %v176_v0  ;;  %6641 = vmatprep.mubr.msk.f32.mxu0 (!%p146_p9), %vm7773_vm0, %v7774_v4  ;;  %vm187_vm1 = vcmask (!%p146_p9), 130048   ;;  %v179_v6 = vld [vmem:[%s8912_s1 + $0x18] sm:$0x1] (!%p146_p9)  ;;  %vm263_vm2 = vcmask (!%p146_p9), 253952   ;;  %vm261_vm3 = vcmask (!%p146_p9), 261120  }
  0x11   : > { %264 = vst.msk [vmem:[#allocation2 + $0x8] sm:$0x1] (!%p146_p9), %vm263_vm2, %v179_v6  ;;  %v6225_v7 = vld [vmem:[%s8912_s1 + $0x10] ss:$0 sm:$0xff] (!%p146_p9)  ;;  %v180_v11 = vld [vmem:[%s8912_s1 + $0x20] sm:$0xff] (!%p146_p9)  ;;  %v272_v30 = vld [vmem:[%s8912_s1 + $0x48] sm:$0xff] (!%p146_p9) }
  0x12   : > { %7112 = vmatpush3.bf16.msra.mxu0 (!%p146_p9), %v7111_v3  ;;  %v181_v12 = vld [vmem:[%s8912_s1 + $0x28] sm:$0x1] (!%p146_p9)  ;;  %v271_v29 = vld [vmem:[%s8912_s1 + $0x40] sm:$0xff] (!%p146_p9)  ;;  %v273_v31 = vld [vmem:[%s8912_s1 + $0x50] sm:$0xff] (!%p146_p9)  ;;  %vm434_vm4 = vcmask (!%p146_p9), 64512   ;;  %s7775_s8 = smov (!%p146_p9), 120  }
  0x13   : > { %v7113_v32 = vpack.c.bf16 (!%p146_p9), %v272_v30, %v271_v29  ;;  %v274_v33 = vld [vmem:[%s8912_s1 + $0x58] sm:$0xff] (!%p146_p9)  ;;  %v6227_v42 = vld [vmem:[%s8912_s1 + $0x30] ss:$0 sm:$0xff] (!%p146_p9)  ;;  %s7776_s9 = smov (!%p146_p9), 112   ;;  %s7777_s10 = smov (!%p146_p9), 104   ;;  %vm7934_vm5 = vmpackc.low (!%p146_p9), %vm434_vm4, %vm434_vm4  ;;  %vm791_vm6 = vcmask (!%p146_p9), 65536  }
  0x14   : > { %v7117_v34 = vpack.c.bf16 (!%p146_p9), %v274_v33, %v273_v31  ;;  %v6228_v44 = vld [vmem:[%s8912_s1 + $0x38] ss:$0 sm:$0xff] (!%p146_p9)  ;;  %s7778_s11 = smov (!%p146_p9), 96   ;;  %vm787_vm7 = vcmask (!%p146_p9), 72704   ;;  %s7779_s17 = smov (!%p146_p9), 64   ;;  %vm888_vm8 = vcmask (!%p146_p9), 1040384  }
  0x15   : > { %7114 = vmatprep.subr.bf16.mxu1 (!%p146_p9), %v7113_v32  ;;  %vm7780_vm9 = vmmov (!%p146_p9), 1   ;;  %vm1703_vm11 = vcmask (!%p146_p9), 523264   ;;  %vm3787_vm13 = vcmask (!%p146_p9), 27648   ;;  %vm3838_vm14 = vcmask (!%p146_p9), 1043456   ;;  %s6398_s24 = sshll.u32 (!%p146_p9), %s7825_s16, 6  ;;  %s7782_s4 = smov (!%p146_p9), [#allocation5]  }
  0x16   : > { %7116 = vmatpush3.bf16.msra.mxu1 (!%p146_p9), %v7113_v32  ;;  %vm7986_vm10 = vmpackc.low (!%p146_p9), %vm888_vm8, %vm7780_vm9  ;;  %vm3834_vm15 = vcmask (!%p146_p9), 31744  }
  0x17   : > { %s173_s28 = scalar_select %p172_p10, %s7825_s16, 1  ;;  %7118 = vmatprep.subr.bf16.mxu1 %v7117_v34 }
  0x18   : > { %v266_v13 = vld [vmem:[#allocation2 + $0x8] sm:$0x1] }
  0x19   : > { %s6224_s29 = sshll.u32 %s173_s28, 3  ;;  %v7882_v16 = vadd.f32 %v266_v13, %v181_v12  ;;  %s8833_s28 = scalar_lea.hbm %s8914_s3, %s6398_s24 }
  0x1a   : > { %s175_s5 = scalar_lea.vmem %s8911_s0, %s6224_s29  ;;  %7120 = vmatpush3.bf16.msra.mxu1 %v7117_v34 }
  0x1b   : > { %v182_v5 = vld [vmem:[%s175_s5] sm:$0xff]  ;;  %v299_v18 = vsel %vm263_vm2, %v7882_v16, 0.0  ;;  %s7680_s5 = sshll.u32 %s7782_s4, 4  ;;  %s7681_s5 = int_to_ptr.vmem [resolvable:$false] %s7680_s5 }
  0x1c   : > { %6642 = vmatmul.mubr.msk.f32.vlgmr.msra.gmra.mrb[0].mxu0 %vm187_vm1, %v182_v5  ;;  %vm4442_vm1 = vcmask 257024   ;;  %s7682_s6 = scalar_lea.vmem %s7681_s5, 128 }
  0xef   : > { %v257_v8 = vpop.f32.mrb[0].mxu0 }
  0xf0   : > { %v258_v9 = vadd.f32 %v6225_v7, %v257_v8  ;;  %v6643_v10 = vpop.f32.mrb[1].mxu0 }
  0xf2   : > { %262 = vst.msk [vmem:[#allocation2] sm:$0xff] %vm261_vm3, %v258_v9 }
  0xf9   : > { %v265_v14 = vld [vmem:[#allocation2] sm:$0xff] }
  0xfa   : > { %v7880_v15 = vadd.f32 %v265_v14, %v180_v11 }
  0xfc   : > { %v296_v17 = vsel %vm261_vm3, %v7880_v15, 0.0 }
  0xfd   : > { %297 = vadd.xlane.f32.xlu0 %v296_v17 }
 0x101   : > { %300 = vadd.xlane.f32.xlu0 %v299_v18 }
 0x18a   : > { %v298_v19 = vpop.xlane.xlu0 %297 }
 0x18b   : > { %v303_v20 = vmul.f32 0.03125, %v298_v19 }
 0x18d   : > { %v305_v21 = vsub.f32 %v7880_v15, %v303_v20 }
 0x18e   : > { %v301_v22 = vpop.xlane.xlu0 %300 }
 0x18f   : > { %v304_v23 = vmul.f32 0.03125, %v301_v22  ;;  %v307_v24 = vmul.f32 %v305_v21, %v305_v21 }
 0x191   : > { %v306_v25 = vsub.f32 %v7882_v16, %v304_v23  ;;  %v309_v26 = vsel %vm261_vm3, %v307_v24, 0.0 }
 0x192   : > { %310 = vadd.xlane.f32.xlu1 %v309_v26 }
 0x193   : > { %v308_v27 = vmul.f32 %v306_v25, %v306_v25 }
 0x195   : > { %v312_v28 = vsel %vm263_vm2, %v308_v27, 0.0 }
 0x196   : > { %313 = vadd.xlane.f32.xlu1 %v312_v28 }
 0x21f   : > { %v311_v35 = vpop.xlane.xlu1 %310 }
 0x220   : > { %v315_v36 = vmul.f32 0.03125, %v311_v35 }
 0x222   : > { %v317_v37 = vadd.f32 1e-05, %v315_v36 }
 0x223   : > { %v314_v38 = vpop.xlane.xlu1 %313 }
 0x224   : > { %7542 = vrsqrt.f32 %v317_v37  ;;  %v316_v39 = vmul.f32 0.03125, %v314_v38 }
 0x226   : > { %v318_v40 = vadd.f32 1e-05, %v316_v39 }
 0x228   : > { %7544 = vrsqrt.f32 %v318_v40 }
 0x22e   : > { %v7543_v41 = vpop.eup %7542 }
 0x22f   : > { %v321_v43 = vmul.f32 %v7543_v41, %v305_v21 }
 0x231   : > { %v327_v45 = vmul.f32 %v6227_v42, %v321_v43 }
 0x232   : > { %v7545_v46 = vpop.eup %7544 }
 0x233   : > { %v322_v47 = vmul.f32 %v7545_v46, %v306_v25  ;;  %v333_v48 = vadd.f32 %v6228_v44, %v327_v45 }
 0x235   : > { %v328_v49 = vmul.f32 %v6227_v42, %v322_v47  ;;  %6652 = vmatprep.mubr.msk.f32.mxu1 %vm261_vm3, %v333_v48 }
 0x237   : > { %v334_v50 = vadd.f32 %v6228_v44, %v328_v49 }
 0x239   : > { %6653 = vmatmul.mubr.msk.f32.vlgmr.msra.gmra.mrb[0].mxu1 %vm261_vm3, %v334_v50 }
 0x30c   : > { %v6654_v51 = vpop.f32.mrb[0].mxu1 }
 0x30d   : > { %420 = vrot.lane.b32.xlu1 %v6654_v51, %s7775_s8  ;;  %v407_v52 = vpop.f32.mrb[1].mxu1 }
 0x30e   : > { %418 = vrot.lane.b32.xlu0 %v407_v52, %s7775_s8  ;;  %6659 = vmatprep.mubr.msk.f32.mxu0 %vm434_vm4, %v407_v52  ;;  %v7915_v53 = vpack.i.bf16 %v6654_v51, %v407_v52 }
 0x311   : > { %422 = vrot.lane.b32.xlu1 %v407_v52, %s7776_s9 }
 0x312   : > { %426 = vrot.lane.b32.xlu0 %v407_v52, %s7777_s10 }
 0x315   : > { %424 = vrot.lane.b32.xlu1 %v6654_v51, %s7776_s9 }
 0x316   : > { %7428 = vrot.lane.b32.xlu0 %v7915_v53, %s7778_s11 }
 0x319   : > { %428 = vrot.lane.b32.xlu1 %v6654_v51, %s7777_s10 }
 0x37f   : > { %v421_v54 = vpop.permute.xlu1 %420 }
 0x380   : > { %v419_v55 = vpop.permute.xlu0 %418 }
 0x381   : > { %6666 = vmatprep.mubr.msk.f32.mxu1 %vm434_vm4, %v419_v55  ;;  %v7924_v56 = vpack.i.bf16 %v421_v54, %v419_v55 }
 0x383   : > { %v423_v57 = vpop.permute.xlu1 %422  ;;  %7433 = vrot.lane.b32.xlu1 %v7924_v56, %s7778_s11 }
 0x384   : > { %v427_v58 = vpop.permute.xlu0 %426 }
 0x387   : > { %v425_v59 = vpop.permute.xlu1 %424 }
 0x388   : > { %v7429_v60 = vpop.permute.xlu0 %7428  ;;  %v7928_v61 = vpack.i.bf16 %v425_v59, %v423_v57 }
 0x389   : > { %v7431_v62 = vunpack.i.h.bf16 %v7429_v60  ;;  %v7430_v63 = vunpack.i.l.bf16 %v7429_v60 }
 0x38a   : > { %7438 = vrot.lane.b32.xlu0 %v7928_v61, %s7778_s11 }
 0x38b   : > { %v7121_v1 = vpack.c.bf16 %v7431_v62, %v7430_v63  ;;  %v429_v3 = vpop.permute.xlu1 %428 }
 0x38c   : > { %v7938_v5 = vpack.i.bf16 %v429_v3, %v427_v58 }
 0x38d   : > { %7123 = vmatprep.subr.msk.bf16.mxu0 %vm7934_vm5, %v7121_v1 }
 0x38e   : > { %7443 = vrot.lane.b32.xlu1 %v7938_v5, %s7778_s11  ;;  %7126 = vmatpush3.bf16.xpose.msk.msra.mxu0 %vm7934_vm5, %v7121_v1 }
 0x395   : > { %6660 = vmatmul.mubr.msk.f32.vlgmr.msra.gmra.mrb[2].mxu0 %vm434_vm4, %v6654_v51 }
 0x396   : > { %6673 = vmatprep.mubr.msk.f32.mxu0 %vm434_vm4, %v423_v57 }
 0x3f5   : > { %v7434_v6 = vpop.permute.xlu1 %7433 }
 0x3f6   : > { %v7436_v7 = vunpack.i.h.bf16 %v7434_v6  ;;  %v7435_v8 = vunpack.i.l.bf16 %v7434_v6 }
 0x3f8   : > { %v7127_v9 = vpack.c.bf16 %v7436_v7, %v7435_v8 }
 0x3fa   : > { %7129 = vmatprep.subr.msk.bf16.mxu1 %vm7934_vm5, %v7127_v9 }
 0x3fb   : > { %7132 = vmatpush3.bf16.xpose.msk.msra.mxu1 %vm7934_vm5, %v7127_v9 }
 0x3fc   : > { %v7439_v10 = vpop.permute.xlu0 %7438 }
 0x3fd   : > { %v7441_v11 = vunpack.i.h.bf16 %v7439_v10  ;;  %v7440_v12 = vunpack.i.l.bf16 %v7439_v10 }
 0x3ff   : > { %v7133_v13 = vpack.c.bf16 %v7441_v11, %v7440_v12 }
 0x400   : > { %v7444_v14 = vpop.permute.xlu1 %7443 }
 0x401   : > { %v7446_v17 = vunpack.i.h.bf16 %v7444_v14  ;;  %v7445_v18 = vunpack.i.l.bf16 %v7444_v14  ;;  %7135 = vmatprep.subr.msk.bf16.mxu0 %vm7934_vm5, %v7133_v13 }
 0x402   : > { %6667 = vmatmul.mubr.msk.f32.vlgmr.msra.gmra.mrb[2].mxu1 %vm434_vm4, %v421_v54  ;;  %7138 = vmatpush3.bf16.xpose.msk.msra.mxu0 %vm7934_vm5, %v7133_v13 }
 0x403   : > { %v7139_v19 = vpack.c.bf16 %v7446_v17, %v7445_v18  ;;  %6680 = vmatprep.mubr.msk.f32.mxu1 %vm434_vm4, %v427_v58  ;;  %v3369_v17 = vld [vmem:[%s8912_s1 + $0x2b0] sm:$0xff] }
 0x405   : > { %7141 = vmatprep.subr.msk.bf16.mxu1 %vm7934_vm5, %v7139_v19 }
 0x406   : > { %7144 = vmatpush3.bf16.xpose.msk.msra.mxu1 %vm7934_vm5, %v7139_v19 }
 0x409   : > { %6674 = vmatmul.mubr.msk.f32.vlgmr.msra.gmra.mrb[4].mxu0 %vm434_vm4, %v425_v59 }
 0x40d   : > { %6681 = vmatmul.mubr.msk.f32.vlgmr.msra.gmra.mrb[4].mxu1 %vm434_vm4, %v429_v3 }
 0x468   : > { %v6661_v20 = vpop.f32.mrb[2].mxu0 }
 0x469   : > { %v780_v21 = vmul.f32 0.35355338, %v6661_v20  ;;  %v509_v22 = vpop.f32.mrb[3].mxu0 }
 0x46a   : > { %v779_v23 = vmul.f32 0.35355338, %v509_v22 }
 0x46b   : > { %v792_v24 = vsel %vm791_vm6, %v780_v21, -inf }
 0x46c   : > { %793 = vmax.xlane.f32.xlu1 %v792_v24  ;;  %v788_v25 = vsel %vm787_vm7, %v779_v23, -inf }
 0x46d   : > { %789 = vmax.xlane.f32.xlu0 %v788_v25 }
 0x4d5   : > { %v6668_v26 = vpop.f32.mrb[2].mxu1 }
 0x4d6   : > { %v596_v27 = vpop.f32.mrb[3].mxu1  ;;  %v782_v29 = vmul.f32 0.35355338, %v6668_v26 }
 0x4d7   : > { %v781_v28 = vmul.f32 0.35355338, %v596_v27 }
 0x4d8   : > { %v798_v34 = vsel %vm791_vm6, %v782_v29, -inf }
 0x4d9   : > { %v795_v30 = vsel %vm787_vm7, %v781_v28, -inf }
 0x4da   : > { %796 = vmax.xlane.f32.xlu0 %v795_v30 }
 0x4dc   : > { %v6675_v31 = vpop.f32.mrb[4].mxu0 }
 0x4dd   : > { %v7967_v32 = vmul.f32 0.35355338, %v6675_v31  ;;  %v683_v33 = vpop.f32.mrb[5].mxu0 }
 0x4de   : > { %v783_v35 = vmul.f32 0.35355338, %v683_v33  ;;  %799 = vmax.xlane.f32.xlu0 %v798_v34 }
 0x4df   : > { %v804_v36 = vsel %vm791_vm6, %v7967_v32, -inf }
 0x4e0   : > { %v6682_v37 = vpop.f32.mrb[4].mxu1  ;;  %805 = vmax.xlane.f32.xlu1 %v804_v36  ;;  %v801_v38 = vsel %vm787_vm7, %v783_v35, -inf }
 0x4e1   : > { %v786_v39 = vmul.f32 0.35355338, %v6682_v37  ;;  %v770_v40 = vpop.f32.mrb[5].mxu1 }
 0x4e2   : > { %v7973_v41 = vmul.f32 0.35355338, %v770_v40  ;;  %802 = vmax.xlane.f32.xlu0 %v801_v38 }
 0x4e3   : > { %v810_v42 = vsel %vm791_vm6, %v786_v39, -inf }
 0x4e4   : > { %811 = vmax.xlane.f32.xlu1 %v810_v42  ;;  %v807_v43 = vsel %vm787_vm7, %v7973_v41, -inf }
 0x4e6   : > { %808 = vmax.xlane.f32.xlu0 %v807_v43 }
 0x4f9   : > { %v794_v44 = vpop.xlane.xlu1 %793 }
 0x4fa   : > { %v814_v45 = vsub.f32 %v780_v21, %v794_v44  ;;  %v790_v47 = vpop.xlane.xlu0 %789 }
 0x4fb   : > { %v813_v48 = vsub.f32 %v779_v23, %v790_v47 }
 0x4fc   : > { %v823_v46 = vmul.f32 1.442695, %v814_v45  ;;  %7448 = vrot.lane.b32.xlu0 %v7915_v53, %s7779_s17 }
 0x4fd   : > { %v821_v50 = vmul.f32 1.442695, %v813_v48 }
 0x4fe   : > { %7546 = vpow2.f32 %v823_v46 }
 0x4ff   : > { %7548 = vpow2.f32 %v821_v50 }
 0x508   : > { %v7980_v49 = vpop.eup %7546 }
 0x509   : > { %v840_v51 = vsel %vm791_vm6, %v7980_v49, 0.0  ;;  %v7549_v52 = vpop.eup %7548 }
 0x50a   : > { %841 = vadd.xlane.f32.xlu1 %v840_v51  ;;  %v837_v54 = vsel %vm787_vm7, %v7549_v52, 0.0 }
 0x51b   : > { %838 = vadd.xlane.f32.xlu0 %v837_v54 }
 0x567   : > { %v797_v55 = vpop.xlane.xlu0 %796 }
 0x568   : > { %v815_v57 = vsub.f32 %v781_v28, %v797_v55 }
 0x56a   : > { %v825_v58 = vmul.f32 1.442695, %v815_v57 }
 0x56b   : > { %v800_v59 = vpop.xlane.xlu0 %799 }
 0x56c   : > { %7550 = vpow2.f32 %v825_v58  ;;  %v816_v53 = vsub.f32 %v782_v29, %v800_v59 }
 0x56d   : > { %v806_v60 = vpop.xlane.xlu1 %805 }
 0x56e   : > { %v827_v62 = vmul.f32 1.442695, %v816_v53  ;;  %v818_v25 = vsub.f32 %v7967_v32, %v806_v60 }
 0x56f   : > { %v803_v63 = vpop.xlane.xlu0 %802 }
 0x570   : > { %7552 = vpow2.f32 %v827_v62  ;;  %v817_v1 = vsub.f32 %v783_v35, %v803_v63  ;;  %v831_v26 = vmul.f32 1.442695, %v818_v25 }
 0x571   : > { %v812_v3 = vpop.xlane.xlu1 %811 }
 0x572   : > { %v829_v6 = vmul.f32 1.442695, %v817_v1  ;;  %v820_v7 = vsub.f32 %v786_v39, %v812_v3 }
 0x573   : > { %v809_v8 = vpop.xlane.xlu0 %808 }
 0x574   : > { %7554 = vpow2.f32 %v829_v6  ;;  %v835_v9 = vmul.f32 1.442695, %v820_v7  ;;  %v819_v27 = vsub.f32 %v7973_v41, %v809_v8  ;;  %v276_v8 = vld [vmem:[%s8912_s1 + $0x68] sm:$0xff] }
 0x576   : > { %v7551_v10 = vpop.eup %7550  ;;  %7556 = vpow2.f32 %v835_v9  ;;  %v833_v28 = vmul.f32 1.442695, %v819_v27  ;;  %v275_v9 = vld [vmem:[%s8912_s1 + $0x60] sm:$0xff] }
 0x577   : > { %v7449_v11 = vpop.permute.xlu0 %7448  ;;  %v843_v12 = vsel %vm787_vm7, %v7551_v10, 0.0  ;;  %7558 = vpow2.f32 %v831_v26 }
 0x578   : > { %v7451_v13 = vunpack.i.h.bf16 %v7449_v11  ;;  %v7450_v14 = vunpack.i.l.bf16 %v7449_v11  ;;  %844 = vadd.xlane.f32.xlu0 %v843_v12  ;;  %7560 = vpow2.f32 %v833_v28 }
 0x57a   : > { %v7553_v18 = vpop.eup %7552  ;;  %v7145_v19 = vpack.c.bf16 %v7451_v13, %v7450_v14  ;;  %v277_v14 = vld [vmem:[%s8912_s1 + $0x70] sm:$0xff] }
 0x57b   : > { %v846_v20 = vsel %vm791_vm6, %v7553_v18, 0.0 }
 0x57c   : > { %847 = vadd.xlane.f32.xlu1 %v846_v20  ;;  %7147 = vmatprep.subr.msk.bf16.mxu0 %vm7986_vm10, %v7145_v19 }
 0x57d   : > { %7150 = vmatpush3.bf16.msk.msra.mxu0 %vm7986_vm10, %v7145_v19 }
 0x57e   : > { %v7555_v21 = vpop.eup %7554 }
 0x57f   : > { %v849_v22 = vsel %vm787_vm7, %v7555_v21, 0.0 }
 0x580   : > { %v7996_v23 = vpop.eup %7556  ;;  %850 = vadd.xlane.f32.xlu0 %v849_v22 }
 0x581   : > { %v858_v24 = vsel %vm791_vm6, %v7996_v23, 0.0  ;;  %v7559_v31 = vpop.eup %7558 }
 0x582   : > { %v852_v33 = vsel %vm791_vm6, %v7559_v31, 0.0  ;;  %v7561_v34 = vpop.eup %7560 }
 0x584   : > { %859 = vadd.xlane.f32.xlu0 %v858_v24 }
 0x58d   : > { %7453 = vrot.lane.b32.xlu1 %v7924_v56, %s7779_s17 }
 0x597   : > { %v842_v29 = vpop.xlane.xlu1 %841 }
 0x598   : > { %7562 = vrcp.f32 %v842_v29 }
 0x59a   : > { %7458 = vrot.lane.b32.xlu0 %v7928_v61, %s7779_s17  ;;  %v855_v61 = vsel %vm787_vm7, %v7561_v34, 0.0 }
 0x5a2   : > { %v7563_v56 = vpop.eup %7562 }
 0x5a3   : > { %v864_v36 = vmul.f32 %v7563_v56, %v7980_v49 }
 0x5a8   : > { %v839_v30 = vpop.xlane.xlu0 %838 }
 0x5a9   : > { %7564 = vrcp.f32 %v839_v30 }
 0x5b1   : > { %853 = vadd.xlane.f32.xlu1 %v852_v33 }
 0x5b3   : > { %v7565_v35 = vpop.eup %7564 }
 0x5b4   : > { %v862_v32 = vmul.f32 %v7565_v35, %v7549_v52 }
 0x5b5   : > { %856 = vadd.xlane.f32.xlu1 %v855_v61 }
 0x5b6   : > { %6687 = vmatprep.mubr.msk.f32.mxu0 %vm787_vm7, %v862_v32 }
 0x5b7   : > { %6688 = vmatmul.mubr.msk.f32.vlgmr.msra.gmra.mrb[6].mxu0 %vm787_vm7, %v864_v36 }
 0x5c6   : > { %7463 = vrot.lane.b32.xlu1 %v7938_v5, %s7779_s17 }
 0x605   : > { %v845_v37 = vpop.xlane.xlu0 %844 }
 0x606   : > { %7566 = vrcp.f32 %v845_v37 }
 0x609   : > { %v848_v38 = vpop.xlane.xlu1 %847 }
 0x60a   : > { %7568 = vrcp.f32 %v848_v38  ;;  %v282_v38 = vld [vmem:[%s8912_s1 + $0x98] sm:$0xff] }
 0x60d   : > { %v7454_v39 = vpop.permute.xlu1 %7453  ;;  %v851_v40 = vpop.xlane.xlu0 %850 }
 0x60e   : > { %v7456_v41 = vunpack.i.h.bf16 %v7454_v39  ;;  %v7455_v42 = vunpack.i.l.bf16 %v7454_v39  ;;  %7570 = vrcp.f32 %v851_v40  ;;  %v283_v39 = vld [vmem:[%s8912_s1 + $0xa0] sm:$0xff] }
 0x60f   : > { %v7169_v40 = vpack.c.bf16 %v283_v39, %v282_v38 }
 0x610   : > { %v7567_v43 = vpop.eup %7566  ;;  %v7151_v44 = vpack.c.bf16 %v7456_v41, %v7455_v42  ;;  %v284_v41 = vld [vmem:[%s8912_s1 + $0xa8] sm:$0xff]  ;;  %v285_v42 = vld [vmem:[%s8912_s1 + $0xb0] sm:$0xff] }
 0x611   : > { %v860_v45 = vpop.xlane.xlu0 %859  ;;  %v866_v46 = vmul.f32 %v7567_v43, %v7551_v10  ;;  %v7173_v43 = vpack.c.bf16 %v285_v42, %v284_v41 }
 0x612   : > { %7153 = vmatprep.subr.msk.bf16.mxu0 %vm7986_vm10, %v7151_v44 }
 0x613   : > { %7156 = vmatpush3.bf16.msk.msra.mxu0 %vm7986_vm10, %v7151_v44  ;;  %6694 = vmatprep.mubr.msk.f32.mxu0 %vm787_vm7, %v866_v46 }
 0x614   : > { %v7569_v5 = vpop.eup %7568 }
 0x615   : > { %v7459_v47 = vpop.permute.xlu0 %7458  ;;  %v868_v48 = vmul.f32 %v7569_v5, %v7553_v18  ;;  %v278_v18 = vld [vmem:[%s8912_s1 + $0x78] sm:$0xff] }
 0x616   : > { %v7461_v49 = vunpack.i.h.bf16 %v7459_v47  ;;  %v7460_v50 = vunpack.i.l.bf16 %v7459_v47 }
 0x617   : > { %6695 = vmatmul.mubr.msk.f32.vlgmr.msra.gmra.mrb[8].mxu0 %vm787_vm7, %v868_v48 }
 0x618   : > { %v7571_v51 = vpop.eup %7570  ;;  %v7157_v52 = vpack.c.bf16 %v7461_v49, %v7460_v50  ;;  %v6268_v50 = vld [vmem:[%s8912_s1 + $0x88] ss:$0 sm:$0xff] }
 0x619   : > { %v870_v54 = vmul.f32 %v7571_v51, %v7555_v21 }
 0x61a   : > { %7159 = vmatprep.subr.msk.bf16.mxu1 %vm7986_vm10, %v7157_v52 }
 0x61b   : > { %7162 = vmatpush3.bf16.msk.msra.mxu1 %vm7986_vm10, %v7157_v52  ;;  %6701 = vmatprep.mubr.msk.f32.mxu1 %vm787_vm7, %v870_v54 }
 0x61c   : > { %6711 = vmatprep.subr.mxu1 %v276_v8 }
 0x63e   : > { %v854_v55 = vpop.xlane.xlu1 %853 }
 0x63f   : > { %7572 = vrcp.f32 %v854_v55  ;;  %v6269_v55 = vld [vmem:[%s8912_s1 + $0x90] ss:$0 sm:$0xff] }
 0x640   : > { %7574 = vrcp.f32 %v860_v45 }
 0x642   : > { %v857_v57 = vpop.xlane.xlu1 %856 }
 0x643   : > { %7576 = vrcp.f32 %v857_v57 }
 0x646   : > { %v7464_v58 = vpop.permute.xlu1 %7463 }
 0x647   : > { %v7466_v59 = vunpack.i.h.bf16 %v7464_v58  ;;  %v7465_v53 = vunpack.i.l.bf16 %v7464_v58 }
 0x649   : > { %v7573_v60 = vpop.eup %7572  ;;  %v7163_v62 = vpack.c.bf16 %v7466_v59, %v7465_v53 }
 0x64a   : > { %v872_v63 = vmul.f32 %v7573_v60, %v7559_v31  ;;  %v7575_v1 = vpop.eup %7574  ;;  %v287_v60 = vld [vmem:[%s8912_s1 + $0xc0] sm:$0xff] }
 0x64b   : > { %7165 = vmatprep.subr.msk.bf16.mxu0 %vm7986_vm10, %v7163_v62  ;;  %v876_v7 = vmul.f32 %v7575_v1, %v7996_v23  ;;  %v6267_v23 = vld [vmem:[%s8912_s1 + $0x80] ss:$0 sm:$0xff]  ;;  %v289_v1 = vld [vmem:[%s8912_s1 + $0xd0] sm:$0xff] }
 0x64c   : > { %6702 = vmatmul.mubr.msk.f32.vlgmr.msra.gmra.mrb[6].mxu1 %vm787_vm7, %v872_v63  ;;  %7168 = vmatpush3.bf16.msk.msra.mxu0 %vm7986_vm10, %v7163_v62  ;;  %v288_v62 = vld [vmem:[%s8912_s1 + $0xc8] sm:$0xff] }
 0x64d   : > { %v7577_v3 = vpop.eup %7576  ;;  %6712 = vmatpush3.msra.mxu1 %v276_v8  ;;  %7170 = vmatprep.subr.bf16.mxu0 %v7169_v40  ;;  %v7177_v63 = vpack.c.bf16 %v288_v62, %v287_v60  ;;  %v292_v8 = vld [vmem:[%s8912_s1 + $0xe8] sm:$0xff] }
 0x64e   : > { %v874_v6 = vmul.f32 %v7577_v3, %v7561_v34  ;;  %6716 = vmatprep.subr.mxu1 %v275_v9  ;;  %v290_v3 = vld [vmem:[%s8912_s1 + $0xd8] sm:$0xff] }
 0x650   : > { %6708 = vmatprep.mubr.msk.f32.mxu0 %vm787_vm7, %v874_v6  ;;  %v7181_v6 = vpack.c.bf16 %v290_v3, %v289_v1  ;;  %v6277_v1 = vld [vmem:[%s8912_s1 + $0x110] ss:$0 sm:$0xff] }
 0x651   : > { %6709 = vmatmul.mubr.msk.f32.vlgmr.msra.gmra.mrb[10].mxu0 %vm787_vm7, %v876_v7  ;;  %v291_v7 = vld [vmem:[%s8912_s1 + $0xe0] sm:$0xff] }
 0x652   : > { %7172 = vmatpush3.bf16.msra.mxu0 %v7169_v40 }
 0x653   : > { %7174 = vmatprep.subr.bf16.mxu0 %v7173_v43 }
 0x656   : > { %7176 = vmatpush3.bf16.msra.mxu0 %v7173_v43 }
 0x657   : > { %7178 = vmatprep.subr.bf16.mxu0 %v7177_v63 }
 0x68a   : > { %v6689_v10 = vpop.f32.mrb[6].mxu0 }
 0x68b   : > { %v957_v11 = vpop.f32.mrb[7].mxu0 }
 0x6ea   : > { %v6696_v12 = vpop.f32.mrb[8].mxu0 }
 0x6eb   : > { %v1045_v13 = vpop.f32.mrb[9].mxu0 }
 0x6ec   : > { %6713 = vmatprep.mubr.msk.f32.mxu1 %vm434_vm4, %v1045_v13  ;;  %v6270_v13 = vld [vmem:[%s8912_s1 + $0xb8] ss:$0 sm:$0xff] }
 0x6ed   : > { %6714 = vmatmul.mubr.msk.f32.vlgmr.msra.gmra.mrb[8].mxu1 %vm434_vm4, %v6696_v12 }
 0x6ee   : > { %6718 = vmatprep.mubr.msk.f32.mxu1 %vm434_vm4, %v957_v11  ;;  %6717 = vmatpush3.msra.mxu1 %v275_v9  ;;  %v7185_v9 = vpack.c.bf16 %v292_v8, %v291_v7  ;;  %v294_v11 = vld [vmem:[%s8912_s1 + $0xf8] sm:$0xff] }
 0x6ef   : > { %6721 = vmatprep.subr.mxu1 %v277_v14 }
 0x6f5   : > { %6719 = vmatmul.mubr.msk.f32.vlgmr.msra.gmra.mrb[8].mxu1 %vm434_vm4, %v6689_v10  ;;  %v293_v10 = vld [vmem:[%s8912_s1 + $0xf0] sm:$0xff] }
 0x6f6   : > { %6722 = vmatpush3.msra.mxu1 %v277_v14  ;;  %v7189_v12 = vpack.c.bf16 %v294_v11, %v293_v10 }
 0x6f7   : > { %6726 = vmatprep.subr.mxu1 %v278_v18 }
 0x71f   : > { %v6703_v19 = vpop.f32.mrb[6].mxu1 }
 0x720   : > { %v1133_v20 = vpop.f32.mrb[7].mxu1 }
 0x721   : > { %6723 = vmatprep.mubr.msk.f32.mxu1 %vm434_vm4, %v1133_v20 }
 0x722   : > { %6724 = vmatmul.mubr.msk.f32.vlgmr.msra.gmra.mrb[8].mxu1 %vm434_vm4, %v6703_v19 }
 0x723   : > { %6727 = vmatpush3.msra.mxu1 %v278_v18 }
 0x724   : > { %v6710_v21 = vpop.f32.mrb[10].mxu0 }
 0x725   : > { %v1221_v22 = vpop.f32.mrb[11].mxu0 }
 0x726   : > { %6728 = vmatprep.mubr.msk.f32.mxu1 %vm434_vm4, %v1221_v22 }
 0x72a   : > { %6729 = vmatmul.mubr.msk.f32.vlgmr.msra.gmra.mrb[8].mxu1 %vm434_vm4, %v6710_v21 }
 0x7fd   : > { %v6730_v24 = vpop.f32.mrb[8].mxu1 }
 0x7fe   : > { %v1559_v25 = vadd.f32 %v6730_v24, %v7882_v16  ;;  %v1547_v26 = vpop.f32.mrb[9].mxu1 }
 0x7ff   : > { %v1558_v27 = vadd.f32 %v1547_v26, %v7880_v15 }
 0x800   : > { %v8057_v28 = vadd.f32 %v6267_v23, %v1559_v25 }
 0x801   : > { %v8059_v29 = vadd.f32 %v6267_v23, %v1558_v27 }
 0x802   : > { %v1569_v30 = vsel %vm263_vm2, %v8057_v28, 0.0 }
 0x803   : > { %1570 = vadd.xlane.f32.xlu0 %v1569_v30  ;;  %v1566_v31 = vsel %vm261_vm3, %v8059_v29, 0.0 }
 0x804   : > { %1567 = vadd.xlane.f32.xlu1 %v1566_v31 }
 0x890   : > { %v1571_v33 = vpop.xlane.xlu0 %1570 }
 0x891   : > { %v1573_v34 = vmul.f32 0.03125, %v1571_v33  ;;  %v1568_v56 = vpop.xlane.xlu1 %1567 }
 0x892   : > { %v1572_v35 = vmul.f32 0.03125, %v1568_v56 }
 0x893   : > { %v1575_v16 = vsub.f32 %v8057_v28, %v1573_v34  ;;  %v6273_v34 = vld [vmem:[%s8912_s1 + $0x100] ss:$0 sm:$0xff] }
 0x894   : > { %v1574_v15 = vsub.f32 %v8059_v29, %v1572_v35 }
 0x895   : > { %v1577_v61 = vmul.f32 %v1575_v16, %v1575_v16 }
 0x896   : > { %v1576_v32 = vmul.f32 %v1574_v15, %v1574_v15 }
 0x897   : > { %v1581_v36 = vsel %vm263_vm2, %v1577_v61, 0.0 }
 0x898   : > { %1582 = vadd.xlane.f32.xlu1 %v1581_v36  ;;  %v1578_v37 = vsel %vm261_vm3, %v1576_v32, 0.0 }
 0x899   : > { %1579 = vadd.xlane.f32.xlu0 %v1578_v37 }
 0x925   : > { %v1583_v44 = vpop.xlane.xlu1 %1582 }
 0x926   : > { %v1585_v45 = vmul.f32 0.03125, %v1583_v44  ;;  %v1580_v46 = vpop.xlane.xlu0 %1579 }
 0x927   : > { %v1584_v5 = vmul.f32 0.03125, %v1580_v46  ;;  %v1789_v46 = vld [vmem:[%s8912_s1 + $0x118] sm:$0xff] }
 0x928   : > { %v1587_v47 = vadd.f32 1e-05, %v1585_v45 }
 0x929   : > { %v1586_v48 = vadd.f32 1e-05, %v1584_v5  ;;  %v1790_v5 = vld [vmem:[%s8912_s1 + $0x120] sm:$0xff] }
 0x92a   : > { %7578 = vrsqrt.f32 %v1587_v47  ;;  %v7193_v47 = vpack.c.bf16 %v1790_v5, %v1789_v46 }
 0x92b   : > { %7580 = vrsqrt.f32 %v1586_v48  ;;  %v1791_v48 = vld [vmem:[%s8912_s1 + $0x128] sm:$0xff] }
 0x92c   : > { %7194 = vmatprep.subr.bf16.mxu1 %v7193_v47 }
 0x92d   : > { %7196 = vmatpush3.bf16.msra.mxu1 %v7193_v47 }
 0x934   : > { %v7579_v49 = vpop.eup %7578 }
 0x935   : > { %v7581_v51 = vpop.eup %7580  ;;  %v1591_v52 = vmul.f32 %v7579_v49, %v1575_v16  ;;  %v1792_v49 = vld [vmem:[%s8912_s1 + $0x130] sm:$0xff] }
 0x936   : > { %v1590_v54 = vmul.f32 %v7581_v51, %v1574_v15 }
 0x937   : > { %v1597_v57 = vmul.f32 %v6268_v50, %v1591_v52 }
 0x938   : > { %v1596_v58 = vmul.f32 %v6268_v50, %v1590_v54  ;;  %v7197_v50 = vpack.c.bf16 %v1792_v49, %v1791_v48 }
 0x939   : > { %v1603_v53 = vadd.f32 %v6269_v55, %v1597_v57 }
 0x93a   : > { %v1602_v59 = vadd.f32 %v6269_v55, %v1596_v58  ;;  %7198 = vmatprep.subr.bf16.mxu1 %v7197_v50 }
 0x93b   : > { %7200 = vmatpush3.bf16.msra.mxu1 %v7197_v50 }
 0x93c   : > { %6739 = vmatprep.mubr.msk.f32.mxu0 %vm261_vm3, %v1602_v59 }
 0x93d   : > { %6740 = vmatmul.mubr.msk.f32.vlgmr.msra.gmra.mrb[12].mxu0 %vm261_vm3, %v1603_v53  ;;  %v6276_v53 = vld [vmem:[%s8912_s1 + $0x108] ss:$0 sm:$0xff] }
 0x93e   : > { %7180 = vmatpush3.bf16.msra.mxu0 %v7177_v63 }
 0x93f   : > { %7182 = vmatprep.subr.bf16.mxu0 %v7181_v6 }
 0x942   : > { %7184 = vmatpush3.bf16.msra.mxu0 %v7181_v6 }
 0x943   : > { %7186 = vmatprep.subr.bf16.mxu0 %v7185_v9 }
 0x946   : > { %7188 = vmatpush3.bf16.msra.mxu0 %v7185_v9 }
 0x947   : > { %7190 = vmatprep.subr.bf16.mxu0 %v7189_v12 }
 0x94a   : > { %7192 = vmatpush3.bf16.msra.mxu0 %v7189_v12 }
 0xa10   : > { %v6741_v14 = vpop.f32.mrb[12].mxu0 }
 0xa11   : > { %v1686_v18 = vadd.f32 %v6741_v14, %v6270_v13  ;;  %v1680_v19 = vpop.f32.mrb[13].mxu0 }
 0xa12   : > { %v1681_v20 = vadd.f32 %v6270_v13, %v1680_v19 }
 0xa13   : > { %v1692_v21 = vmul.f32 0.70710677, %v1686_v18  ;;  %v1690_v30 = vmul.f32 0.5, %v1686_v18 }
 0xa14   : > { %v1691_v22 = vmul.f32 0.70710677, %v1681_v20  ;;  %v1689_v26 = vmul.f32 0.5, %v1681_v20 }
 0xa15   : > { %7582 = verf.f32 %v1692_v21 }
 0xa16   : > { %7584 = verf.f32 %v1691_v22 }
 0xa1f   : > { %v7583_v23 = vpop.eup %7582 }
 0xa20   : > { %v7585_v24 = vpop.eup %7584  ;;  %v1696_v25 = vadd.f32 1.0, %v7583_v23 }
 0xa21   : > { %v1695_v27 = vadd.f32 1.0, %v7585_v24 }
 0xa22   : > { %v1698_v33 = vmul.f32 %v1696_v25, %v1690_v30 }
 0xa23   : > { %v1697_v31 = vmul.f32 %v1695_v27, %v1689_v26 }
 0xa25   : > { %6758 = vmatprep.mubr.msk.f32.mxu0 %vm1703_vm11, %v1697_v31 }
 0xa26   : > { %6759 = vmatmul.mubr.msk.f32.vlgmr.msra.gmra.mrb[14].mxu0 %vm1703_vm11, %v1698_v33 }
 0xaf9   : > { %v6760_v56 = vpop.f32.mrb[14].mxu0 }
 0xafa   : > { %v1782_v35 = vadd.f32 %v6760_v56, %v6273_v34  ;;  %v1776_v16 = vpop.f32.mrb[15].mxu0 }
 0xafb   : > { %v1777_v15 = vadd.f32 %v6273_v34, %v1776_v16 }
 0xafc   : > { %v8122_v61 = vadd.f32 %v1782_v35, %v8057_v28 }
 0xafd   : > { %v8125_v32 = vadd.f32 %v1777_v15, %v8059_v29 }
 0xafe   : > { %v1817_v36 = vsel %vm263_vm2, %v8122_v61, 0.0 }
 0xaff   : > { %1818 = vadd.xlane.f32.xlu1 %v1817_v36  ;;  %v1814_v37 = vsel %vm261_vm3, %v8125_v32, 0.0 }
 0xb00   : > { %1815 = vadd.xlane.f32.xlu0 %v1814_v37 }
 0xb8c   : > { %v1819_v38 = vpop.xlane.xlu1 %1818 }
 0xb8d   : > { %v1821_v39 = vmul.f32 0.03125, %v1819_v38  ;;  %v1816_v40 = vpop.xlane.xlu0 %1815 }
 0xb8e   : > { %v1820_v41 = vmul.f32 0.03125, %v1816_v40 }
 0xb8f   : > { %v1823_v42 = vsub.f32 %v8122_v61, %v1821_v39 }
 0xb90   : > { %v1822_v28 = vsub.f32 %v8125_v32, %v1820_v41 }
 0xb91   : > { %v1825_v43 = vmul.f32 %v1823_v42, %v1823_v42 }
 0xb92   : > { %v1824_v44 = vmul.f32 %v1822_v28, %v1822_v28 }
 0xb93   : > { %v1829_v29 = vsel %vm263_vm2, %v1825_v43, 0.0 }
 0xb94   : > { %1830 = vadd.xlane.f32.xlu1 %v1829_v29  ;;  %v1826_v45 = vsel %vm261_vm3, %v1824_v44, 0.0 }
 0xb95   : > { %1827 = vadd.xlane.f32.xlu0 %v1826_v45 }
 0xc21   : > { %v1831_v51 = vpop.xlane.xlu1 %1830 }
 0xc22   : > { %v1833_v52 = vmul.f32 0.03125, %v1831_v51  ;;  %v1828_v54 = vpop.xlane.xlu0 %1827 }
 0xc23   : > { %v1832_v55 = vmul.f32 0.03125, %v1828_v54 }
 0xc24   : > { %v1835_v57 = vadd.f32 1e-05, %v1833_v52 }
 0xc25   : > { %v1834_v58 = vadd.f32 1e-05, %v1832_v55 }
 0xc26   : > { %7586 = vrsqrt.f32 %v1835_v57 }
 0xc27   : > { %7588 = vrsqrt.f32 %v1834_v58 }
 0xc30   : > { %v7587_v59 = vpop.eup %7586 }
 0xc31   : > { %v7589_v60 = vpop.eup %7588  ;;  %v1839_v62 = vmul.f32 %v7587_v59, %v1823_v42 }
 0xc32   : > { %v1838_v63 = vmul.f32 %v7589_v60, %v1822_v28 }
 0xc33   : > { %v1845_v3 = vmul.f32 %v6276_v53, %v1839_v62 }
 0xc34   : > { %v1844_v6 = vmul.f32 %v6276_v53, %v1838_v63 }
 0xc35   : > { %v1851_v8 = vadd.f32 %v6277_v1, %v1845_v3 }
 0xc36   : > { %v1850_v7 = vadd.f32 %v6277_v1, %v1844_v6 }
 0xc38   : > { %6769 = vmatprep.mubr.msk.f32.mxu1 %vm261_vm3, %v1850_v7 }
 0xc39   : > { %6770 = vmatmul.mubr.msk.f32.vlgmr.msra.gmra.mrb[10].mxu1 %vm261_vm3, %v1851_v8 }
 0xd0c   : > { %v6771_v9 = vpop.f32.mrb[10].mxu1 }
 0xd0d   : > { %1937 = vrot.lane.b32.xlu1 %v6771_v9, %s7775_s8  ;;  %v1924_v10 = vpop.f32.mrb[11].mxu1 }
 0xd0e   : > { %1935 = vrot.lane.b32.xlu0 %v1924_v10, %s7775_s8  ;;  %6776 = vmatprep.mubr.msk.f32.mxu1 %vm434_vm4, %v1924_v10  ;;  %v8158_v11 = vpack.i.bf16 %v6771_v9, %v1924_v10 }
 0xd11   : > { %1939 = vrot.lane.b32.xlu1 %v1924_v10, %s7776_s9 }
 0xd12   : > { %1943 = vrot.lane.b32.xlu0 %v1924_v10, %s7777_s10 }
 0xd15   : > { %1941 = vrot.lane.b32.xlu1 %v6771_v9, %s7776_s9 }
 0xd19   : > { %1945 = vrot.lane.b32.xlu1 %v6771_v9, %s7777_s10 }
 0xd1d   : > { %7473 = vrot.lane.b32.xlu1 %v8158_v11, %s7778_s11 }
 0xd7f   : > { %v1938_v12 = vpop.permute.xlu1 %1937 }
 0xd80   : > { %v1936_v13 = vpop.permute.xlu0 %1935 }
 0xd81   : > { %v8166_v14 = vpack.i.bf16 %v1938_v12, %v1936_v13  ;;  %6783 = vmatprep.mubr.msk.f32.mxu0 %vm434_vm4, %v1936_v13 }
 0xd83   : > { %v1940_v18 = vpop.permute.xlu1 %1939  ;;  %7468 = vrot.lane.b32.xlu0 %v8166_v14, %s7778_s11 }
 0xd84   : > { %v1944_v21 = vpop.permute.xlu0 %1943 }
 0xd87   : > { %v1942_v19 = vpop.permute.xlu1 %1941 }
 0xd88   : > { %v8171_v20 = vpack.i.bf16 %v1942_v19, %v1940_v18 }
 0xd8a   : > { %7478 = vrot.lane.b32.xlu0 %v8171_v20, %s7778_s11 }
 0xd8b   : > { %v1946_v22 = vpop.permute.xlu1 %1945 }
 0xd8c   : > { %v8175_v23 = vpack.i.bf16 %v1946_v22, %v1944_v21 }
 0xd8e   : > { %7483 = vrot.lane.b32.xlu1 %v8175_v23, %s7778_s11 }
 0xd8f   : > { %v7474_v24 = vpop.permute.xlu1 %7473 }
 0xd90   : > { %v7476_v25 = vunpack.i.h.bf16 %v7474_v24  ;;  %v7475_v26 = vunpack.i.l.bf16 %v7474_v24 }
 0xd92   : > { %v7201_v27 = vpack.c.bf16 %v7476_v25, %v7475_v26 }
 0xd94   : > { %7203 = vmatprep.subr.msk.bf16.mxu1 %vm7934_vm5, %v7201_v27 }
 0xd95   : > { %7206 = vmatpush3.bf16.xpose.msk.msra.mxu1 %vm7934_vm5, %v7201_v27 }
 0xd9c   : > { %6777 = vmatmul.mubr.msk.f32.vlgmr.msra.gmra.mrb[12].mxu1 %vm434_vm4, %v6771_v9 }
 0xd9d   : > { %6790 = vmatprep.mubr.msk.f32.mxu1 %vm434_vm4, %v1940_v18 }
 0xdf5   : > { %v7469_v30 = vpop.permute.xlu0 %7468 }
 0xdf6   : > { %v7471_v31 = vunpack.i.h.bf16 %v7469_v30  ;;  %v7470_v33 = vunpack.i.l.bf16 %v7469_v30 }
 0xdf8   : > { %v7207_v34 = vpack.c.bf16 %v7471_v31, %v7470_v33 }
 0xdfa   : > { %7209 = vmatprep.subr.msk.bf16.mxu0 %vm7934_vm5, %v7207_v34 }
 0xdfb   : > { %7212 = vmatpush3.bf16.xpose.msk.msra.mxu0 %vm7934_vm5, %v7207_v34 }
 0xdfc   : > { %v7479_v56 = vpop.permute.xlu0 %7478 }
 0xdfd   : > { %v7481_v35 = vunpack.i.h.bf16 %v7479_v56  ;;  %v7480_v16 = vunpack.i.l.bf16 %v7479_v56 }
 0xdff   : > { %v7213_v15 = vpack.c.bf16 %v7481_v35, %v7480_v16 }
 0xe00   : > { %v7484_v36 = vpop.permute.xlu1 %7483 }
 0xe01   : > { %v7486_v37 = vunpack.i.h.bf16 %v7484_v36  ;;  %v7485_v38 = vunpack.i.l.bf16 %v7484_v36  ;;  %7215 = vmatprep.subr.msk.bf16.mxu1 %vm7934_vm5, %v7213_v15 }
 0xe02   : > { %6784 = vmatmul.mubr.msk.f32.vlgmr.msra.gmra.mrb[16].mxu0 %vm434_vm4, %v1938_v12  ;;  %7218 = vmatpush3.bf16.xpose.msk.msra.mxu1 %vm7934_vm5, %v7213_v15 }
 0xe03   : > { %v7219_v39 = vpack.c.bf16 %v7486_v37, %v7485_v38  ;;  %6797 = vmatprep.mubr.msk.f32.mxu0 %vm434_vm4, %v1944_v21 }
 0xe05   : > { %7221 = vmatprep.subr.msk.bf16.mxu0 %vm7934_vm5, %v7219_v39 }
 0xe06   : > { %7224 = vmatpush3.bf16.xpose.msk.msra.mxu0 %vm7934_vm5, %v7219_v39 }
 0xe09   : > { %6791 = vmatmul.mubr.msk.f32.vlgmr.msra.gmra.mrb[14].mxu1 %vm434_vm4, %v1942_v19 }
 0xe0d   : > { %6798 = vmatmul.mubr.msk.f32.vlgmr.msra.gmra.mrb[18].mxu0 %vm434_vm4, %v1946_v22 }
 0xe6f   : > { %v6778_v40 = vpop.f32.mrb[12].mxu1 }
 0xe70   : > { %v2025_v41 = vpop.f32.mrb[13].mxu1  ;;  %v2296_v47 = vmul.f32 0.35355338, %v6778_v40 }
 0xe71   : > { %v2295_v45 = vmul.f32 0.35355338, %v2025_v41 }
 0xe72   : > { %v2306_v58 = vsel %vm791_vm6, %v2296_v47, -inf }
 0xe73   : > { %v2303_v50 = vsel %vm787_vm7, %v2295_v45, -inf }
 0xed5   : > { %v6785_v42 = vpop.f32.mrb[16].mxu0 }
 0xed6   : > { %v2298_v28 = vmul.f32 0.35355338, %v6785_v42  ;;  %v2112_v43 = vpop.f32.mrb[17].mxu0 }
 0xed7   : > { %v2297_v44 = vmul.f32 0.35355338, %v2112_v43 }
 0xed8   : > { %v2312_v29 = vsel %vm791_vm6, %v2298_v28, -inf }
 0xed9   : > { %2313 = vmax.xlane.f32.xlu1 %v2312_v29  ;;  %v2309_v46 = vsel %vm787_vm7, %v2297_v44, -inf }
 0xeda   : > { %2310 = vmax.xlane.f32.xlu0 %v2309_v46 }
 0xedc   : > { %v6792_v5 = vpop.f32.mrb[14].mxu1 }
 0xedd   : > { %v2300_v48 = vmul.f32 0.35355338, %v6792_v5  ;;  %v2199_v49 = vpop.f32.mrb[15].mxu1 }
 0xede   : > { %2304 = vmax.xlane.f32.xlu0 %v2303_v50  ;;  %v2299_v54 = vmul.f32 0.35355338, %v2199_v49 }
 0xedf   : > { %v2318_v51 = vsel %vm791_vm6, %v2300_v48, -inf }
 0xee0   : > { %v6799_v52 = vpop.f32.mrb[18].mxu0  ;;  %2319 = vmax.xlane.f32.xlu1 %v2318_v51  ;;  %v2315_v60 = vsel %vm787_vm7, %v2299_v54, -inf }
 0xee1   : > { %v2302_v55 = vmul.f32 0.35355338, %v6799_v52  ;;  %v2286_v57 = vpop.f32.mrb[19].mxu0 }
 0xee2   : > { %2307 = vmax.xlane.f32.xlu0 %v2306_v58  ;;  %v2301_v53 = vmul.f32 0.35355338, %v2286_v57 }
 0xee3   : > { %v2324_v59 = vsel %vm791_vm6, %v2302_v55, -inf }
 0xee4   : > { %2325 = vmax.xlane.f32.xlu1 %v2324_v59  ;;  %v2321_v62 = vsel %vm787_vm7, %v2301_v53, -inf }
 0xee6   : > { %2316 = vmax.xlane.f32.xlu0 %v2315_v60 }
 0xeea   : > { %2322 = vmax.xlane.f32.xlu0 %v2321_v62 }
 0xf66   : > { %v2314_v3 = vpop.xlane.xlu1 %2313 }
 0xf67   : > { %v2311_v63 = vpop.xlane.xlu0 %2310  ;;  %v2330_v8 = vsub.f32 %v2298_v28, %v2314_v3 }
 0xf68   : > { %v2329_v1 = vsub.f32 %v2297_v44, %v2311_v63 }
 0xf69   : > { %v2341_v19 = vmul.f32 1.442695, %v2330_v8 }
 0xf6a   : > { %v2339_v9 = vmul.f32 1.442695, %v2329_v1 }
 0xf6b   : > { %v2305_v6 = vpop.xlane.xlu0 %2304 }
 0xf6c   : > { %v2327_v7 = vsub.f32 %v2295_v45, %v2305_v6 }
 0xf6d   : > { %v2320_v12 = vpop.xlane.xlu1 %2319 }
 0xf6e   : > { %v2335_v10 = vmul.f32 1.442695, %v2327_v7  ;;  %v2332_v21 = vsub.f32 %v2300_v48, %v2320_v12 }
 0xf6f   : > { %v2308_v13 = vpop.xlane.xlu0 %2307 }
 0xf70   : > { %7590 = vpow2.f32 %v2335_v10  ;;  %v2328_v18 = vsub.f32 %v2296_v47, %v2308_v13  ;;  %v2345_v24 = vmul.f32 1.442695, %v2332_v21 }
 0xf71   : > { %7592 = vpow2.f32 %v2339_v9  ;;  %v2326_v38 = vpop.xlane.xlu1 %2325 }
 0xf72   : > { %v2337_v22 = vmul.f32 1.442695, %v2328_v18  ;;  %v2334_v39 = vsub.f32 %v2302_v55, %v2326_v38 }
 0xf73   : > { %v2317_v15 = vpop.xlane.xlu0 %2316 }
 0xf74   : > { %7594 = vpow2.f32 %v2337_v22  ;;  %v2331_v36 = vsub.f32 %v2299_v54, %v2317_v15  ;;  %v2349_v41 = vmul.f32 1.442695, %v2334_v39  ;;  %v1796_v39 = vld [vmem:[%s8912_s1 + $0x150] sm:$0xff] }
 0xf75   : > { %7596 = vpow2.f32 %v2341_v19 }
 0xf76   : > { %7598 = vpow2.f32 %v2345_v24  ;;  %v2343_v37 = vmul.f32 1.442695, %v2331_v36  ;;  %v1795_v36 = vld [vmem:[%s8912_s1 + $0x148] sm:$0xff] }
 0xf77   : > { %v2323_v40 = vpop.xlane.xlu0 %2322 }
 0xf78   : > { %7600 = vpow2.f32 %v2343_v37  ;;  %v2333_v42 = vsub.f32 %v2301_v53, %v2323_v40 }
 0xf79   : > { %7602 = vpow2.f32 %v2349_v41 }
 0xf7a   : > { %v7591_v25 = vpop.eup %7590  ;;  %v2347_v28 = vmul.f32 1.442695, %v2333_v42  ;;  %v3346_v42 = vld [vmem:[%s8912_s1 + $0x1f8] sm:$0xff] }
 0xf7b   : > { %v2351_v26 = vsel %vm787_vm7, %v7591_v25, 0.0  ;;  %v7593_v27 = vpop.eup %7592 }
 0xf7c   : > { %2352 = vadd.xlane.f32.xlu0 %v2351_v26  ;;  %v2357_v33 = vsel %vm787_vm7, %v7593_v27, 0.0  ;;  %7604 = vpow2.f32 %v2347_v28  ;;  %v3347_v28 = vld [vmem:[%s8912_s1 + $0x200] sm:$0xff] }
 0xf7e   : > { %v8210_v30 = vpop.eup %7594 }
 0xf7f   : > { %v2354_v31 = vsel %vm791_vm6, %v8210_v30, 0.0  ;;  %v7597_v34 = vpop.eup %7596 }
 0xf80   : > { %2355 = vadd.xlane.f32.xlu1 %v2354_v31  ;;  %2358 = vadd.xlane.f32.xlu0 %v2357_v33  ;;  %v2360_v56 = vsel %vm791_vm6, %v7597_v34, 0.0  ;;  %v8216_v35 = vpop.eup %7598 }
 0xf81   : > { %v2366_v16 = vsel %vm791_vm6, %v8216_v35, 0.0 }
 0xf82   : > { %v7601_v43 = vpop.eup %7600 }
 0xf83   : > { %v2363_v44 = vsel %vm787_vm7, %v7601_v43, 0.0 }
 0xf84   : > { %2361 = vadd.xlane.f32.xlu1 %v2360_v56  ;;  %v1794_v56 = vld [vmem:[%s8912_s1 + $0x140] sm:$0xff] }
 0xf88   : > { %2367 = vadd.xlane.f32.xlu1 %v2366_v16 }
 0xf96   : > { %7488 = vrot.lane.b32.xlu0 %v8166_v14, %s7779_s17  ;;  %v8225_v14 = vpop.eup %7602 }
 0xf97   : > { %v8229_v29 = vpop.eup %7604 }
 0xf98   : > { %v2369_v45 = vsel %vm787_vm7, %v8229_v29, 0.0 }
 0xf99   : > { %7493 = vrot.lane.b32.xlu1 %v8158_v11, %s7779_s17  ;;  %v2372_v11 = vsel %vm791_vm6, %v8225_v14, 0.0 }
 0xfb5   : > { %2364 = vadd.xlane.f32.xlu0 %v2363_v44  ;;  %v7274_v44 = vpack.c.bf16 %v3347_v28, %v3346_v42 }
 0xfbd   : > { %2373 = vadd.xlane.f32.xlu1 %v2372_v11  ;;  %v3348_v11 = vld [vmem:[%s8912_s1 + $0x208] sm:$0xff] }
 0xfc1   : > { %2370 = vadd.xlane.f32.xlu1 %v2369_v45 }
 0xfcb   : > { %7498 = vrot.lane.b32.xlu0 %v8171_v20, %s7779_s17 }
 0xfd2   : > { %7503 = vrot.lane.b32.xlu1 %v8175_v23, %s7779_s17 }
0x1009   : > { %v2353_v46 = vpop.xlane.xlu0 %2352 }
0x100a   : > { %7606 = vrcp.f32 %v2353_v46  ;;  %v8304_v46 = vld [vmem:[%s8912_s1 + $0x1f0] sm:$0xf] }
0x100d   : > { %v2356_v5 = vpop.xlane.xlu1 %2355  ;;  %v2359_v47 = vpop.xlane.xlu0 %2358 }
0x100e   : > { %7608 = vrcp.f32 %v2359_v47 }
0x1011   : > { %v2362_v48 = vpop.xlane.xlu1 %2361  ;;  %v7489_v49 = vpop.permute.xlu0 %7488 }
0x1012   : > { %7610 = vrcp.f32 %v2362_v48  ;;  %v7491_v50 = vunpack.i.h.bf16 %v7489_v49  ;;  %v7490_v51 = vunpack.i.l.bf16 %v7489_v49 }
0x1013   : > { %7612 = vrcp.f32 %v2356_v5  ;;  %v6316_v5 = vld [vmem:[%s8912_s1 + $0x158] ss:$0 sm:$0xff] }
0x1014   : > { %v7607_v52 = vpop.eup %7606  ;;  %v7231_v54 = vpack.c.bf16 %v7491_v50, %v7490_v51 }
0x1015   : > { %v2368_v55 = vpop.xlane.xlu1 %2367  ;;  %v2376_v57 = vmul.f32 %v7607_v52, %v7591_v25 }
0x1016   : > { %7233 = vmatprep.subr.msk.bf16.mxu0 %vm7986_vm10, %v7231_v54  ;;  %7614 = vrcp.f32 %v2368_v55 }
0x1017   : > { %6804 = vmatprep.mubr.msk.f32.mxu1 %vm787_vm7, %v2376_v57  ;;  %7236 = vmatpush3.bf16.msk.msra.mxu0 %vm7986_vm10, %v7231_v54 }
0x1018   : > { %v7609_v20 = vpop.eup %7608 }
0x1019   : > { %v7494_v23 = vpop.permute.xlu1 %7493  ;;  %v2380_v53 = vmul.f32 %v7609_v20, %v7593_v27 }
0x101a   : > { %v7496_v58 = vunpack.i.h.bf16 %v7494_v23  ;;  %v7495_v59 = vunpack.i.l.bf16 %v7494_v23 }
0x101b   : > { %6811 = vmatprep.mubr.msk.f32.mxu0 %vm787_vm7, %v2380_v53 }
0x101c   : > { %v7611_v60 = vpop.eup %7610  ;;  %v7225_v62 = vpack.c.bf16 %v7496_v58, %v7495_v59 }
0x101d   : > { %v7613_v63 = vpop.eup %7612  ;;  %v2382_v1 = vmul.f32 %v7611_v60, %v7597_v34 }
0x101e   : > { %7227 = vmatprep.subr.msk.bf16.mxu1 %vm7986_vm10, %v7225_v62  ;;  %v2378_v3 = vmul.f32 %v7613_v63, %v8210_v30 }
0x101f   : > { %7230 = vmatpush3.bf16.msk.msra.mxu1 %vm7986_vm10, %v7225_v62  ;;  %6812 = vmatmul.mubr.msk.f32.vlgmr.msra.gmra.mrb[20].mxu0 %vm787_vm7, %v2382_v1 }
0x1020   : > { %v7615_v13 = vpop.eup %7614 }
0x1021   : > { %v2386_v22 = vmul.f32 %v7615_v13, %v8216_v35  ;;  %v1793_v35 = vld [vmem:[%s8912_s1 + $0x138] sm:$0xff] }
0x1022   : > { %6805 = vmatmul.mubr.msk.f32.vlgmr.msra.gmra.mrb[16].mxu1 %vm787_vm7, %v2378_v3 }
0x1042   : > { %v2365_v6 = vpop.xlane.xlu0 %2364 }
0x1043   : > { %7616 = vrcp.f32 %v2365_v6 }
0x1046   : > { %v7499_v7 = vpop.permute.xlu0 %7498 }
0x1047   : > { %v7501_v8 = vunpack.i.h.bf16 %v7499_v7  ;;  %v7500_v9 = vunpack.i.l.bf16 %v7499_v7 }
0x1049   : > { %v7237_v10 = vpack.c.bf16 %v7501_v8, %v7500_v9 }
0x104a   : > { %v2374_v12 = vpop.xlane.xlu1 %2373 }
0x104b   : > { %7239 = vmatprep.subr.msk.bf16.mxu1 %vm7986_vm10, %v7237_v10  ;;  %7618 = vrcp.f32 %v2374_v12  ;;  %v1801_v12 = vld [vmem:[%s8912_s1 + $0x178] sm:$0xff] }
0x104c   : > { %7242 = vmatpush3.bf16.msk.msra.mxu1 %vm7986_vm10, %v7237_v10  ;;  %v1800_v10 = vld [vmem:[%s8912_s1 + $0x170] sm:$0xff] }
0x104d   : > { %v7617_v18 = vpop.eup %7616  ;;  %6828 = vmatprep.subr.mxu1 %v1794_v56  ;;  %v7249_v13 = vpack.c.bf16 %v1801_v12, %v1800_v10 }
0x104e   : > { %v2371_v19 = vpop.xlane.xlu1 %2370  ;;  %v2384_v21 = vmul.f32 %v7617_v18, %v7601_v43  ;;  %v1802_v18 = vld [vmem:[%s8912_s1 + $0x180] sm:$0xff] }
0x104f   : > { %7620 = vrcp.f32 %v2371_v19  ;;  %v1803_v19 = vld [vmem:[%s8912_s1 + $0x188] sm:$0xff] }
0x1050   : > { %6818 = vmatprep.mubr.msk.f32.mxu1 %vm787_vm7, %v2384_v21  ;;  %v7253_v21 = vpack.c.bf16 %v1803_v19, %v1802_v18 }
0x1051   : > { %6819 = vmatmul.mubr.msk.f32.vlgmr.msra.gmra.mrb[18].mxu1 %vm787_vm7, %v2386_v22 }
0x1052   : > { %v7504_v24 = vpop.permute.xlu1 %7503  ;;  %6829 = vmatpush3.msra.mxu1 %v1794_v56  ;;  %v6317_v56 = vld [vmem:[%s8912_s1 + $0x160] ss:$0 sm:$0xff] }
0x1053   : > { %v7506_v25 = vunpack.i.h.bf16 %v7504_v24  ;;  %v7505_v26 = vunpack.i.l.bf16 %v7504_v24  ;;  %6833 = vmatprep.subr.mxu1 %v1793_v35 }
0x1055   : > { %v7243_v27 = vpack.c.bf16 %v7506_v25, %v7505_v26  ;;  %v7619_v30 = vpop.eup %7618 }
0x1056   : > { %v2390_v34 = vmul.f32 %v7619_v30, %v8225_v14 }
0x1057   : > { %7245 = vmatprep.subr.msk.bf16.mxu0 %vm7986_vm10, %v7243_v27 }
0x1058   : > { %7248 = vmatpush3.bf16.msk.msra.mxu0 %vm7986_vm10, %v7243_v27 }
0x1059   : > { %v7621_v31 = vpop.eup %7620  ;;  %7250 = vmatprep.subr.bf16.mxu0 %v7249_v13 }
0x105a   : > { %v2388_v33 = vmul.f32 %v7621_v31, %v8229_v29  ;;  %v3349_v29 = vld [vmem:[%s8912_s1 + $0x210] sm:$0xff] }
0x105b   : > { %v7277_v45 = vpack.c.bf16 %v3349_v29, %v3348_v11 }
0x105c   : > { %6825 = vmatprep.mubr.msk.f32.mxu0 %vm787_vm7, %v2388_v33 }
0x105d   : > { %6826 = vmatmul.mubr.msk.f32.vlgmr.msra.gmra.mrb[22].mxu0 %vm787_vm7, %v2390_v34 }
0x105e   : > { %7252 = vmatpush3.bf16.msra.mxu0 %v7249_v13 }
0x105f   : > { %7254 = vmatprep.subr.bf16.mxu0 %v7253_v21 }
0x1062   : > { %7256 = vmatpush3.bf16.msra.mxu0 %v7253_v21 }
0x10f2   : > { %v6813_v16 = vpop.f32.mrb[20].mxu0 }
0x10f3   : > { %v2558_v15 = vpop.f32.mrb[21].mxu0 }
0x10f4   : > { %6830 = vmatprep.mubr.msk.f32.mxu1 %vm434_vm4, %v2558_v15 }
0x10f5   : > { %v6806_v37 = vpop.f32.mrb[16].mxu1  ;;  %6831 = vmatmul.mubr.msk.f32.vlgmr.msra.gmra.mrb[20].mxu1 %vm434_vm4, %v6813_v16  ;;  %v6318_v16 = vld [vmem:[%s8912_s1 + $0x168] ss:$0 sm:$0xff] }
0x10f6   : > { %v2470_v38 = vpop.f32.mrb[17].mxu1  ;;  %6834 = vmatpush3.msra.mxu1 %v1793_v35 }
0x10f7   : > { %6835 = vmatprep.mubr.msk.f32.mxu1 %vm434_vm4, %v2470_v38  ;;  %6838 = vmatprep.subr.mxu1 %v1795_v36 }
0x10fd   : > { %6836 = vmatmul.mubr.msk.f32.vlgmr.msra.gmra.mrb[20].mxu1 %vm434_vm4, %v6806_v37 }
0x10fe   : > { %6839 = vmatpush3.msra.mxu1 %v1795_v36 }
0x10ff   : > { %6843 = vmatprep.subr.mxu1 %v1796_v39 }
0x1124   : > { %v6820_v40 = vpop.f32.mrb[18].mxu1 }
0x1125   : > { %v2646_v41 = vpop.f32.mrb[19].mxu1 }
0x1126   : > { %6840 = vmatprep.mubr.msk.f32.mxu1 %vm434_vm4, %v2646_v41  ;;  %v3340_v41 = vlaneseq }
0x1127   : > { %6841 = vmatmul.mubr.msk.f32.vlgmr.msra.gmra.mrb[20].mxu1 %vm434_vm4, %v6820_v40 }
0x1128   : > { %6844 = vmatpush3.msra.mxu1 %v1796_v39  ;;  %v3341_v42 = vshrl.u32 %v3340_v41, 7  ;;  %v3343_v28 = vand.u32 127, %v3340_v41 }
0x1129   : > { %7273 = vmatprep.subr.bf16.mxu1 %v7772_v2 }
0x112a   : > { %vm3344_vm12 = vcmp.le.s32.totalorder %v3343_v28, %v3341_v42 }
0x1130   : > { %v6827_v43 = vpop.f32.mrb[22].mxu0 }
0x1131   : > { %v2734_v14 = vpop.f32.mrb[23].mxu0 }
0x1132   : > { %6845 = vmatprep.mubr.msk.f32.mxu1 %vm434_vm4, %v2734_v14 }
0x1133   : > { %6846 = vmatmul.mubr.msk.f32.vlgmr.msra.gmra.mrb[20].mxu1 %vm434_vm4, %v6827_v43 }
0x1134   : > { %7275 = vmatpush3.bf16.msra.mxu1 %v7274_v44  ;;  %6886 = vmatprep.mubr.msk.f32.mxu1 %vm7773_vm0, %v7774_v4  ;;  %v7781_v44 = vmov -1e+30  }
0x1135   : > { %7276 = vmatprep.subr.bf16.mxu1 %v7772_v2  ;;  %v8385_v14 = vsel %vm3344_vm12, 0.0, %v7781_v44 }
0x1138   : > { %7278 = vmatpush3.bf16.msra.mxu1 %v7277_v45 }
0x1139   : > { %6889 = vmatprep.subr.mxu1 %v7774_v4 }
0x113b   : > { %6887 = vmatmul.mubr.msk.f32.vlgmr.msra.gmra.mrb[22].mxu1 %vm261_vm3, %v8304_v46 }
0x113c   : > { %6891 = vmatprep.mubr.msk.f32.mxu1 %vm7773_vm0, %v7774_v4 }
0x1206   : > { %v6847_v47 = vpop.f32.mrb[20].mxu1 }
0x1207   : > { %v3072_v48 = vadd.f32 %v6847_v47, %v8122_v61  ;;  %v3060_v49 = vpop.f32.mrb[21].mxu1  ;;  %v6327_v61 = vld [vmem:[%s8912_s1 + $0x218] ss:$0 sm:$0xff] }
0x1208   : > { %v3071_v50 = vadd.f32 %v3060_v49, %v8125_v32  ;;  %v1805_v47 = vld [vmem:[%s8912_s1 + $0x198] sm:$0xff] }
0x1209   : > { %v8316_v51 = vadd.f32 %v6316_v5, %v3072_v48  ;;  %v1806_v48 = vld [vmem:[%s8912_s1 + $0x1a0] sm:$0xff] }
0x120a   : > { %v8318_v52 = vadd.f32 %v6316_v5, %v3071_v50  ;;  %v7257_v49 = vpack.c.bf16 %v1806_v48, %v1805_v47  ;;  %v1807_v50 = vld [vmem:[%s8912_s1 + $0x1a8] sm:$0xff] }
0x120b   : > { %v3082_v54 = vsel %vm263_vm2, %v8316_v51, 0.0 }
0x120c   : > { %3083 = vadd.xlane.f32.xlu1 %v3082_v54  ;;  %v3079_v55 = vsel %vm261_vm3, %v8318_v52, 0.0  ;;  %7258 = vmatprep.subr.bf16.mxu0 %v7257_v49  ;;  %v1808_v54 = vld [vmem:[%s8912_s1 + $0x1b0] sm:$0xff] }
0x120d   : > { %3080 = vadd.xlane.f32.xlu0 %v3079_v55  ;;  %v7261_v55 = vpack.c.bf16 %v1808_v54, %v1807_v50 }
0x120e   : > { %v3464_v57 = vpop.f32.mrb[22].mxu1 }
0x120f   : > { %v6888_v20 = vpop.f32.mrb[23].mxu1  ;;  %v8327_v23 = vadd.f32 %v6327_v61, %v3464_v57  ;;  %v1809_v57 = vld [vmem:[%s8912_s1 + $0x1b8] sm:$0xff] }
0x1210   : > { %v1810_v20 = vld [vmem:[%s8912_s1 + $0x1c0] sm:$0xff] }
0x1211   : > { %v7265_v61 = vpack.c.bf16 %v1810_v20, %v1809_v57 }
0x121d   : > { %3471 = vrot.lane.b32.xlu1 %v8327_v23, %s7776_s9 }
0x1221   : > { %3473 = vrot.lane.b32.xlu1 %v8327_v23, %s7777_s10 }
0x1225   : > { %3475 = vrot.lane.b32.xlu1 %v8327_v23, %s7778_s11 }
0x1299   : > { %v3084_v32 = vpop.xlane.xlu1 %3083 }
0x129a   : > { %v3086_v58 = vmul.f32 0.03125, %v3084_v32  ;;  %v3081_v59 = vpop.xlane.xlu0 %3080  ;;  %v1811_v32 = vld [vmem:[%s8912_s1 + $0x1c8] sm:$0xff] }
0x129b   : > { %v3085_v53 = vmul.f32 0.03125, %v3081_v59 }
0x129c   : > { %v3088_v60 = vsub.f32 %v8316_v51, %v3086_v58  ;;  %v1812_v58 = vld [vmem:[%s8912_s1 + $0x1d0] sm:$0xff] }
0x129d   : > { %v3087_v62 = vsub.f32 %v8318_v52, %v3085_v53  ;;  %v8337_v63 = vpop.permute.xlu1 %3471  ;;  %v7269_v59 = vpack.c.bf16 %v1812_v58, %v1811_v32 }
0x129e   : > { %3627 = vrot.lane.b32.xlu1 %v8337_v63, %s7778_s11  ;;  %v3090_v7 = vmul.f32 %v3088_v60, %v3088_v60 }
0x129f   : > { %v3089_v1 = vmul.f32 %v3087_v62, %v3087_v62 }
0x12a0   : > { %v3094_v9 = vsel %vm263_vm2, %v3090_v7, 0.0  ;;  %v6319_v7 = vld [vmem:[%s8912_s1 + $0x190] ss:$0 sm:$0xff] }
0x12a1   : > { %v8341_v3 = vpop.permute.xlu1 %3473  ;;  %v3091_v6 = vsel %vm261_vm3, %v3089_v1, 0.0 }
0x12a2   : > { %3092 = vadd.xlane.f32.xlu0 %v3091_v6 }
0x12a5   : > { %v3476_v8 = vpop.permute.xlu1 %3475 }
0x12a6   : > { %6890 = vmatpush3.xpose.msk.msra.mxu1 %vm434_vm4, %v3476_v8  ;;  %3095 = vadd.xlane.f32.xlu0 %v3094_v9 }
0x12a7   : > { %6899 = vmatprep.subr.mxu1 %v7774_v4 }
0x12a9   : > { %6892 = vmatmul.mubr.msk.f32.vlgmr.msra.gmra.mrb[24].mxu1 %vm434_vm4, %v8327_v23 }
0x12aa   : > { %6901 = vmatprep.mubr.msk.f32.mxu1 %vm7773_vm0, %v7774_v4 }
0x12bc   : > { %3469 = vrot.lane.b32.xlu0 %v8327_v23, %s7775_s8 }
0x1310   : > { %v3628_v22 = vpop.permute.xlu1 %3627 }
0x1311   : > { %6900 = vmatpush3.xpose.msk.msra.mxu1 %vm434_vm4, %v3628_v22 }
0x1312   : > { %6909 = vmatprep.subr.mxu1 %v7774_v4 }
0x1314   : > { %6902 = vmatmul.mubr.msk.f32.vlgmr.msra.gmra.mrb[26].mxu1 %vm434_vm4, %v8337_v63 }
0x1315   : > { %6911 = vmatprep.mubr.msk.f32.mxu1 %vm7773_vm0, %v7774_v4 }
0x132f   : > { %v3093_v24 = vpop.xlane.xlu0 %3092 }
0x1330   : > { %v3097_v25 = vmul.f32 0.03125, %v3093_v24 }
0x1332   : > { %v3099_v26 = vadd.f32 1e-05, %v3097_v25 }
0x1333   : > { %v3096_v27 = vpop.xlane.xlu0 %3095 }
0x1334   : > { %7622 = vrsqrt.f32 %v3099_v26  ;;  %v3098_v30 = vmul.f32 0.03125, %v3096_v27 }
0x1336   : > { %v3100_v31 = vadd.f32 1e-05, %v3098_v30 }
0x1337   : > { %v8371_v33 = vpop.permute.xlu0 %3469 }
0x1338   : > { %7624 = vrsqrt.f32 %v3100_v31  ;;  %3551 = vrot.lane.b32.xlu0 %v8371_v33, %s7778_s11 }
0x133c   : > { %3703 = vrot.lane.b32.xlu0 %v8341_v3, %s7778_s11 }
0x133e   : > { %v7623_v34 = vpop.eup %7622 }
0x133f   : > { %v3103_v35 = vmul.f32 %v7623_v34, %v3087_v62 }
0x1341   : > { %v3109_v15 = vmul.f32 %v6317_v56, %v3103_v35 }
0x1342   : > { %v7625_v36 = vpop.eup %7624 }
0x1343   : > { %v3104_v37 = vmul.f32 %v7625_v36, %v3088_v60  ;;  %v3115_v38 = vadd.f32 %v6318_v16, %v3109_v15 }
0x1345   : > { %v3110_v39 = vmul.f32 %v6317_v56, %v3104_v37  ;;  %6856 = vmatprep.mubr.msk.f32.mxu0 %vm261_vm3, %v3115_v38 }
0x1347   : > { %v3116_v40 = vadd.f32 %v6318_v16, %v3110_v39 }
0x1349   : > { %6857 = vmatmul.mubr.msk.f32.vlgmr.msra.gmra.mrb[24].mxu0 %vm261_vm3, %v3116_v40 }
0x134a   : > { %7260 = vmatpush3.bf16.msra.mxu0 %v7257_v49 }
0x134b   : > { %7262 = vmatprep.subr.bf16.mxu0 %v7261_v55 }
0x134e   : > { %7264 = vmatpush3.bf16.msra.mxu0 %v7261_v55 }
0x134f   : > { %7266 = vmatprep.subr.bf16.mxu0 %v7265_v61 }
0x1352   : > { %7268 = vmatpush3.bf16.msra.mxu0 %v7265_v61 }
0x1353   : > { %7270 = vmatprep.subr.bf16.mxu0 %v7269_v59 }
0x1356   : > { %7272 = vmatpush3.bf16.msra.mxu0 %v7269_v59 }
0x1357   : > { %6894 = vmatprep.subr.mxu0 %v7774_v4 }
0x137c   : > { %v3547_v43 = vpop.f32.mrb[24].mxu1 }
0x137d   : > { %v3779_v11 = vmul.f32 0.35355338, %v3547_v43  ;;  %v6893_v29 = vpop.f32.mrb[25].mxu1 }
0x137f   : > { %v3783_v45 = vadd.f32 %v3779_v11, %v8385_v14 }
0x1381   : > { %v3788_v5 = vsel %vm3787_vm13, %v3783_v45, -inf }
0x1382   : > { %3789 = vmax.xlane.f32.xlu1 %v3788_v5 }
0x13aa   : > { %v3552_v56 = vpop.permute.xlu0 %3551 }
0x13ae   : > { %v3704_v35 = vpop.permute.xlu0 %3703 }
0x13e7   : > { %v3699_v53 = vpop.f32.mrb[26].mxu1 }
0x13e8   : > { %v6903_v60 = vpop.f32.mrb[27].mxu1  ;;  %v3781_v37 = vmul.f32 0.35355338, %v3699_v53 }
0x13e9   : > { %v6322_v60 = vld [vmem:[%s8912_s1 + $0x1d8] ss:$0 sm:$0xff] }
0x13ea   : > { %v3785_v44 = vadd.f32 %v3781_v37, %v8385_v14 }
0x13ec   : > { %v3794_v11 = vsel %vm3787_vm13, %v3785_v44, -inf }
0x140f   : > { %v3790_v62 = vpop.xlane.xlu1 %3789 }
0x1410   : > { %v3800_v1 = vsub.f32 %v3783_v45, %v3790_v62 }
0x1412   : > { %v3804_v6 = vmul.f32 1.442695, %v3800_v1 }
0x1414   : > { %7626 = vpow2.f32 %v3804_v6 }
0x141c   : > { %v6858_v8 = vpop.f32.mrb[24].mxu0 }
0x141d   : > { %v3199_v9 = vadd.f32 %v6858_v8, %v6319_v7  ;;  %v3193_v10 = vpop.f32.mrb[25].mxu0 }
0x141e   : > { %v8417_v12 = vpop.eup %7626  ;;  %v3194_v13 = vadd.f32 %v6319_v7, %v3193_v10 }
0x141f   : > { %v3205_v18 = vmul.f32 0.70710677, %v3199_v9  ;;  %v3812_v19 = vsel %vm3787_vm13, %v8417_v12, 0.0  ;;  %v3203_v30 = vmul.f32 0.5, %v3199_v9 }
0x1420   : > { %v3204_v21 = vmul.f32 0.70710677, %v3194_v13  ;;  %3813 = vadd.xlane.f32.xlu1 %v3812_v19  ;;  %v3202_v26 = vmul.f32 0.5, %v3194_v13 }
0x1421   : > { %7628 = verf.f32 %v3205_v18 }
0x1422   : > { %7630 = verf.f32 %v3204_v21 }
0x142b   : > { %v7629_v22 = vpop.eup %7628 }
0x142c   : > { %v7631_v24 = vpop.eup %7630  ;;  %v3209_v25 = vadd.f32 1.0, %v7629_v22 }
0x142d   : > { %v3208_v27 = vadd.f32 1.0, %v7631_v24 }
0x142e   : > { %v3211_v34 = vmul.f32 %v3209_v25, %v3203_v30 }
0x142f   : > { %v3210_v31 = vmul.f32 %v3208_v27, %v3202_v26 }
0x1431   : > { %6875 = vmatprep.mubr.msk.f32.mxu0 %vm1703_vm11, %v3210_v31 }
0x1432   : > { %6876 = vmatmul.mubr.msk.f32.vlgmr.msra.gmra.mrb[26].mxu0 %vm1703_vm11, %v3211_v34 }
0x1433   : > { %6895 = vmatpush3.xpose.msk.msra.mxu0 %vm434_vm4, %v3552_v56  ;;  %6896 = vmatprep.mubr.msk.f32.mxu0 %vm7773_vm0, %v7774_v4 }
0x1434   : > { %6904 = vmatprep.subr.mxu0 %v7774_v4 }
0x1436   : > { %6897 = vmatmul.mubr.msk.f32.vlgmr.msra.gmra.mrb[28].mxu0 %vm434_vm4, %v8371_v33 }
0x1437   : > { %6905 = vmatpush3.xpose.msk.msra.mxu0 %vm434_vm4, %v3704_v35  ;;  %6906 = vmatprep.mubr.msk.f32.mxu0 %vm7773_vm0, %v7774_v4  ;;  %v3351_v35 = vld [vmem:[%s8912_s1 + $0x220] sm:$0xff] }
0x1438   : > { %6914 = vmatprep.subr.mxu0 %v7774_v4 }
0x143a   : > { %6907 = vmatmul.mubr.msk.f32.vlgmr.msra.gmra.mrb[30].mxu0 %vm434_vm4, %v8341_v3 }
0x143b   : > { %6916 = vmatprep.mubr.msk.f32.mxu0 %vm7773_vm0, %v7774_v4 }
0x1505   : > { %v6877_v16 = vpop.f32.mrb[26].mxu0 }
0x1506   : > { %v3288_v15 = vpop.f32.mrb[27].mxu0  ;;  %v3294_v62 = vadd.f32 %v6877_v16, %v6322_v60  ;;  %v3352_v16 = vld [vmem:[%s8912_s1 + $0x228] sm:$0xff] }
0x1507   : > { %v3289_v1 = vadd.f32 %v6322_v60, %v3288_v15  ;;  %v3354_v15 = vld [vmem:[%s8912_s1 + $0x238] sm:$0xff] }
0x1508   : > { %v3298_v6 = vadd.f32 %v3294_v62, %v8316_v51  ;;  %v3363_v62 = vld [vmem:[%s8912_s1 + $0x280] sm:$0xff] }
0x1509   : > { %v3623_v36 = vpop.f32.mrb[28].mxu0 }
0x150a   : > { %v3780_v38 = vmul.f32 0.35355338, %v3623_v36  ;;  %v6898_v39 = vpop.f32.mrb[29].mxu0  ;;  %v3304_v7 = vsel %vm263_vm2, %v3298_v6, 0.0 }
0x150c   : > { %v3784_v40 = vadd.f32 %v3780_v38, %v8385_v14  ;;  %v3353_v38 = vld [vmem:[%s8912_s1 + $0x230] sm:$0xff] }
0x150d   : > { %v3775_v41 = vpop.f32.mrb[30].mxu0 }
0x150e   : > { %v3782_v42 = vmul.f32 0.35355338, %v3775_v41  ;;  %v6908_v28 = vpop.f32.mrb[31].mxu0  ;;  %v3791_v43 = vsel %vm3787_vm13, %v3784_v40, -inf }
0x150f   : > { %3792 = vmax.xlane.f32.xlu0 %v3791_v43 }
0x1510   : > { %v3786_v29 = vadd.f32 %v3782_v42, %v8385_v14 }
0x1512   : > { %v3797_v45 = vsel %vm3787_vm13, %v3786_v29, -inf }
0x1513   : > { %3795 = vmax.xlane.f32.xlu0 %v3794_v11 }
0x1517   : > { %3798 = vmax.xlane.f32.xlu0 %v3797_v45 }
0x159c   : > { %v3793_v5 = vpop.xlane.xlu0 %3792 }
0x159d   : > { %v3801_v47 = vsub.f32 %v3784_v40, %v3793_v5 }
0x159f   : > { %v3806_v48 = vmul.f32 1.442695, %v3801_v47 }
0x15a0   : > { %v3796_v49 = vpop.xlane.xlu0 %3795 }
0x15a1   : > { %7632 = vpow2.f32 %v3806_v48  ;;  %v3802_v50 = vsub.f32 %v3785_v44, %v3796_v49 }
0x15a3   : > { %v3808_v54 = vmul.f32 1.442695, %v3802_v50 }
0x15a4   : > { %v3799_v55 = vpop.xlane.xlu0 %3798 }
0x15a5   : > { %7634 = vpow2.f32 %v3808_v54  ;;  %v3803_v57 = vsub.f32 %v3786_v29, %v3799_v55 }
0x15a7   : > { %v3810_v20 = vmul.f32 1.442695, %v3803_v57 }
0x15a9   : > { %7636 = vpow2.f32 %v3810_v20 }
0x15ab   : > { %v7633_v61 = vpop.eup %7632 }
0x15ac   : > { %v3815_v32 = vsel %vm3787_vm13, %v7633_v61, 0.0 }
0x15ad   : > { %3816 = vadd.xlane.f32.xlu0 %v3815_v32 }
0x15af   : > { %v7635_v14 = vpop.eup %7634 }
0x15b0   : > { %v3818_v58 = vsel %vm3787_vm13, %v7635_v14, 0.0 }
0x15b1   : > { %3819 = vadd.xlane.f32.xlu1 %v3818_v58 }
0x15b3   : > { %v7637_v59 = vpop.eup %7636 }
0x15b4   : > { %v3821_v53 = vsel %vm3787_vm13, %v7637_v59, 0.0 }
0x15b5   : > { %3822 = vadd.xlane.f32.xlu0 %v3821_v53 }
0x15c2   : > { %3832 = vrot.lane.b32.xlu1 %v8327_v23, %s7779_s17  ;;  %v8460_v23 = vadd.f32 %v3289_v1, %v8318_v52  ;;  %v3364_v1 = vld [vmem:[%s8912_s1 + $0x288] sm:$0xff] }
0x15c6   : > { %3988 = vrot.lane.b32.xlu1 %v8337_v63, %s7779_s17  ;;  %v3301_v63 = vsel %vm261_vm3, %v8460_v23, 0.0 }
0x15ca   : > { %4065 = vrot.lane.b32.xlu1 %v8341_v3, %s7779_s17  ;;  %v3814_v3 = vpop.xlane.xlu1 %3813 }
0x15cb   : > { %3911 = vrot.lane.b32.xlu0 %v8371_v33, %s7779_s17  ;;  %7638 = vrcp.f32 %v3814_v3 }
0x15d5   : > { %v7639_v9 = vpop.eup %7638 }
0x15d6   : > { %v3825_v51 = vmul.f32 %v7639_v9, %v8417_v12 }
0x15ea   : > { %3305 = vadd.xlane.f32.xlu0 %v3304_v7  ;;  %v3366_v7 = vld [vmem:[%s8912_s1 + $0x298] sm:$0xff] }
0x15ee   : > { %3302 = vadd.xlane.f32.xlu1 %v3301_v63 }
0x163a   : > { %v3817_v33 = vpop.xlane.xlu0 %3816 }
0x163b   : > { %7640 = vrcp.f32 %v3817_v33 }
0x163e   : > { %v3820_v8 = vpop.xlane.xlu1 %3819 }
0x163f   : > { %7642 = vrcp.f32 %v3820_v8 }
0x1642   : > { %v3833_v10 = vpop.permute.xlu1 %3832  ;;  %v3823_v13 = vpop.xlane.xlu0 %3822 }
0x1643   : > { %7644 = vrcp.f32 %v3823_v13  ;;  %6910 = vmatpush3.msk.msra.mxu1 %vm3838_vm14, %v3833_v10 }
0x1644   : > { %6912 = vmatmul.mubr.msk.f32.vlgmr.msra.gmra.mrb[28].mxu1 %vm3834_vm15, %v3825_v51  ;;  %6919 = vmatprep.subr.mxu1 %v7774_v4 }
0x1645   : > { %v7641_v52 = vpop.eup %7640  ;;  %6921 = vmatprep.mubr.msk.f32.mxu1 %vm7773_vm0, %v7774_v4 }
0x1646   : > { %v3827_v18 = vmul.f32 %v7641_v52, %v7633_v61  ;;  %v3989_v19 = vpop.permute.xlu1 %3988  ;;  %v3912_v21 = vpop.permute.xlu0 %3911  ;;  %v6349_v61 = vld [vmem:[%s8912_s1 + $0x240] ss:$0 sm:$0xff] }
0x1647   : > { %6915 = vmatpush3.msk.msra.mxu0 %vm3838_vm14, %v3912_v21  ;;  %6920 = vmatpush3.msk.msra.mxu1 %vm3838_vm14, %v3989_v19 }
0x1648   : > { %6917 = vmatmul.mubr.msk.f32.vlgmr.msra.gmra.mrb[32].mxu0 %vm3834_vm15, %v3827_v18  ;;  %6924 = vmatprep.subr.mxu0 %v7774_v4 }
0x1649   : > { %v7643_v12 = vpop.eup %7642  ;;  %6926 = vmatprep.mubr.msk.f32.mxu0 %vm7773_vm0, %v7774_v4  ;;  %6929 = vmatprep.subr.mxu1 %v7774_v4 }
0x164a   : > { %v3829_v22 = vmul.f32 %v7643_v12, %v7635_v14  ;;  %v4066_v24 = vpop.permute.xlu1 %4065 }
0x164b   : > { %6925 = vmatpush3.msk.msra.mxu0 %vm3838_vm14, %v4066_v24 }
0x164c   : > { %6922 = vmatmul.mubr.msk.f32.vlgmr.msra.gmra.mrb[30].mxu1 %vm3834_vm15, %v3829_v22  ;;  %6934 = vmatprep.subr.mxu0 %v7774_v4  ;;  %v6325_v22 = vld [vmem:[%s8912_s1 + $0x1e0] ss:$0 sm:$0xff] }
0x164d   : > { %v7645_v25 = vpop.eup %7644  ;;  %6931 = vmatprep.mubr.msk.f32.mxu1 %vm7773_vm0, %v7774_v4  ;;  %6930 = vmatpush3.msra.mxu1 %v3352_v16 }
0x164e   : > { %v3831_v26 = vmul.f32 %v7645_v25, %v7637_v59  ;;  %6939 = vmatprep.subr.mxu1 %v7774_v4 }
0x1650   : > { %6927 = vmatmul.mubr.msk.f32.vlgmr.msra.gmra.mrb[34].mxu0 %vm3834_vm15, %v3831_v26 }
0x1651   : > { %6936 = vmatprep.mubr.msk.f32.mxu0 %vm7773_vm0, %v7774_v4  ;;  %6935 = vmatpush3.msra.mxu0 %v3351_v35  ;;  %v3359_v35 = vld [vmem:[%s8912_s1 + $0x260] sm:$0xff] }
0x1652   : > { %6944 = vmatprep.subr.mxu0 %v7774_v4 }
0x1677   : > { %v3306_v27 = vpop.xlane.xlu0 %3305 }
0x1678   : > { %v3308_v30 = vmul.f32 0.03125, %v3306_v27  ;;  %v6326_v27 = vld [vmem:[%s8912_s1 + $0x1e8] ss:$0 sm:$0xff] }
0x167a   : > { %v8485_v31 = vsub.f32 %v3298_v6, %v3308_v30  ;;  %v7285_v6 = vpack.c.bf16 %v3364_v1, %v3363_v62 }
0x167b   : > { %v3303_v47 = vpop.xlane.xlu1 %3302 }
0x167c   : > { %v3312_v34 = vmul.f32 %v8485_v31, %v8485_v31  ;;  %v3307_v54 = vmul.f32 0.03125, %v3303_v47 }
0x167e   : > { %v3316_v56 = vsel %vm263_vm2, %v3312_v34, 0.0  ;;  %v3309_v32 = vsub.f32 %v8460_v23, %v3307_v54  ;;  %vm4957_vm2 = vcmask 68608  }
0x167f   : > { %3317 = vadd.xlane.f32.xlu1 %v3316_v56 }
0x1680   : > { %v3311_v53 = vmul.f32 %v3309_v32, %v3309_v32 }
0x1682   : > { %v3313_v60 = vsel %vm261_vm3, %v3311_v53, 0.0 }
0x170c   : > { %v3318_v63 = vpop.xlane.xlu1 %3317 }
0x170d   : > { %v3320_v3 = vmul.f32 0.03125, %v3318_v63 }
0x170f   : > { %v3322_v33 = vadd.f32 1e-05, %v3320_v3 }
0x1711   : > { %7646 = vrsqrt.f32 %v3322_v33 }
0x1717   : > { %v3907_v36 = vpop.f32.mrb[28].mxu1 }
0x1718   : > { %v6913_v37 = vpop.f32.mrb[29].mxu1  ;;  %6937 = vmatmul.mubr.msk.f32.vlgmr.msra.gmra.mrb[36].mxu0 %vm434_vm4, %v3907_v36  ;;  %v3361_v36 = vld [vmem:[%s8912_s1 + $0x270] sm:$0xff] }
0x1719   : > { %6945 = vmatpush3.msra.mxu0 %v3354_v15  ;;  %6946 = vmatprep.mubr.msk.f32.mxu0 %vm7773_vm0, %v7774_v4  ;;  %v3360_v15 = vld [vmem:[%s8912_s1 + $0x268] sm:$0xff] }
0x171a   : > { %7286 = vmatprep.subr.bf16.mxu0 %v7285_v6  ;;  %v7283_v37 = vpack.c.bf16 %v3361_v36, %v3360_v15 }
0x171b   : > { %v3984_v39 = vpop.f32.mrb[32].mxu0  ;;  %v7647_v21 = vpop.eup %7646 }
0x171c   : > { %v6918_v40 = vpop.f32.mrb[33].mxu0  ;;  %6932 = vmatmul.mubr.msk.f32.vlgmr.msra.gmra.mrb[32].mxu1 %vm434_vm4, %v3984_v39  ;;  %v3326_v12 = vmul.f32 %v7647_v21, %v8485_v31  ;;  %v3358_v31 = vld [vmem:[%s8912_s1 + $0x258] sm:$0xff] }
0x171d   : > { %6940 = vmatpush3.msra.mxu1 %v3353_v38  ;;  %6941 = vmatprep.mubr.msk.f32.mxu1 %vm7773_vm0, %v7774_v4  ;;  %v7280_v16 = vpack.c.bf16 %v3359_v35, %v3358_v31 }
0x171e   : > { %7279 = vmatprep.subr.bf16.mxu1 %v7772_v2  ;;  %v3332_v26 = vmul.f32 %v6325_v22, %v3326_v12 }
0x171f   : > { %v4061_v41 = vpop.f32.mrb[30].mxu1 }
0x1720   : > { %v6923_v42 = vpop.f32.mrb[31].mxu1  ;;  %6942 = vmatmul.mubr.msk.f32.vlgmr.msra.gmra.mrb[34].mxu1 %vm434_vm4, %v4061_v41  ;;  %v8543_v56 = vadd.f32 %v6326_v27, %v3332_v26 }
0x1721   : > { %6957 = vmatprep.mubr.msk.f32.mxu1 %vm7773_vm0, %v7774_v4  ;;  %7281 = vmatpush3.bf16.msra.mxu1 %v7280_v16  ;;  %v6350_v42 = vld [vmem:[%s8912_s1 + $0x248] ss:$0 sm:$0xff] }
0x1722   : > { %7282 = vmatprep.subr.bf16.mxu1 %v7772_v2 }
0x1723   : > { %v4138_v28 = vpop.f32.mrb[34].mxu0 }
0x1724   : > { %v6928_v43 = vpop.f32.mrb[35].mxu0  ;;  %6947 = vmatmul.mubr.msk.f32.vlgmr.msra.gmra.mrb[38].mxu0 %vm434_vm4, %v4138_v28 }
0x1725   : > { %7288 = vmatpush3.bf16.msra.mxu0 %v7285_v6  ;;  %7284 = vmatpush3.bf16.msra.mxu1 %v7283_v37  ;;  %v6351_v43 = vld [vmem:[%s8912_s1 + $0x250] ss:$0 sm:$0xff] }
0x1726   : > { %7293 = vmatprep.subr.bf16.mxu1 %v7772_v2 }
0x17eb   : > { %v4284_v44 = vpop.f32.mrb[36].mxu0 }
0x17ec   : > { %v6938_v11 = vpop.f32.mrb[37].mxu0 }
0x17ef   : > { %v4211_v29 = vpop.f32.mrb[32].mxu1 }
0x17f0   : > { %v4285_v45 = vadd.f32 %v4284_v44, %v4211_v29  ;;  %v6933_v5 = vpop.f32.mrb[33].mxu1  ;;  %v6354_v29 = vld [vmem:[%s8912_s1 + $0x2a0] ss:$0 sm:$0xff] }
0x17f3   : > { %v4357_v48 = vpop.f32.mrb[34].mxu1 }
0x17f4   : > { %v4361_v49 = vadd.f32 %v4357_v48, %v4285_v45  ;;  %v6943_v50 = vpop.f32.mrb[35].mxu1 }
0x17f7   : > { %v4431_v55 = vpop.f32.mrb[38].mxu0 }
0x17f8   : > { %v4435_v57 = vadd.f32 %v4431_v55, %v4361_v49  ;;  %v6948_v20 = vpop.f32.mrb[39].mxu0 }
0x17fa   : > { %v4436_v14 = vadd.f32 %v4435_v57, %v8304_v46  ;;  %v3365_v46 = vld [vmem:[%s8912_s1 + $0x290] sm:$0xff] }
0x17fb   : > { %v7289_v23 = vpack.c.bf16 %v3366_v7, %v3365_v46 }
0x17fc   : > { %v4441_v58 = vadd.f32 %v6349_v61, %v4436_v14 }
0x17fd   : > { %7290 = vmatprep.subr.bf16.mxu0 %v7289_v23 }
0x17fe   : > { %v4443_v59 = vsel %vm4442_vm1, %v4441_v58, 0.0  ;;  %7292 = vmatpush3.bf16.msra.mxu0 %v7289_v23 }
0x17ff   : > { %4444 = vadd.xlane.f32.xlu0 %v4443_v59  ;;  %7297 = vmatprep.subr.bf16.mxu0 %v7772_v2 }
0x1803   : > { %3314 = vadd.xlane.f32.xlu0 %v3313_v60  ;;  %v6352_v60 = vld [vmem:[%s8912_s1 + $0x278] ss:$0 sm:$0xff] }
0x188c   : > { %v4445_v8 = vpop.xlane.xlu0 %4444 }
0x188d   : > { %v4446_v9 = vmul.f32 0.03125, %v4445_v8 }
0x188f   : > { %v4447_v51 = vsub.f32 %v4441_v58, %v4446_v9 }
0x1890   : > { %v3315_v10 = vpop.xlane.xlu0 %3314 }
0x1891   : > { %v3319_v13 = vmul.f32 0.03125, %v3315_v10  ;;  %v4448_v52 = vmul.f32 %v4447_v51, %v4447_v51 }
0x1893   : > { %v3321_v18 = vadd.f32 1e-05, %v3319_v13  ;;  %v4449_v19 = vsel %vm4442_vm1, %v4448_v52, 0.0 }
0x1894   : > { %4450 = vadd.xlane.f32.xlu0 %v4449_v19 }
0x1895   : > { %7648 = vrsqrt.f32 %v3321_v18 }
0x189f   : > { %v7649_v24 = vpop.eup %7648 }
0x18a0   : > { %v3325_v25 = vmul.f32 %v7649_v24, %v3309_v32 }
0x18a2   : > { %v3331_v30 = vmul.f32 %v6325_v22, %v3325_v25 }
0x18a4   : > { %v3337_v34 = vadd.f32 %v6326_v27, %v3331_v30 }
0x18a6   : > { %6968 = vmatprep.mubr.msk.f32.mxu0 %vm261_vm3, %v3337_v34 }
0x18a7   : > { %6969 = vmatmul.mubr.msk.f32.vlgmr.msra.gmra.mrb[40].mxu0 %vm261_vm3, %v8543_v56 }
0x18a8   : > { %6982 = vmatprep.mubr.msk.f32.mxu0 %vm7773_vm0, %v7774_v4 }
0x1921   : > { %v4451_v38 = vpop.xlane.xlu0 %4450 }
0x1922   : > { %v4452_v39 = vmul.f32 0.03125, %v4451_v38 }
0x1924   : > { %v4453_v40 = vadd.f32 1e-05, %v4452_v39 }
0x1926   : > { %7650 = vrsqrt.f32 %v4453_v40 }
0x1930   : > { %v7651_v41 = vpop.eup %7650 }
0x1931   : > { %v4455_v28 = vmul.f32 %v7651_v41, %v4447_v51 }
0x1933   : > { %v4460_v44 = vmul.f32 %v6350_v42, %v4455_v28 }
0x1935   : > { %v8570_v11 = vadd.f32 %v6351_v43, %v4460_v44 }
0x1937   : > { %6958 = vmatmul.mubr.msk.f32.vlgmr.msra.gmra.mrb[36].mxu1 %vm261_vm3, %v8570_v11 }
0x1938   : > { %6975 = vmatprep.mubr.msk.f32.mxu1 %vm7773_vm0, %v7774_v4 }
0x197a   : > { %v6970_v45 = vpop.f32.mrb[40].mxu0 }
0x197b   : > { %v4625_v5 = vadd.f32 %v6970_v45, %v6354_v29  ;;  %v4619_v47 = vpop.f32.mrb[41].mxu0 }
0x197c   : > { %v4620_v48 = vadd.f32 %v6354_v29, %v4619_v47 }
0x197e   : > { %v7512_v49 = vpack.i.bf16 %v4625_v5, %v4620_v48  ;;  %v7294_v50 = vpack.c.bf16 %v4625_v5, %v4620_v48 }
0x1980   : > { %7513 = vrot.lane.b32.xlu0 %v7512_v49, %s7776_s9  ;;  %7508 = vrot.lane.b32.xlu1 %v7512_v49, %s7775_s8 }
0x1981   : > { %7296 = vmatpush3.bf16.xpose.msk.msra.mxu1 %vm7934_vm5, %v7294_v50 }
0x1982   : > { %7301 = vmatprep.subr.bf16.mxu1 %v7772_v2 }
0x1984   : > { %7518 = vrot.lane.b32.xlu1 %v7512_v49, %s7777_s10 }
0x19f2   : > { %v8585_v54 = vpop.permute.xlu1 %7508  ;;  %v8587_v55 = vpop.permute.xlu0 %7513 }
0x19f3   : > { %v7511_v57 = vunpack.i.h.bf16 %v8585_v54  ;;  %v7510_v20 = vunpack.i.l.bf16 %v8585_v54  ;;  %v7516_v61 = vunpack.i.h.bf16 %v8587_v55  ;;  %v7515_v32 = vunpack.i.l.bf16 %v8587_v55 }
0x19f5   : > { %v7298_v14 = vpack.c.bf16 %v7511_v57, %v7510_v20  ;;  %v7302_v6 = vpack.c.bf16 %v7516_v61, %v7515_v32 }
0x19f6   : > { %v8593_v58 = vpop.permute.xlu1 %7518 }
0x19f7   : > { %v7521_v59 = vunpack.i.h.bf16 %v8593_v58  ;;  %v7520_v53 = vunpack.i.l.bf16 %v8593_v58  ;;  %7300 = vmatpush3.bf16.xpose.msk.msra.mxu0 %vm7934_vm5, %v7298_v14 }
0x19f8   : > { %7305 = vmatprep.subr.bf16.mxu0 %v7772_v2 }
0x19f9   : > { %v7306_v7 = vpack.c.bf16 %v7521_v59, %v7520_v53 }
0x1a0a   : > { %v4539_v62 = vpop.f32.mrb[36].mxu1 }
0x1a0b   : > { %v4540_v1 = vadd.f32 %v6352_v60, %v4539_v62  ;;  %v6959_v46 = vpop.f32.mrb[37].mxu1 }
0x1a0d   : > { %4633 = vrot.lane.b32.xlu0 %v4540_v1, %s7777_s10  ;;  %4629 = vrot.lane.b32.xlu1 %v4540_v1, %s7775_s8  ;;  %s8823_s10 = sand.u32 1, %s7762_s13  }
0x1a0e   : > { %6976 = vmatmul.mubr.msk.f32.vlgmr.msra.gmra.mrb[38].mxu1 %vm434_vm4, %v4540_v1  ;;  %s6106_s29 = scalar_lea.sflag [#allocation6], %s8823_s10 }
0x1a0f   : > { %7304 = vmatpush3.bf16.xpose.msk.msra.mxu1 %vm7934_vm5, %v7302_v6  ;;  %6989 = vmatprep.mubr.msk.f32.mxu1 %vm7773_vm0, %v7774_v4 }
0x1a10   : > { %7309 = vmatprep.subr.bf16.mxu1 %v7772_v2 }
0x1a11   : > { %4631 = vrot.lane.b32.xlu1 %v4540_v1, %s7776_s9 }
0x1a7f   : > { %v4630_v23 = vpop.permute.xlu1 %4629  ;;  %v4634_v3 = vpop.permute.xlu0 %4633 }
0x1a80   : > { %6983 = vmatmul.mubr.msk.f32.vlgmr.msra.gmra.mrb[42].mxu0 %vm434_vm4, %v4630_v23 }
0x1a81   : > { %7308 = vmatpush3.bf16.xpose.msk.msra.mxu0 %vm7934_vm5, %v7306_v7  ;;  %6996 = vmatprep.mubr.msk.f32.mxu0 %vm7773_vm0, %v7774_v4 }
0x1a82   : > { %7313 = vmatprep.subr.bf16.mxu0 %v7772_v2 }
0x1a83   : > { %v4632_v63 = vpop.permute.xlu1 %4631 }
0x1a84   : > { %6990 = vmatmul.mubr.msk.f32.vlgmr.msra.gmra.mrb[40].mxu1 %vm434_vm4, %v4632_v63 }
0x1a85   : > { %7003 = vmatprep.mubr.msk.f32.mxu1 %vm7773_vm0, %v7774_v4 }
0x1a88   : > { %6997 = vmatmul.mubr.msk.f32.vlgmr.msra.gmra.mrb[44].mxu0 %vm434_vm4, %v4634_v3 }
0x1a89   : > { %7010 = vmatprep.mubr.msk.f32.mxu0 %vm7773_vm0, %v7774_v4 }
0x1ae1   : > { %v4721_v33 = vpop.f32.mrb[38].mxu1 }
0x1ae2   : > { %v4953_v0 = vmul.f32 0.35355338, %v4721_v33  ;;  %v6977_v8 = vpop.f32.mrb[39].mxu1 }
0x1ae4   : > { %v4958_v9 = vsel %vm4957_vm2, %v4953_v0, -inf }
0x1ae5   : > { %4959 = vmax.xlane.f32.xlu1 %v4958_v9 }
0x1af6   : > { %7523 = vrot.lane.b32.xlu1 %v7512_v49, %s7778_s11 }
0x1b53   : > { %v4797_v51 = vpop.f32.mrb[42].mxu0 }
0x1b54   : > { %v4954_v10 = vmul.f32 0.35355338, %v4797_v51  ;;  %v6984_v13 = vpop.f32.mrb[43].mxu0 }
0x1b55   : > { %v3371_v13 = vld [vmem:[%s8912_s1 + $0x2c0] sm:$0xff] }
0x1b56   : > { %v4961_v52 = vsel %vm4957_vm2, %v4954_v10, -inf }
0x1b57   : > { %4962 = vmax.xlane.f32.xlu0 %v4961_v52  ;;  %v4873_v18 = vpop.f32.mrb[40].mxu1 }
0x1b58   : > { %v4955_v19 = vmul.f32 0.35355338, %v4873_v18  ;;  %v6991_v21 = vpop.f32.mrb[41].mxu1 }
0x1b5a   : > { %v4964_v12 = vsel %vm4957_vm2, %v4955_v19, -inf }
0x1b5b   : > { %v4949_v22 = vpop.f32.mrb[44].mxu0  ;;  %4965 = vmax.xlane.f32.xlu0 %v4964_v12  ;;  %v3370_v12 = vld [vmem:[%s8912_s1 + $0x2b8] sm:$0xff] }
0x1b5c   : > { %v4956_v24 = vmul.f32 0.35355338, %v4949_v22  ;;  %v6998_v25 = vpop.f32.mrb[45].mxu0 }
0x1b5e   : > { %v4967_v26 = vsel %vm4957_vm2, %v4956_v24, -inf }
0x1b5f   : > { %4968 = vmax.xlane.f32.xlu0 %v4967_v26 }
0x1b72   : > { %v4960_v27 = vpop.xlane.xlu1 %4959 }
0x1b73   : > { %v4970_v30 = vsub.f32 %v4953_v0, %v4960_v27 }
0x1b75   : > { %v4974_v34 = vmul.f32 1.442695, %v4970_v30 }
0x1b76   : > { %v7524_v31 = vpop.permute.xlu1 %7523 }
0x1b77   : > { %7652 = vpow2.f32 %v4974_v34  ;;  %v7526_v35 = vunpack.i.h.bf16 %v7524_v31  ;;  %v7525_v16 = vunpack.i.l.bf16 %v7524_v31 }
0x1b79   : > { %v7310_v15 = vpack.c.bf16 %v7526_v35, %v7525_v16 }
0x1b7b   : > { %7312 = vmatpush3.bf16.msk.msra.mxu1 %vm7986_vm10, %v7310_v15 }
0x1b7c   : > { %7317 = vmatprep.subr.bf16.mxu1 %v7772_v2 }
0x1b81   : > { %v7653_v36 = vpop.eup %7652 }
0x1b82   : > { %v4982_v37 = vsel %vm4957_vm2, %v7653_v36, 0.0 }
0x1b83   : > { %4983 = vadd.xlane.f32.xlu1 %v4982_v37 }
0x1be4   : > { %v4963_v38 = vpop.xlane.xlu0 %4962 }
0x1be5   : > { %v4971_v39 = vsub.f32 %v4954_v10, %v4963_v38  ;;  %v3368_v10 = vld [vmem:[%s8912_s1 + $0x2a8] sm:$0xff] }
0x1be7   : > { %v4976_v40 = vmul.f32 1.442695, %v4971_v39 }
0x1be8   : > { %v4966_v41 = vpop.xlane.xlu0 %4965 }
0x1be9   : > { %7654 = vpow2.f32 %v4976_v40  ;;  %v4972_v42 = vsub.f32 %v4955_v19, %v4966_v41  ;;  %v6381_v40 = vld [vmem:[%s8912_s1 + $0x2c8] ss:$0 sm:$0xff] }
0x1beb   : > { %v4978_v28 = vmul.f32 1.442695, %v4972_v42 }
0x1bec   : > { %v4969_v43 = vpop.xlane.xlu0 %4968 }
0x1bed   : > { %7656 = vpow2.f32 %v4978_v28  ;;  %v4973_v44 = vsub.f32 %v4956_v24, %v4969_v43 }
0x1bef   : > { %v4980_v29 = vmul.f32 1.442695, %v4973_v44 }
0x1bf1   : > { %7658 = vpow2.f32 %v4980_v29 }
0x1bf3   : > { %v7655_v45 = vpop.eup %7654 }
0x1bf4   : > { %v4985_v5 = vsel %vm4957_vm2, %v7655_v45, 0.0 }
0x1bf5   : > { %4986 = vadd.xlane.f32.xlu0 %v4985_v5 }
0x1bf7   : > { %v7657_v47 = vpop.eup %7656 }
0x1bf8   : > { %v4988_v48 = vsel %vm4957_vm2, %v7657_v47, 0.0 }
0x1bf9   : > { %4989 = vadd.xlane.f32.xlu1 %v4988_v48  ;;  %v3376_v48 = vld [vmem:[%s8912_s1 + $0x2e8] sm:$0xff] }
0x1bfb   : > { %v7659_v49 = vpop.eup %7658 }
0x1bfc   : > { %v4991_v50 = vsel %vm4957_vm2, %v7659_v49, 0.0 }
0x1bfd   : > { %4992 = vadd.xlane.f32.xlu0 %v4991_v50  ;;  %v3378_v50 = vld [vmem:[%s8912_s1 + $0x2f8] sm:$0xff] }
0x1c0a   : > { %7533 = vrot.lane.b32.xlu1 %v8587_v55, %s7778_s11 }
0x1c0e   : > { %7538 = vrot.lane.b32.xlu1 %v8593_v58, %s7778_s11 }
0x1c10   : > { %v4984_v57 = vpop.xlane.xlu1 %4983 }
0x1c11   : > { %7660 = vrcp.f32 %v4984_v57 }
0x1c13   : > { %7528 = vrot.lane.b32.xlu0 %v8585_v54, %s7778_s11  ;;  %s6223_s11 = sshll.u32 %s8823_s10, 2 }
0x1c14   : > { %s171_s25 = scalar_lea.vmem [#allocation5], %s6223_s11 }
0x1c15   : > { %s6132_s17 = sshll.u32 %s171_s25, 4  ;;  %s8835_s17 = int_to_ptr.vmem [resolvable:$true] %s6132_s17 }
0x1c16   : > { %s7676_s30 = scalar_lea.vmem %s8835_s17, 64  ;;  %p7683_p0 = scmp.lt.s32.totalorder %s8835_s17, %s7681_s5 }
0x1c17   : > { %p7677_p11 = scmp.ne.s32.totalorder %s8835_s17, %s7676_s30  ;;  %p7684_p1 = scmp.lt.s32.totalorder %s7682_s6, %s7676_s30 }
0x1c19   : > { %p7678_p12 = pnand %p7677_p11, %p7842_p5  ;;  %p7685_p2 = por %p7684_p1, %p7683_p0 }
0x1c1b   : > { %v7661_v20 = vpop.eup %7660  ;;  %p7679_p13 = pneg %p7678_p12 }
0x1c1c   : > { %v4995_v61 = vmul.f32 %v7661_v20, %v7653_v36 }
0x1c1d   : > { %p7686_p3 = pnand %p7685_p2, %p7679_p13 }
0x1c1e   : > { %7004 = vmatmul.mubr.msk.f32.vlgmr.msra.gmra.mrb[42].mxu1 %vm787_vm7, %v4995_v61 }
0x1c1f   : > { %7017 = vmatprep.mubr.msk.f32.mxu1 %vm7773_vm0, %v7774_v4 }
0x1c82   : > { %v4987_v32 = vpop.xlane.xlu0 %4986 }
0x1c83   : > { %7662 = vrcp.f32 %v4987_v32 }
0x1c86   : > { %v4990_v14 = vpop.xlane.xlu1 %4989 }
0x1c87   : > { %7664 = vrcp.f32 %v4990_v14 }
0x1c8a   : > { %v4993_v55 = vpop.xlane.xlu0 %4992  ;;  %v7534_v59 = vpop.permute.xlu1 %7533 }
0x1c8b   : > { %7666 = vrcp.f32 %v4993_v55  ;;  %v7536_v58 = vunpack.i.h.bf16 %v7534_v59  ;;  %v7535_v53 = vunpack.i.l.bf16 %v7534_v59  ;;  %v6382_v55 = vld [vmem:[%s8912_s1 + $0x2d0] ss:$0 sm:$0xff] }
0x1c8d   : > { %v7318_v60 = vpack.c.bf16 %v7536_v58, %v7535_v53  ;;  %v7663_v6 = vpop.eup %7662  ;;  %v6383_v58 = vld [vmem:[%s8912_s1 + $0x2d8] ss:$0 sm:$0xff] }
0x1c8e   : > { %v7529_v62 = vpop.permute.xlu0 %7528  ;;  %v7539_v1 = vpop.permute.xlu1 %7538  ;;  %v4997_v0 = vmul.f32 %v7663_v6, %v7655_v45  ;;  %v3383_v6 = vld [vmem:[%s8912_s1 + $0x320] sm:$0xff] }
0x1c8f   : > { %v7531_v54 = vunpack.i.h.bf16 %v7529_v62  ;;  %v7530_v46 = vunpack.i.l.bf16 %v7529_v62  ;;  %7320 = vmatpush3.bf16.msk.msra.mxu1 %vm7986_vm10, %v7318_v60  ;;  %v7541_v63 = vunpack.i.h.bf16 %v7539_v1  ;;  %v7540_v3 = vunpack.i.l.bf16 %v7539_v1  ;;  %v3380_v62 = vld [vmem:[%s8912_s1 + $0x308] sm:$0xff]  ;;  %v3381_v1 = vld [vmem:[%s8912_s1 + $0x310] sm:$0xff] }
0x1c90   : > { %7027 = vmatprep.subr.mxu1 %v7774_v4 }
0x1c91   : > { %v7665_v7 = vpop.eup %7664  ;;  %v7314_v23 = vpack.c.bf16 %v7531_v54, %v7530_v46  ;;  %v7322_v9 = vpack.c.bf16 %v7541_v63, %v7540_v3  ;;  %v7332_v54 = vpack.c.bf16 %v3381_v1, %v3380_v62  ;;  %v3382_v46 = vld [vmem:[%s8912_s1 + $0x318] sm:$0xff]  ;;  %v3385_v63 = vld [vmem:[%s8912_s1 + $0x330] sm:$0xff] }
0x1c92   : > { %v4999_v33 = vmul.f32 %v7665_v7, %v7657_v47  ;;  %v3375_v47 = vld [vmem:[%s8912_s1 + $0x2e0] sm:$0xff]  ;;  %v7335_v7 = vpack.c.bf16 %v3383_v6, %v3382_v46 }
0x1c93   : > { %7316 = vmatpush3.bf16.msk.msra.mxu0 %vm7986_vm10, %v7314_v23  ;;  %v3384_v23 = vld [vmem:[%s8912_s1 + $0x328] sm:$0xff]  ;;  %v6390_v46 = vld [vmem:[%s8912_s1 + $0x360] ss:$0 sm:$0xff] }
0x1c94   : > { %7018 = vmatmul.mubr.msk.f32.vlgmr.msra.gmra.mrb[44].mxu1 %vm787_vm7, %v4999_v33  ;;  %7321 = vmatprep.subr.bf16.mxu0 %v7772_v2  ;;  %v7338_v3 = vpack.c.bf16 %v3385_v63, %v3384_v23  ;;  %v3386_v33 = vld [vmem:[%s8912_s1 + $0x338] sm:$0xff]  ;;  %v5949_v23 = vld [vmem:[%s8912_s1 + $0x3c0] sm:$0xff]  ;;  %v6391_v63 = vld [vmem:[%s8912_s1 + $0x368] ss:$0 sm:$0xff] }
0x1c95   : > { %v7667_v8 = vpop.eup %7666  ;;  %7029 = vmatprep.mubr.msk.f32.mxu1 %vm7773_vm0, %v7774_v4  ;;  %7028 = vmatpush3.msra.mxu1 %v3369_v17 }
0x1c96   : > { %7011 = vmatmul.mubr.msk.f32.vlgmr.msra.gmra.mrb[46].mxu0 %vm787_vm7, %v4997_v0  ;;  %v5001_v51 = vmul.f32 %v7667_v8, %v7659_v49  ;;  %7037 = vmatprep.subr.mxu1 %v7774_v4  ;;  %v3377_v49 = vld [vmem:[%s8912_s1 + $0x2f0] sm:$0xff]  ;;  %v3387_v0 = vld [vmem:[%s8912_s1 + $0x340] sm:$0xff] }
0x1c97   : > { %7324 = vmatpush3.bf16.msk.msra.mxu0 %vm7986_vm10, %v7322_v9  ;;  %7024 = vmatprep.mubr.msk.f32.mxu0 %vm7773_vm0, %v7774_v4  ;;  %v7329_v57 = vpack.c.bf16 %v3378_v50, %v3377_v49  ;;  %v7341_v8 = vpack.c.bf16 %v3387_v0, %v3386_v33  ;;  %v6384_v9 = vld [vmem:[%s8912_s1 + $0x300] ss:$0 sm:$0xff] }
0x1c98   : > { %7032 = vmatprep.subr.mxu0 %v7774_v4 }
0x1c9a   : > { %7025 = vmatmul.mubr.msk.f32.vlgmr.msra.gmra.mrb[48].mxu0 %vm787_vm7, %v5001_v51 }
0x1c9b   : > { %7033 = vmatpush3.msra.mxu0 %v3368_v10  ;;  %7034 = vmatprep.mubr.msk.f32.mxu0 %vm7773_vm0, %v7774_v4 }
0x1c9c   : > { %7042 = vmatprep.subr.mxu0 %v7774_v4 }
0x1cf1   : > { %v5078_v52 = vpop.f32.mrb[42].mxu1 }
0x1cf2   : > { %v7005_v18 = vpop.f32.mrb[43].mxu1  ;;  %7035 = vmatmul.mubr.msk.f32.vlgmr.msra.gmra.mrb[50].mxu0 %vm434_vm4, %v5078_v52  ;;  %v5944_v52 = vld [vmem:[%s8912_s1 + $0x398] sm:$0xff] }
0x1cf3   : > { %7043 = vmatpush3.msra.mxu0 %v3371_v13  ;;  %7044 = vmatprep.mubr.msk.f32.mxu0 %vm7773_vm0, %v7774_v4  ;;  %v5945_v18 = vld [vmem:[%s8912_s1 + $0x3a0] sm:$0xff] }
0x1cf4   : > { %7331 = vmatprep.subr.bf16.mxu0 %v7772_v2 }
0x1d67   : > { %v5238_v19 = vpop.f32.mrb[44].mxu1 }
0x1d68   : > { %v7019_v21 = vpop.f32.mrb[45].mxu1 }
0x1d69   : > { %v5158_v22 = vpop.f32.mrb[46].mxu0 }
0x1d6a   : > { %v7012_v24 = vpop.f32.mrb[47].mxu0  ;;  %7030 = vmatmul.mubr.msk.f32.vlgmr.msra.gmra.mrb[46].mxu1 %vm434_vm4, %v5158_v22  ;;  %v7356_v22 = vpack.c.bf16 %v5945_v18, %v5944_v52 }
0x1d6b   : > { %7038 = vmatpush3.msra.mxu1 %v3370_v12  ;;  %7039 = vmatprep.mubr.msk.f32.mxu1 %vm7773_vm0, %v7774_v4 }
0x1d6c   : > { %7325 = vmatprep.subr.bf16.mxu1 %v7772_v2 }
0x1d6d   : > { %v5318_v25 = vpop.f32.mrb[48].mxu0 }
0x1d6e   : > { %v7026_v26 = vpop.f32.mrb[49].mxu0  ;;  %7040 = vmatmul.mubr.msk.f32.vlgmr.msra.gmra.mrb[48].mxu1 %vm434_vm4, %v5238_v19  ;;  %7045 = vmatmul.mubr.msk.f32.vlgmr.msra.gmra.mrb[52].mxu0 %vm434_vm4, %v5318_v25  ;;  %v5946_v25 = vld [vmem:[%s8912_s1 + $0x3a8] sm:$0xff] }
0x1d6f   : > { %7055 = vmatprep.mubr.msk.f32.mxu1 %vm7773_vm0, %v7774_v4  ;;  %7074 = vmatprep.mubr.msk.f32.mxu0 %vm7773_vm0, %v7774_v4  ;;  %v5947_v26 = vld [vmem:[%s8912_s1 + $0x3b0] sm:$0xff] }
0x1d70   : > { %7333 = vmatpush3.bf16.msra.mxu0 %v7332_v54 }
0x1d71   : > { %7334 = vmatprep.subr.bf16.mxu0 %v7772_v2 }
0x1d74   : > { %7336 = vmatpush3.bf16.msra.mxu0 %v7335_v7  ;;  %v5948_v7 = vld [vmem:[%s8912_s1 + $0x3b8] sm:$0xff] }
0x1d75   : > { %7337 = vmatprep.subr.bf16.mxu0 %v7772_v2  ;;  %v7350_v33 = vpack.c.bf16 %v5949_v23, %v5948_v7 }
0x1d78   : > { %7339 = vmatpush3.bf16.msra.mxu0 %v7338_v3 }
0x1d79   : > { %7340 = vmatprep.subr.bf16.mxu0 %v7772_v2 }
0x1d7c   : > { %7342 = vmatpush3.bf16.msra.mxu0 %v7341_v8  ;;  %v5950_v8 = vld [vmem:[%s8912_s1 + $0x3c8] sm:$0xff] }
0x1d7d   : > { %7355 = vmatprep.subr.bf16.mxu0 %v7772_v2 }
0x1dc5   : > { %v5464_v27 = vpop.f32.mrb[50].mxu0 }
0x1dc6   : > { %v7036_v30 = vpop.f32.mrb[51].mxu0 }
0x1dc7   : > { %v6386_v30 = vld [vmem:[%s8912_s1 + $0x348] ss:$0 sm:$0xff] }
0x1e3d   : > { %v5391_v34 = vpop.f32.mrb[46].mxu1 }
0x1e3e   : > { %v5465_v31 = vadd.f32 %v5464_v27, %v5391_v34  ;;  %v7031_v35 = vpop.f32.mrb[47].mxu1  ;;  %v7359_v27 = vpack.c.bf16 %v5947_v26, %v5946_v25 }
0x1e41   : > { %v5537_v16 = vpop.f32.mrb[48].mxu1  ;;  %v5611_v15 = vpop.f32.mrb[52].mxu0 }
0x1e42   : > { %v5541_v36 = vadd.f32 %v5537_v16, %v5465_v31  ;;  %v7041_v37 = vpop.f32.mrb[49].mxu1  ;;  %v7046_v38 = vpop.f32.mrb[53].mxu0 }
0x1e44   : > { %v5615_v39 = vadd.f32 %v5611_v15, %v5541_v36 }
0x1e46   : > { %v5616_v41 = vadd.f32 %v5615_v39, %v8570_v11  ;;  %v7326_v11 = vpack.c.bf16 %v3376_v48, %v3375_v47 }
0x1e48   : > { %v5621_v42 = vadd.f32 %v6381_v40, %v5616_v41  ;;  %7327 = vmatpush3.bf16.msra.mxu1 %v7326_v11 }
0x1e49   : > { %7328 = vmatprep.subr.bf16.mxu1 %v7772_v2 }
0x1e4a   : > { %v5622_v28 = vsel %vm4442_vm1, %v5621_v42, 0.0 }
0x1e4b   : > { %5623 = vadd.xlane.f32.xlu1 %v5622_v28 }
0x1e4c   : > { %7330 = vmatpush3.bf16.msra.mxu1 %v7329_v57 }
0x1e4d   : > { %7343 = vmatprep.subr.bf16.mxu1 %v7772_v2 }
0x1ed8   : > { %v5624_v43 = vpop.xlane.xlu1 %5623 }
0x1ed9   : > { %v5625_v44 = vmul.f32 0.03125, %v5624_v43 }
0x1edb   : > { %v5626_v29 = vsub.f32 %v5621_v42, %v5625_v44 }
0x1edd   : > { %v5627_v45 = vmul.f32 %v5626_v29, %v5626_v29 }
0x1edf   : > { %v5628_v5 = vsel %vm4442_vm1, %v5627_v45, 0.0 }
0x1ee0   : > { %5629 = vadd.xlane.f32.xlu0 %v5628_v5  ;;  %v6389_v5 = vld [vmem:[%s8912_s1 + $0x358] ss:$0 sm:$0xff] }
0x1f6d   : > { %v5630_v20 = vpop.xlane.xlu0 %5629 }
0x1f6e   : > { %v5631_v61 = vmul.f32 0.03125, %v5630_v20 }
0x1f70   : > { %v5632_v32 = vadd.f32 1e-05, %v5631_v61 }
0x1f72   : > { %7668 = vrsqrt.f32 %v5632_v32  ;;  %v5853_v32 = vld [vmem:[%s8912_s1 + $0x370] sm:$0xff] }
0x1f7c   : > { %v7669_v14 = vpop.eup %7668 }
0x1f7d   : > { %v5634_v59 = vmul.f32 %v7669_v14, %v5626_v29  ;;  %v6388_v29 = vld [vmem:[%s8912_s1 + $0x350] ss:$0 sm:$0xff]  ;;  %v5854_v14 = vld [vmem:[%s8912_s1 + $0x378] sm:$0xff] }
0x1f7f   : > { %v5639_v53 = vmul.f32 %v6382_v55, %v5634_v59  ;;  %v7344_v55 = vpack.c.bf16 %v5854_v14, %v5853_v32  ;;  %v5855_v59 = vld [vmem:[%s8912_s1 + $0x380] sm:$0xff] }
0x1f81   : > { %v5644_v60 = vadd.f32 %v6383_v58, %v5639_v53  ;;  %v5856_v58 = vld [vmem:[%s8912_s1 + $0x388] sm:$0xff] }
0x1f82   : > { %v7347_v53 = vpack.c.bf16 %v5856_v58, %v5855_v59 }
0x1f83   : > { %7056 = vmatmul.mubr.msk.f32.vlgmr.msra.gmra.mrb[50].mxu1 %vm261_vm3, %v5644_v60 }
0x1f84   : > { %7085 = vmatprep.mubr.msk.f32.mxu1 %vm7773_vm0, %v7774_v4  ;;  %7345 = vmatpush3.bf16.msra.mxu1 %v7344_v55 }
0x1f85   : > { %7346 = vmatprep.subr.bf16.mxu1 %v7772_v2 }
0x1f88   : > { %7348 = vmatpush3.bf16.msra.mxu1 %v7347_v53 }
0x1f89   : > { %7349 = vmatprep.subr.bf16.mxu1 %v7772_v2 }
0x2056   : > { %v5718_v51 = vpop.f32.mrb[50].mxu1 }
0x2057   : > { %v5719_v10 = vadd.f32 %v6384_v9, %v5718_v51  ;;  %v7057_v17 = vpop.f32.mrb[51].mxu1  ;;  %v5951_v9 = vld [vmem:[%s8912_s1 + $0x3d0] sm:$0xff] }
0x2058   : > { %v7353_v17 = vpack.c.bf16 %v5951_v9, %v5950_v8 }
0x2059   : > { %v5723_v13 = vmul.f32 0.70710677, %v5719_v10  ;;  %v5722_v21 = vmul.f32 0.5, %v5719_v10 }
0x205b   : > { %7670 = verf.f32 %v5723_v13 }
0x2065   : > { %v7671_v19 = vpop.eup %7670 }
0x2066   : > { %v5725_v12 = vadd.f32 1.0, %v7671_v19 }
0x2068   : > { %v5726_v24 = vmul.f32 %v5725_v12, %v5722_v21 }
0x206a   : > { %7075 = vmatmul.mubr.msk.f32.vlgmr.msra.gmra.mrb[54].mxu0 %vm1703_vm11, %v5726_v24 }
0x206b   : > { %7357 = vmatpush3.bf16.msra.mxu0 %v7356_v22  ;;  %7107 = vmatprep.mubr.msk.f32.mxu0 %vm7773_vm0, %v7774_v4 }
0x206c   : > { %7358 = vmatprep.subr.bf16.mxu0 %v7772_v2 }
0x206f   : > { %7360 = vmatpush3.bf16.msra.mxu0 %v7359_v27 }
0x2072   : > { %7108 = vmatmul.mubr.msk.f32.vlgmr.msra.gmra.mrb[56].mxu0 %vm261_vm3, %v8543_v56 }
0x213d   : > { %v5800_v34 = vpop.f32.mrb[54].mxu0 }
0x213e   : > { %v5801_v31 = vadd.f32 %v6386_v30, %v5800_v34  ;;  %v7076_v35 = vpop.f32.mrb[55].mxu0 }
0x2140   : > { %v5804_v16 = vadd.f32 %v5801_v31, %v5644_v60 }
0x2142   : > { %v5805_v15 = vsel %vm4442_vm1, %v5804_v16, 0.0 }
0x2143   : > { %5806 = vadd.xlane.f32.xlu0 %v5805_v15 }
0x2145   : > { %v8773_v36 = vpop.f32.mrb[56].mxu0 }
0x2146   : > { %v7109_v37 = vpop.f32.mrb[57].mxu0 }
0x21d0   : > { %v5807_v38 = vpop.xlane.xlu0 %5806 }
0x21d1   : > { %v5808_v39 = vmul.f32 0.03125, %v5807_v38 }
0x21d3   : > { %v5809_v40 = vsub.f32 %v5804_v16, %v5808_v39 }
0x21d5   : > { %v5810_v41 = vmul.f32 %v5809_v40, %v5809_v40 }
0x21d7   : > { %v5811_v56 = vsel %vm4442_vm1, %v5810_v41, 0.0 }
0x21d8   : > { %5812 = vadd.xlane.f32.xlu0 %v5811_v56 }
0x2265   : > { %v5813_v42 = vpop.xlane.xlu0 %5812 }
0x2266   : > { %v5814_v28 = vmul.f32 0.03125, %v5813_v42 }
0x2268   : > { %v5815_v43 = vadd.f32 1e-05, %v5814_v28 }
0x226a   : > { %7672 = vrsqrt.f32 %v5815_v43 }
0x2274   : > { %v7673_v44 = vpop.eup %7672 }
0x2275   : > { %v5817_v45 = vmul.f32 %v7673_v44, %v5809_v40 }
0x2277   : > { %v5822_v47 = vmul.f32 %v6388_v29, %v5817_v45 }
0x2279   : > { %v5827_v48 = vadd.f32 %v6389_v5, %v5822_v47 }
0x227b   : > { %v5830_v11 = vsel %vm4442_vm1, %v5827_v48, 0.0 }
0x227c   : > { %5831 = vadd.xlane.f32.xlu1 %v5830_v11 }
0x2309   : > { %v5832_v49 = vpop.xlane.xlu1 %5831 }
0x230a   : > { %v5833_v50 = vmul.f32 0.03125, %v5832_v49 }
0x230c   : > { %v5834_v57 = vsub.f32 %v5827_v48, %v5833_v50 }
0x230e   : > { %v5835_v20 = vmul.f32 %v5834_v57, %v5834_v57 }
0x2310   : > { %v5836_v61 = vsel %vm4442_vm1, %v5835_v20, 0.0 }
0x2311   : > { %5837 = vadd.xlane.f32.xlu0 %v5836_v61 }
0x239e   : > { %v5838_v60 = vpop.xlane.xlu0 %5837 }
0x239f   : > { %v5839_v62 = vmul.f32 0.03125, %v5838_v60 }
0x23a1   : > { %v5840_v1 = vadd.f32 1e-05, %v5839_v62 }
0x23a3   : > { %7674 = vrsqrt.f32 %v5840_v1 }
0x23ad   : > { %v7675_v54 = vpop.eup %7674 }
0x23ae   : > { %v5842_v6 = vmul.f32 %v7675_v54, %v5834_v57 }
0x23b0   : > { %v5847_v3 = vmul.f32 %v6390_v46, %v5842_v6 }
0x23b2   : > { %v5852_v0 = vadd.f32 %v6391_v63, %v5847_v3 }
0x23b4   : > { %7086 = vmatmul.mubr.msk.f32.vlgmr.msra.gmra.mrb[52].mxu1 %vm261_vm3, %v5852_v0  ;;  %v5935_v51 = vsel %vm4442_vm1, %v5852_v0, 0.0 }
0x23b5   : > { %v5936_v10 = vrot.slane %v5935_v51, 4  ;;  %7351 = vmatpush3.bf16.msra.mxu1 %v7350_v33  ;;  %7096 = vmatprep.mubr.msk.f32.mxu1 %vm7773_vm0, %v7774_v4  ;;  %v6392_v4 = vld [vmem:[%s8912_s1 + $0x390] ss:$0 sm:$0xff]  ;;  %vm6099_vm0 = vcmask 35840  }
0x23b6   : > { %7352 = vmatprep.subr.bf16.mxu1 %v7772_v2 }
0x23b7   : > { %v5937_v13 = vadd.f32 %v5936_v10, %v5935_v51 }
0x23b9   : > { %7354 = vmatpush3.bf16.msra.mxu1 %v7353_v17  ;;  %v5938_v52 = vrot.slane %v5937_v13, 2 }
0x23bb   : > { %v5939_v18 = vadd.f32 %v5938_v52, %v5937_v13 }
0x23bd   : > { %v5940_v19 = vrot.slane %v5939_v18, 1 }
0x23bf   : > { %v5941_v21 = vadd.f32 %v5940_v19, %v5939_v18 }
0x23c1   : > { %v5943_v12 = vmul.f32 0.25, %v5941_v21 }
0x23c3   : > { %7097 = vmatmul.mubr.msk.f32.vlgmr.msra.gmra.mrb[54].mxu1 %vm261_vm3, %v5943_v12 }
0x2487   : > { %v5931_v2 = vpop.f32.mrb[52].mxu1 }
0x2488   : > { %v5932_v22 = vadd.f32 %v6392_v4, %v5931_v2  ;;  %v7087_v24 = vpop.f32.mrb[53].mxu1 }
0x248a   : > { %6100 = vst.msk [vmem:[%s171_s25] sm:$0xf] %vm6099_vm0, %v5932_v22 }
0x248b   : > { %7689 = shalt.err (!%p7686_p3)
}
0x248c   : > { %s7690_s7 = scalar_lea.hbm %s8833_s28, 64  ;;  %s7694_s11 = scalar_lea.hbm %s8914_s3, 128 }
0x248d   : > { %p7691_p4 = scmp.ne.s32.totalorder %s8833_s28, %s7690_s7  ;;  %p7695_p9 = scmp.lt.u32.totalorder %s8833_s28, %s8914_s3 }
0x248e   : > { %p7696_p10 = scmp.lt.u32.totalorder %s7694_s11, %s7690_s7  ;;  %p7698_p12 = scmp.lt.u32.totalorder %s7690_s7, %s8833_s28 }
0x248f   : > { %p7692_p7 = pnand %p7691_p4, %p7842_p5 }
0x2490   : > { %p7697_p11 = por %p7696_p10, %p7695_p9 }
0x2491   : > { %p7693_p8 = pneg %p7692_p7 }
0x2492   : > { %p7699_p13 = por %p7698_p12, %p7697_p11 }
0x2494   : > { %p7700_p0 = pnand %p7699_p13, %p7693_p8 }
0x2496   : > { %7703 = shalt.err (!%p7700_p0)
}
0x2497   : > { %7374 = dma.vmem_to_hbm [thread:$0]  (%p7842_p5), %s8835_s17, 64, %s8833_s28, %s6106_s29   ;;  %v5952_v25 = vld [vmem:[%s8912_s1 + $0x3d8] sm:$0x1]  ;;  %v6022_v26 = vpop.f32.mrb[54].mxu1  ;;  %vm6097_vm3 = vcmask 32768  }
0x2498   : > { %s6397_s26 = sshll.u32 %s7825_s16, 4  ;;  %s164_s27 = scalar_lea.vmem [#allocation3], %s8823_s10  ;;  %v6093_v27 = vadd.f32 %v8773_v36, %v6022_v26  ;;  %v7098_v30 = vpop.f32.mrb[55].mxu1 }
0x2499   : > { %s6119_s30 = sshll.u32 %s164_s27, 4  ;;  %s8868_s6 = scalar_lea.hbm %s8913_s2, %s6397_s26  ;;  %s8870_s30 = int_to_ptr.vmem [resolvable:$true] %s6119_s30 }
0x249a   : > { %v6096_v34 = vadd.f32 %v6093_v27, %v5952_v25  ;;  %s6102_s17 = scalar_lea.sflag [#allocation4], %s8823_s10  ;;  %s7704_s16 = scalar_lea.vmem %s8870_s30, 16 }
0x249b   : > { %p7705_p1 = scmp.ne.s32.totalorder %s8870_s30, %s7704_s16  ;;  %s7783_s28 = smov [#allocation3]  }
0x249c   : > { %6098 = vst.msk [vmem:[%s164_s27] sm:$0x1] %vm6097_vm3, %v6096_v34  ;;  %s7708_s29 = sshll.u32 %s7783_s28, 4  ;;  %s7709_s29 = int_to_ptr.vmem [resolvable:$false] %s7708_s29 }
0x249d   : > { %p7706_p2 = pnand %p7705_p1, %p7842_p5  ;;  %s7710_s7 = scalar_lea.vmem %s7709_s29, 32 }
0x249e   : > { %p7711_p4 = scmp.lt.s32.totalorder %s8870_s30, %s7709_s29  ;;  %p7712_p7 = scmp.lt.s32.totalorder %s7710_s7, %s7704_s16 }
0x249f   : > { %p7707_p3 = pneg %p7706_p2 }
0x24a0   : > { %p7713_p8 = por %p7712_p7, %p7711_p4 }
0x24a2   : > { %p7714_p9 = pnand %p7713_p8, %p7707_p3 }
0x24a4   : > { %7717 = shalt.err (!%p7714_p9)
}
0x24a5   : > { %s7718_s10 = scalar_lea.hbm %s8868_s6, 16  ;;  %s7722_s11 = scalar_lea.hbm %s8913_s2, 32 }
0x24a6   : > { %p7719_p10 = scmp.ne.s32.totalorder %s8868_s6, %s7718_s10  ;;  %p7723_p13 = scmp.lt.u32.totalorder %s8868_s6, %s8913_s2 }
0x24a7   : > { %p7724_p0 = scmp.lt.u32.totalorder %s7722_s11, %s7718_s10  ;;  %p7726_p2 = scmp.lt.u32.totalorder %s7718_s10, %s8868_s6 }
0x24a8   : > { %p7720_p11 = pnand %p7719_p10, %p7842_p5 }
0x24a9   : > { %p7725_p1 = por %p7724_p0, %p7723_p13 }
0x24aa   : > { %p7721_p12 = pneg %p7720_p11 }
0x24ab   : > { %p7727_p3 = por %p7726_p2, %p7725_p1 }
0x24ad   : > { %p7728_p4 = pnand %p7727_p3, %p7721_p12 }
0x24af   : > { %7731 = shalt.err (!%p7728_p4)
}
0x24b0   : > { %7373 = dma.vmem_to_hbm [thread:$0]  (%p7842_p5), %s8870_s30, 16, %s8868_s6, %s6102_s17  }
0x24b1 PF: > { %p7384_p7 = scmp.ge.s32.totalorder %s7770_s15, 2  ;;  %s6144_s24 = sand.u32 1, %s7758_s12  }
0x24b2   : > { %s6145_s25 = scalar_lea.sflag [#allocation4], %s6144_s24 }
0x24b3   : > { %p7378_p8 = pnand %p7384_p7, %p7846_p6 }
0x24b5   : > { %7749 = dma.done.wait (!%p7378_p8), %s6145_s25, 16  }
0x24b6   : > { %7751 = vsyncadd (!%p7378_p8), %s6145_s25, 4294967280  ;;  %s6153_s26 = scalar_lea.sflag [#allocation6], %s6144_s24 }
0x24b7   : > { %7753 = dma.done.wait (!%p7378_p8), %s6153_s26, 64  }
0x24b8   : > { %7755 = vsyncadd (!%p7378_p8), %s6153_s26, 4294967232  ;;  %p17_p5 = scmp.ge.s32.totalorder %s7829_s18, 4   ;;  %s8921_s12 = smov %s7762_s13 }
0x24b9   : > { %s8922_s13 = smov %s7766_s14  ;;  %s8923_s14 = smov %s7840_s21 }
0x24ba   : > { %s8924_s15 = smov %s7829_s18  ;;  %19 = sbr.rel (!%p17_p5) target bundleno = 5 (0x5), region = 80 }
0x24c1   :  { %6158 = vsyncpa [#allocation4], 1 }
0x24c2   :  { %6160 = vsyncpa [#allocation4 + $0x1], 1 }
0x24c3   :  { %6161 = vsyncpa [#allocation6], 1 }
0x24c4   :  { %6163 = vsyncpa [#allocation6 + $0x1], 1 }

</bundles_post_ra>
